<compile_context>
chip_gen: v7x
topology: tpu7x:2x2x1
jax: 0.10.0
libtpu: 0.0.40
codegen_flags: <defaults>
</compile_context>

<pallas_src>
import functools

import jax
import jax.numpy as jnp
from jax.experimental import pallas as pl
from jax.experimental.pallas import tpu as pltpu

CHANNELS = [16, 32, 64, 128]
NUM_GNN_LAYERS = len(CHANNELS)
PAD = 128            # lane-dense working width used for every layer
HEAD_HIDDEN = 128
BN_EPS = 1e-5
SUBLANE = 8


def _round_up(x, m):
    return (x + m - 1) // m * m


def _gelu(x):
    # tanh approximation of GELU.
    # TODO(synk): torch.nn.GELU() defaults to exact erf; swap if bitwise parity is required.
    c = jnp.float32(0.7978845608028654)  # sqrt(2/pi)
    return 0.5 * x * (1.0 + jnp.tanh(c * (x + 0.044715 * x * x * x)))


# ---------------------------------------------------------------------------
# Kernel
# ---------------------------------------------------------------------------
def encoder_kernel(num_bond_types, z_dim, n_real,
                   x_ref, adj_ref, w_gnn_ref, w_head_ref, vecs_ref, out_ref):
    """Full MixtureModelEncoder forward pass on one VMEM-resident graph.

    x_ref      : [N_pad, 128]          f32   zero-padded one-hot node features
    adj_ref    : [B*N_pad, N_pad]      bf16  stacked dense adjacency A_0..A_{B-1}
    w_gnn_ref  : [4*(B+1), 128, 128]   bf16  per-layer [w_root, w_edge_0..B-1]
    w_head_ref : [3, 128, 128]         bf16  head [w1, w2, w_skip]
    vecs_ref   : [5, 8, 128]           f32   per-layer bias/gamma/beta + head biases
    out_ref    : [N_pad, 128]          f32   [mu | sigma | 0]
    """
    nb = num_bond_types
    nb1 = nb + 1
    n = x_ref.shape[0]                          # padded node count (multiple of 8)

    adj = adj_ref[...]                          # [B*N, N] bf16
    x = x_ref[...]                              # [N, 128] f32

    # Row mask: BatchNorm statistics only over the n_real real nodes; padded
    # rows are kept exactly zero so adjacency padding never matters.
    row = jax.lax.broadcasted_iota(jnp.int32, (n, 1), 0)
    row_mask = (row < n_real).astype(jnp.float32)          # [N, 1]
    inv_n = jnp.float32(1.0 / n_real)

    for l in range(NUM_GNN_LAYERS):
        xb = x.astype(jnp.bfloat16)

        # --- ECGConv: edge-conditioned aggregation (one stacked MXU matmul
        # over all bond types), then root + per-bond projections accumulated
        # directly in the MXU f32 accumulator (no lane concat, no xa temp).
        y = jnp.dot(adj, xb, preferred_element_type=jnp.float32)       # [B*N, 128]
        h = jnp.dot(xb, w_gnn_ref[l * nb1], preferred_element_type=jnp.float32)
        for b in range(nb):
            yb = y[b * n:(b + 1) * n, :].astype(jnp.bfloat16)          # [N, 128]
            h = h + jnp.dot(yb, w_gnn_ref[l * nb1 + 1 + b],
                            preferred_element_type=jnp.float32)

        lv = vecs_ref[l]                        # [8, 128]: bias / gamma / beta / pad
        bias, gamma, beta = lv[0:1, :], lv[1:2, :], lv[2:3, :]
        h = (h + bias) * row_mask               # zero padded rows before statistics

        # --- BatchNorm over nodes (training-mode batch statistics, f32).
        # TODO(synk): eval-mode running_mean/running_var would need to be packed in.
        mean = jnp.sum(h, axis=0, keepdims=True) * inv_n
        var = jnp.maximum(jnp.sum(h * h, axis=0, keepdims=True) * inv_n - mean * mean, 0.0)
        scale = gamma * jax.lax.rsqrt(var + BN_EPS)
        shift = beta - mean * scale

        # --- GELU.  Padded lanes stay exactly zero (bias/gamma/beta pads are 0).
        x = _gelu(h * scale + shift) * row_mask

    # --- Residual head: Linear -> GELU -> Linear, plus linear skip projection.
    hv = vecs_ref[NUM_GNN_LAYERS]               # [8, 128]: b1 / b2 / b_skip / pad
    b1, b2, b_skip = hv[0:1, :], hv[1:2, :], hv[2:3, :]
    xb = x.astype(jnp.bfloat16)
    hid = _gelu(jnp.dot(xb, w_head_ref[0], preferred_element_type=jnp.float32) + b1)
    z = (jnp.dot(hid.astype(jnp.bfloat16), w_head_ref[1],
                 preferred_element_type=jnp.float32) + b2
         + jnp.dot(xb, w_head_ref[2], preferred_element_type=jnp.float32) + b_skip)

    # z lanes: [0:z_dim) = mu, [z_dim:2*z_dim) = log_sigma, rest exact zero padding.
    col = jax.lax.broadcasted_iota(jnp.int32, z.shape, 1)
    sigma = jnp.exp(jnp.clip(z, -30.0, 20.0))
    out_ref[...] = jnp.where((col >= z_dim) & (col < 2 * z_dim), sigma, z)


# ---------------------------------------------------------------------------
# One-time parameter packing (hoisted out of the per-call path)
# ---------------------------------------------------------------------------
def pack_params(params, *, num_bond_types, z_dim):
    """Pack all 26 parameters into three slabs.  Call ONCE; reuse across calls."""
    nb1 = num_bond_types + 1
    w_gnn = jnp.zeros((NUM_GNN_LAYERS * nb1, PAD, PAD), jnp.float32)
    vecs = jnp.zeros((NUM_GNN_LAYERS + 1, SUBLANE, PAD), jnp.float32)
    idx = 0
    for l in range(NUM_GNN_LAYERS):
        w_root, w_edge, bias, gamma, beta = params[idx:idx + 5]
        idx += 5
        c_in, c_out = w_root.shape
        w_gnn = w_gnn.at[l * nb1, :c_in, :c_out].set(w_root)
        for b in range(num_bond_types):
            w_gnn = w_gnn.at[l * nb1 + 1 + b, :c_in, :c_out].set(w_edge[b])
        vecs = vecs.at[l, 0, :c_out].set(bias)
        vecs = vecs.at[l, 1, :c_out].set(gamma)
        vecs = vecs.at[l, 2, :c_out].set(beta)

    w1, b1, w2, b2, w_skip, b_skip = params[idx:idx + 6]
    out_dim = 2 * z_dim
    w_head = jnp.zeros((3, PAD, PAD), jnp.float32)
    w_head = w_head.at[0, :w1.shape[0], :w1.shape[1]].set(w1)
    w_head = w_head.at[1, :w2.shape[0], :out_dim].set(w2)
    w_head = w_head.at[2, :w_skip.shape[0], :out_dim].set(w_skip)
    vecs = vecs.at[NUM_GNN_LAYERS, 0, :b1.shape[0]].set(b1)
    vecs = vecs.at[NUM_GNN_LAYERS, 1, :out_dim].set(b2)
    vecs = vecs.at[NUM_GNN_LAYERS, 2, :out_dim].set(b_skip)

    # bf16 matmul operands (f32 accumulation in-kernel); bias/BN vectors stay f32.
    return w_gnn.astype(jnp.bfloat16), w_head.astype(jnp.bfloat16), vecs


# ---------------------------------------------------------------------------
# Per-call forward (only x / adj preparation happens here)
# ---------------------------------------------------------------------------
@functools.partial(jax.jit, static_argnames=("z_dim", "num_bond_types"))
def _encoder_forward(x, adj, w_gnn, w_head, vecs, *, z_dim, num_bond_types):
    n_real = x.shape[0]
    n_pad = _round_up(n_real, SUBLANE)

    x_pad = jnp.zeros((n_pad, PAD), jnp.float32).at[:n_real, :x.shape[1]].set(x)
    adj_pad = jnp.zeros((num_bond_types, n_pad, n_pad), jnp.float32)
    adj_pad = adj_pad.at[:, :n_real, :n_real].set(adj)
    adj_stack = adj_pad.reshape(num_bond_types * n_pad, n_pad).astype(jnp.bfloat16)

    kernel = functools.partial(encoder_kernel, num_bond_types, z_dim, n_real)
    vmem = pl.BlockSpec(memory_space=pltpu.MemorySpace.VMEM)
    return pl.pallas_call(
        kernel,
        out_shape=jax.ShapeDtypeStruct((n_pad, PAD), jnp.float32),
        in_specs=[vmem] * 5,
        out_specs=vmem,
    )(x_pad, adj_stack, w_gnn, w_head, vecs)


def mixture_model_encoder(x, adj, packed, *, z_dim, num_bond_types):
    """x: [N, num_atom_types] one-hot node features; adj: [B, N, N] dense adjacency;
    packed: result of pack_params(...) (built once, reused across calls)."""
    assert 2 * z_dim <= PAD
    w_gnn, w_head, vecs = packed
    out = _encoder_forward(x, adj, w_gnn, w_head, vecs,
                           z_dim=z_dim, num_bond_types=num_bond_types)
    n = x.shape[0]
    return out[:n, :z_dim], out[:n, z_dim:2 * z_dim]


# ---------------------------------------------------------------------------
# Pure-JAX reference (f32), parameter init and graph densification
# ---------------------------------------------------------------------------
def encoder_reference(x, adj, params, *, z_dim, num_bond_types):
    h = x
    idx = 0
    for _ in range(NUM_GNN_LAYERS):
        w_root, w_edge, bias, gamma, beta = params[idx:idx + 5]
        idx += 5
        agg = jnp.einsum('bij,jc->bic', adj, h)                       # [B, N, c_in]
        out = h @ w_root + jnp.einsum('bic,bco->io', agg, w_edge) + bias
        mean = out.mean(axis=0)
        var = out.var(axis=0)                                         # biased, like BN train
        out = (out - mean) * jax.lax.rsqrt(var + BN_EPS) * gamma + beta
        h = _gelu(out)
    w1, b1, w2, b2, w_skip, b_skip = params[idx:idx + 6]
    hid = _gelu(h @ w1 + b1)
    z = hid @ w2 + b2 + h @ w_skip + b_skip
    z_mu = z[:, :z_dim]
    z_sigma = jnp.exp(jnp.clip(z[:, z_dim:], -30.0, 20.0))
    return z_mu, z_sigma


def init_params(key, num_atom_types, num_bond_types, z_dim):
    """Deterministic synthetic parameters matching the module's __init__ shapes."""
    params = []
    keys = iter(jax.random.split(key, 2 * NUM_GNN_LAYERS + 3))
    in_c = num_atom_types
    for out_c in CHANNELS:
        w_root = jax.random.normal(next(keys), (in_c, out_c), jnp.float32) / jnp.sqrt(in_c)
        w_edge = jax.random.normal(next(keys), (num_bond_types, in_c, out_c),
                                   jnp.float32) / jnp.sqrt(in_c)
        bias = jnp.zeros((out_c,), jnp.float32)
        gamma = jnp.ones((out_c,), jnp.float32)    # BatchNorm weight
        beta = jnp.zeros((out_c,), jnp.float32)    # BatchNorm bias
        params += [w_root, w_edge, bias, gamma, beta]
        in_c = out_c

    out_dim = 2 * z_dim
    w1 = jax.random.normal(next(keys), (in_c, HEAD_HIDDEN), jnp.float32) / jnp.sqrt(in_c)
    b1 = jnp.zeros((HEAD_HIDDEN,), jnp.float32)
    w2 = jax.random.normal(next(keys), (HEAD_HIDDEN, out_dim), jnp.float32) / jnp.sqrt(HEAD_HIDDEN)
    b2 = jnp.zeros((out_dim,), jnp.float32)
    w_skip = jax.random.normal(next(keys), (in_c, out_dim), jnp.float32) / jnp.sqrt(in_c)
    b_skip = jnp.zeros((out_dim,), jnp.float32)
    params += [w1, b1, w2, b2, w_skip, b_skip]
    return params


def densify_graph(edge_index, edge_attr, num_nodes, num_bond_types):
    """edge_index [2, E] + one-hot edge_attr [E, B] -> dense adj[bond, dst, src]."""
    src = edge_index[0]
    dst = edge_index[1]
    bond = jnp.argmax(edge_attr, axis=-1)
    adj = jnp.zeros((num_bond_types, num_nodes, num_nodes), jnp.float32)
    adj = adj.at[bond, dst, src].add(1.0)
    return adj


if __name__ == "__main__":
    # hparams
    z_dim = 16
    num_atom_types = 8
    num_bond_types = 4

    # small synthetic graph
    N = 64    # nodes
    E = 128   # edges

    key = jax.random.PRNGKey(0)
    k_atom, k_src, k_dst, k_bond, k_param = jax.random.split(key, 5)

    atom_types = jax.random.randint(k_atom, (N,), 0, num_atom_types)
    x = jax.nn.one_hot(atom_types, num_atom_types, dtype=jnp.float32)          # [N, A]

    src = jax.random.randint(k_src, (E,), 0, N)
    dst = jax.random.randint(k_dst, (E,), 0, N)
    edge_index = jnp.stack([src, dst], axis=0)                                  # [2, E]
    bond_types = jax.random.randint(k_bond, (E,), 0, num_bond_types)
    edge_attr = jax.nn.one_hot(bond_types, num_bond_types, dtype=jnp.float32)   # [E, B]

    adj = densify_graph(edge_index, edge_attr, N, num_bond_types)               # [B, N, N]
    params = init_params(k_param, num_atom_types, num_bond_types, z_dim)

    # One-time packing (hoisted out of the per-call path).
    packed = pack_params(params, num_bond_types=num_bond_types, z_dim=z_dim)
    jax.block_until_ready(packed)

    z_mu, z_sigma = mixture_model_encoder(
        x, adj, packed, z_dim=z_dim, num_bond_types=num_bond_types)
    jax.block_until_ready((z_mu, z_sigma))

    assert z_mu.shape == (N, z_dim) and z_sigma.shape == (N, z_dim)
    assert bool(jnp.all(z_sigma > 0.0))
    assert bool(jnp.all(jnp.isfinite(z_mu))) and bool(jnp.all(jnp.isfinite(z_sigma)))

    # Loose-tolerance check vs the f32 pure-JAX reference (kernel uses bf16 matmuls).
    mu_ref, sigma_ref = encoder_reference(
        x, adj, params, z_dim=z_dim, num_bond_types=num_bond_types)
    assert bool(jnp.allclose(z_mu, mu_ref, rtol=1e-1, atol=1e-1))
    assert bool(jnp.allclose(z_sigma, sigma_ref, rtol=1e-1, atol=1e-1))

    print("KERNEL_OK")
</pallas_src>

<mosaic_0001>
module attributes {stable_mosaic.version = 11 : i64} {
  func.func @encoder_kernel(%arg0: memref<64x128xf32, #tpu.memory_space<vmem>>, %arg1: memref<256x64xbf16, #tpu.memory_space<vmem>>, %arg2: memref<20x128x128xbf16, #tpu.memory_space<vmem>>, %arg3: memref<3x128x128xbf16, #tpu.memory_space<vmem>>, %arg4: memref<5x8x128xf32, #tpu.memory_space<vmem>>, %arg5: memref<64x128xf32, #tpu.memory_space<vmem>>) attributes {dimension_semantics = [], scalar_prefetch = 0 : i64, scratch_operands = 0 : i64, tpu.core_type = #tpu.core_type<tc>} {
    %c0 = arith.constant 0 : index
    %c0_0 = arith.constant 0 : index
    %0 = vector.load %arg1[%c0, %c0_0] : memref<256x64xbf16, #tpu.memory_space<vmem>>, vector<256x64xbf16>
    %c0_1 = arith.constant 0 : index
    %c0_2 = arith.constant 0 : index
    %1 = vector.load %arg0[%c0_1, %c0_2] : memref<64x128xf32, #tpu.memory_space<vmem>>, vector<64x128xf32>
    %2 = tpu.iota {dimensions = array<i32: 0>} : vector<64x1xi32>
    %c64_i32 = arith.constant 64 : i32
    %3 = vector.broadcast %c64_i32 : i32 to vector<64x1xi32>
    %4 = arith.cmpi slt, %2, %3 : vector<64x1xi32>
    %5 = arith.extui %4 : vector<64x1xi1> to vector<64x1xi32>
    %6 = arith.sitofp %5 : vector<64x1xi32> to vector<64x1xf32>
    %7 = arith.truncf %1 : vector<64x128xf32> to vector<64x128xbf16>
    %cst = arith.constant dense<0.000000e+00> : vector<256x128xf32>
    %8 = tpu.matmul %0, %7, %cst {dimension_numbers = #tpu.dot_dimension_numbers<[1], [0], [0], [1], [0, 0, 1, 1], [], []>} : vector<256x64xbf16>, vector<64x128xbf16>, vector<256x128xf32> -> vector<256x128xf32>
    %c0_3 = arith.constant 0 : index
    %c0_4 = arith.constant 0 : index
    %c0_5 = arith.constant 0 : index
    %9 = vector.load %arg2[%c0_3, %c0_4, %c0_5] : memref<20x128x128xbf16, #tpu.memory_space<vmem>>, vector<1x128x128xbf16>
    %10 = vector.shape_cast %9 : vector<1x128x128xbf16> to vector<128x128xbf16>
    %cst_6 = arith.constant dense<0.000000e+00> : vector<64x128xf32>
    %11 = tpu.matmul %7, %10, %cst_6 {dimension_numbers = #tpu.dot_dimension_numbers<[1], [0], [0], [1], [0, 0, 1, 1], [], []>} : vector<64x128xbf16>, vector<128x128xbf16>, vector<64x128xf32> -> vector<64x128xf32>
    %12 = vector.extract_strided_slice %8 {offsets = [0, 0], sizes = [64, 128], strides = [1, 1]} : vector<256x128xf32> to vector<64x128xf32>
    %13 = arith.truncf %12 : vector<64x128xf32> to vector<64x128xbf16>
    %c1 = arith.constant 1 : index
    %c0_7 = arith.constant 0 : index
    %c0_8 = arith.constant 0 : index
    %14 = vector.load %arg2[%c1, %c0_7, %c0_8] : memref<20x128x128xbf16, #tpu.memory_space<vmem>>, vector<1x128x128xbf16>
    %15 = vector.shape_cast %14 : vector<1x128x128xbf16> to vector<128x128xbf16>
    %cst_9 = arith.constant dense<0.000000e+00> : vector<64x128xf32>
    %16 = tpu.matmul %13, %15, %cst_9 {dimension_numbers = #tpu.dot_dimension_numbers<[1], [0], [0], [1], [0, 0, 1, 1], [], []>} : vector<64x128xbf16>, vector<128x128xbf16>, vector<64x128xf32> -> vector<64x128xf32>
    %17 = arith.addf %11, %16 : vector<64x128xf32>
    %18 = vector.extract_strided_slice %8 {offsets = [64, 0], sizes = [64, 128], strides = [1, 1]} : vector<256x128xf32> to vector<64x128xf32>
    %19 = arith.truncf %18 : vector<64x128xf32> to vector<64x128xbf16>
    %c2 = arith.constant 2 : index
    %c0_10 = arith.constant 0 : index
    %c0_11 = arith.constant 0 : index
    %20 = vector.load %arg2[%c2, %c0_10, %c0_11] : memref<20x128x128xbf16, #tpu.memory_space<vmem>>, vector<1x128x128xbf16>
    %21 = vector.shape_cast %20 : vector<1x128x128xbf16> to vector<128x128xbf16>
    %cst_12 = arith.constant dense<0.000000e+00> : vector<64x128xf32>
    %22 = tpu.matmul %19, %21, %cst_12 {dimension_numbers = #tpu.dot_dimension_numbers<[1], [0], [0], [1], [0, 0, 1, 1], [], []>} : vector<64x128xbf16>, vector<128x128xbf16>, vector<64x128xf32> -> vector<64x128xf32>
    %23 = arith.addf %17, %22 : vector<64x128xf32>
    %24 = vector.extract_strided_slice %8 {offsets = [128, 0], sizes = [64, 128], strides = [1, 1]} : vector<256x128xf32> to vector<64x128xf32>
    %25 = arith.truncf %24 : vector<64x128xf32> to vector<64x128xbf16>
    %c3 = arith.constant 3 : index
    %c0_13 = arith.constant 0 : index
    %c0_14 = arith.constant 0 : index
    %26 = vector.load %arg2[%c3, %c0_13, %c0_14] : memref<20x128x128xbf16, #tpu.memory_space<vmem>>, vector<1x128x128xbf16>
    %27 = vector.shape_cast %26 : vector<1x128x128xbf16> to vector<128x128xbf16>
    %cst_15 = arith.constant dense<0.000000e+00> : vector<64x128xf32>
    %28 = tpu.matmul %25, %27, %cst_15 {dimension_numbers = #tpu.dot_dimension_numbers<[1], [0], [0], [1], [0, 0, 1, 1], [], []>} : vector<64x128xbf16>, vector<128x128xbf16>, vector<64x128xf32> -> vector<64x128xf32>
    %29 = arith.addf %23, %28 : vector<64x128xf32>
    %30 = vector.extract_strided_slice %8 {offsets = [192, 0], sizes = [64, 128], strides = [1, 1]} : vector<256x128xf32> to vector<64x128xf32>
    %31 = arith.truncf %30 : vector<64x128xf32> to vector<64x128xbf16>
    %c4 = arith.constant 4 : index
    %c0_16 = arith.constant 0 : index
    %c0_17 = arith.constant 0 : index
    %32 = vector.load %arg2[%c4, %c0_16, %c0_17] : memref<20x128x128xbf16, #tpu.memory_space<vmem>>, vector<1x128x128xbf16>
    %33 = vector.shape_cast %32 : vector<1x128x128xbf16> to vector<128x128xbf16>
    %cst_18 = arith.constant dense<0.000000e+00> : vector<64x128xf32>
    %34 = tpu.matmul %31, %33, %cst_18 {dimension_numbers = #tpu.dot_dimension_numbers<[1], [0], [0], [1], [0, 0, 1, 1], [], []>} : vector<64x128xbf16>, vector<128x128xbf16>, vector<64x128xf32> -> vector<64x128xf32>
    %35 = arith.addf %29, %34 : vector<64x128xf32>
    %c0_19 = arith.constant 0 : index
    %c0_20 = arith.constant 0 : index
    %c0_21 = arith.constant 0 : index
    %36 = vector.load %arg4[%c0_19, %c0_20, %c0_21] : memref<5x8x128xf32, #tpu.memory_space<vmem>>, vector<1x8x128xf32>
    %37 = vector.shape_cast %36 : vector<1x8x128xf32> to vector<8x128xf32>
    %38 = vector.extract_strided_slice %37 {offsets = [0, 0], sizes = [1, 128], strides = [1, 1]} : vector<8x128xf32> to vector<1x128xf32>
    %39 = vector.extract_strided_slice %37 {offsets = [1, 0], sizes = [1, 128], strides = [1, 1]} : vector<8x128xf32> to vector<1x128xf32>
    %40 = vector.extract_strided_slice %37 {offsets = [2, 0], sizes = [1, 128], strides = [1, 1]} : vector<8x128xf32> to vector<1x128xf32>
    %41 = vector.broadcast %38 : vector<1x128xf32> to vector<64x128xf32>
    %42 = arith.addf %35, %41 : vector<64x128xf32>
    %43 = vector.broadcast %6 : vector<64x1xf32> to vector<64x128xf32>
    %44 = arith.mulf %42, %43 : vector<64x128xf32>
    %cst_22 = arith.constant dense<0.000000e+00> : vector<128xf32>
    %45 = vector.multi_reduction <add>, %44, %cst_22 [0] : vector<64x128xf32> to vector<128xf32>
    %46 = vector.shape_cast %45 : vector<128xf32> to vector<1x128xf32>
    %cst_23 = arith.constant 1.562500e-02 : f32
    %47 = vector.broadcast %cst_23 : f32 to vector<1x128xf32>
    %48 = arith.mulf %46, %47 : vector<1x128xf32>
    %49 = arith.mulf %44, %44 : vector<64x128xf32>
    %cst_24 = arith.constant dense<0.000000e+00> : vector<128xf32>
    %50 = vector.multi_reduction <add>, %49, %cst_24 [0] : vector<64x128xf32> to vector<128xf32>
    %51 = vector.shape_cast %50 : vector<128xf32> to vector<1x128xf32>
    %cst_25 = arith.constant 1.562500e-02 : f32
    %52 = vector.broadcast %cst_25 : f32 to vector<1x128xf32>
    %53 = arith.mulf %51, %52 : vector<1x128xf32>
    %54 = arith.mulf %48, %48 : vector<1x128xf32>
    %55 = arith.subf %53, %54 : vector<1x128xf32>
    %cst_26 = arith.constant 0.000000e+00 : f32
    %56 = vector.broadcast %cst_26 : f32 to vector<1x128xf32>
    %57 = arith.maximumf %55, %56 : vector<1x128xf32>
    %cst_27 = arith.constant 9.99999974E-6 : f32
    %58 = vector.broadcast %cst_27 : f32 to vector<1x128xf32>
    %59 = arith.addf %57, %58 : vector<1x128xf32>
    %60 = math.rsqrt %59 : vector<1x128xf32>
    %61 = arith.mulf %39, %60 : vector<1x128xf32>
    %62 = arith.mulf %48, %61 : vector<1x128xf32>
    %63 = arith.subf %40, %62 : vector<1x128xf32>
    %64 = vector.broadcast %61 : vector<1x128xf32> to vector<64x128xf32>
    %65 = arith.mulf %44, %64 : vector<64x128xf32>
    %66 = vector.broadcast %63 : vector<1x128xf32> to vector<64x128xf32>
    %67 = arith.addf %65, %66 : vector<64x128xf32>
    %cst_28 = arith.constant 5.000000e-01 : f32
    %68 = vector.broadcast %cst_28 : f32 to vector<64x128xf32>
    %69 = arith.mulf %68, %67 : vector<64x128xf32>
    %cst_29 = arith.constant 4.471500e-02 : f32
    %70 = vector.broadcast %cst_29 : f32 to vector<64x128xf32>
    %71 = arith.mulf %70, %67 : vector<64x128xf32>
    %72 = arith.mulf %71, %67 : vector<64x128xf32>
    %73 = arith.mulf %72, %67 : vector<64x128xf32>
    %74 = arith.addf %67, %73 : vector<64x128xf32>
    %cst_30 = arith.constant 0.797884583 : f32
    %75 = vector.broadcast %cst_30 : f32 to vector<64x128xf32>
    %76 = arith.mulf %75, %74 : vector<64x128xf32>
    %77 = math.tanh %76 : vector<64x128xf32>
    %cst_31 = arith.constant 1.000000e+00 : f32
    %78 = vector.broadcast %cst_31 : f32 to vector<64x128xf32>
    %79 = arith.addf %78, %77 : vector<64x128xf32>
    %80 = arith.mulf %69, %79 : vector<64x128xf32>
    %81 = vector.broadcast %6 : vector<64x1xf32> to vector<64x128xf32>
    %82 = arith.mulf %80, %81 : vector<64x128xf32>
    %83 = arith.truncf %82 : vector<64x128xf32> to vector<64x128xbf16>
    %cst_32 = arith.constant dense<0.000000e+00> : vector<256x128xf32>
    %84 = tpu.matmul %0, %83, %cst_32 {dimension_numbers = #tpu.dot_dimension_numbers<[1], [0], [0], [1], [0, 0, 1, 1], [], []>} : vector<256x64xbf16>, vector<64x128xbf16>, vector<256x128xf32> -> vector<256x128xf32>
    %c5 = arith.constant 5 : index
    %c0_33 = arith.constant 0 : index
    %c0_34 = arith.constant 0 : index
    %85 = vector.load %arg2[%c5, %c0_33, %c0_34] : memref<20x128x128xbf16, #tpu.memory_space<vmem>>, vector<1x128x128xbf16>
    %86 = vector.shape_cast %85 : vector<1x128x128xbf16> to vector<128x128xbf16>
    %cst_35 = arith.constant dense<0.000000e+00> : vector<64x128xf32>
    %87 = tpu.matmul %83, %86, %cst_35 {dimension_numbers = #tpu.dot_dimension_numbers<[1], [0], [0], [1], [0, 0, 1, 1], [], []>} : vector<64x128xbf16>, vector<128x128xbf16>, vector<64x128xf32> -> vector<64x128xf32>
    %88 = vector.extract_strided_slice %84 {offsets = [0, 0], sizes = [64, 128], strides = [1, 1]} : vector<256x128xf32> to vector<64x128xf32>
    %89 = arith.truncf %88 : vector<64x128xf32> to vector<64x128xbf16>
    %c6 = arith.constant 6 : index
    %c0_36 = arith.constant 0 : index
    %c0_37 = arith.constant 0 : index
    %90 = vector.load %arg2[%c6, %c0_36, %c0_37] : memref<20x128x128xbf16, #tpu.memory_space<vmem>>, vector<1x128x128xbf16>
    %91 = vector.shape_cast %90 : vector<1x128x128xbf16> to vector<128x128xbf16>
    %cst_38 = arith.constant dense<0.000000e+00> : vector<64x128xf32>
    %92 = tpu.matmul %89, %91, %cst_38 {dimension_numbers = #tpu.dot_dimension_numbers<[1], [0], [0], [1], [0, 0, 1, 1], [], []>} : vector<64x128xbf16>, vector<128x128xbf16>, vector<64x128xf32> -> vector<64x128xf32>
    %93 = arith.addf %87, %92 : vector<64x128xf32>
    %94 = vector.extract_strided_slice %84 {offsets = [64, 0], sizes = [64, 128], strides = [1, 1]} : vector<256x128xf32> to vector<64x128xf32>
    %95 = arith.truncf %94 : vector<64x128xf32> to vector<64x128xbf16>
    %c7 = arith.constant 7 : index
    %c0_39 = arith.constant 0 : index
    %c0_40 = arith.constant 0 : index
    %96 = vector.load %arg2[%c7, %c0_39, %c0_40] : memref<20x128x128xbf16, #tpu.memory_space<vmem>>, vector<1x128x128xbf16>
    %97 = vector.shape_cast %96 : vector<1x128x128xbf16> to vector<128x128xbf16>
    %cst_41 = arith.constant dense<0.000000e+00> : vector<64x128xf32>
    %98 = tpu.matmul %95, %97, %cst_41 {dimension_numbers = #tpu.dot_dimension_numbers<[1], [0], [0], [1], [0, 0, 1, 1], [], []>} : vector<64x128xbf16>, vector<128x128xbf16>, vector<64x128xf32> -> vector<64x128xf32>
    %99 = arith.addf %93, %98 : vector<64x128xf32>
    %100 = vector.extract_strided_slice %84 {offsets = [128, 0], sizes = [64, 128], strides = [1, 1]} : vector<256x128xf32> to vector<64x128xf32>
    %101 = arith.truncf %100 : vector<64x128xf32> to vector<64x128xbf16>
    %c8 = arith.constant 8 : index
    %c0_42 = arith.constant 0 : index
    %c0_43 = arith.constant 0 : index
    %102 = vector.load %arg2[%c8, %c0_42, %c0_43] : memref<20x128x128xbf16, #tpu.memory_space<vmem>>, vector<1x128x128xbf16>
    %103 = vector.shape_cast %102 : vector<1x128x128xbf16> to vector<128x128xbf16>
    %cst_44 = arith.constant dense<0.000000e+00> : vector<64x128xf32>
    %104 = tpu.matmul %101, %103, %cst_44 {dimension_numbers = #tpu.dot_dimension_numbers<[1], [0], [0], [1], [0, 0, 1, 1], [], []>} : vector<64x128xbf16>, vector<128x128xbf16>, vector<64x128xf32> -> vector<64x128xf32>
    %105 = arith.addf %99, %104 : vector<64x128xf32>
    %106 = vector.extract_strided_slice %84 {offsets = [192, 0], sizes = [64, 128], strides = [1, 1]} : vector<256x128xf32> to vector<64x128xf32>
    %107 = arith.truncf %106 : vector<64x128xf32> to vector<64x128xbf16>
    %c9 = arith.constant 9 : index
    %c0_45 = arith.constant 0 : index
    %c0_46 = arith.constant 0 : index
    %108 = vector.load %arg2[%c9, %c0_45, %c0_46] : memref<20x128x128xbf16, #tpu.memory_space<vmem>>, vector<1x128x128xbf16>
    %109 = vector.shape_cast %108 : vector<1x128x128xbf16> to vector<128x128xbf16>
    %cst_47 = arith.constant dense<0.000000e+00> : vector<64x128xf32>
    %110 = tpu.matmul %107, %109, %cst_47 {dimension_numbers = #tpu.dot_dimension_numbers<[1], [0], [0], [1], [0, 0, 1, 1], [], []>} : vector<64x128xbf16>, vector<128x128xbf16>, vector<64x128xf32> -> vector<64x128xf32>
    %111 = arith.addf %105, %110 : vector<64x128xf32>
    %c1_48 = arith.constant 1 : index
    %c0_49 = arith.constant 0 : index
    %c0_50 = arith.constant 0 : index
    %112 = vector.load %arg4[%c1_48, %c0_49, %c0_50] : memref<5x8x128xf32, #tpu.memory_space<vmem>>, vector<1x8x128xf32>
    %113 = vector.shape_cast %112 : vector<1x8x128xf32> to vector<8x128xf32>
    %114 = vector.extract_strided_slice %113 {offsets = [0, 0], sizes = [1, 128], strides = [1, 1]} : vector<8x128xf32> to vector<1x128xf32>
    %115 = vector.extract_strided_slice %113 {offsets = [1, 0], sizes = [1, 128], strides = [1, 1]} : vector<8x128xf32> to vector<1x128xf32>
    %116 = vector.extract_strided_slice %113 {offsets = [2, 0], sizes = [1, 128], strides = [1, 1]} : vector<8x128xf32> to vector<1x128xf32>
    %117 = vector.broadcast %114 : vector<1x128xf32> to vector<64x128xf32>
    %118 = arith.addf %111, %117 : vector<64x128xf32>
    %119 = vector.broadcast %6 : vector<64x1xf32> to vector<64x128xf32>
    %120 = arith.mulf %118, %119 : vector<64x128xf32>
    %cst_51 = arith.constant dense<0.000000e+00> : vector<128xf32>
    %121 = vector.multi_reduction <add>, %120, %cst_51 [0] : vector<64x128xf32> to vector<128xf32>
    %122 = vector.shape_cast %121 : vector<128xf32> to vector<1x128xf32>
    %cst_52 = arith.constant 1.562500e-02 : f32
    %123 = vector.broadcast %cst_52 : f32 to vector<1x128xf32>
    %124 = arith.mulf %122, %123 : vector<1x128xf32>
    %125 = arith.mulf %120, %120 : vector<64x128xf32>
    %cst_53 = arith.constant dense<0.000000e+00> : vector<128xf32>
    %126 = vector.multi_reduction <add>, %125, %cst_53 [0] : vector<64x128xf32> to vector<128xf32>
    %127 = vector.shape_cast %126 : vector<128xf32> to vector<1x128xf32>
    %cst_54 = arith.constant 1.562500e-02 : f32
    %128 = vector.broadcast %cst_54 : f32 to vector<1x128xf32>
    %129 = arith.mulf %127, %128 : vector<1x128xf32>
    %130 = arith.mulf %124, %124 : vector<1x128xf32>
    %131 = arith.subf %129, %130 : vector<1x128xf32>
    %cst_55 = arith.constant 0.000000e+00 : f32
    %132 = vector.broadcast %cst_55 : f32 to vector<1x128xf32>
    %133 = arith.maximumf %131, %132 : vector<1x128xf32>
    %cst_56 = arith.constant 9.99999974E-6 : f32
    %134 = vector.broadcast %cst_56 : f32 to vector<1x128xf32>
    %135 = arith.addf %133, %134 : vector<1x128xf32>
    %136 = math.rsqrt %135 : vector<1x128xf32>
    %137 = arith.mulf %115, %136 : vector<1x128xf32>
    %138 = arith.mulf %124, %137 : vector<1x128xf32>
    %139 = arith.subf %116, %138 : vector<1x128xf32>
    %140 = vector.broadcast %137 : vector<1x128xf32> to vector<64x128xf32>
    %141 = arith.mulf %120, %140 : vector<64x128xf32>
    %142 = vector.broadcast %139 : vector<1x128xf32> to vector<64x128xf32>
    %143 = arith.addf %141, %142 : vector<64x128xf32>
    %cst_57 = arith.constant 5.000000e-01 : f32
    %144 = vector.broadcast %cst_57 : f32 to vector<64x128xf32>
    %145 = arith.mulf %144, %143 : vector<64x128xf32>
    %cst_58 = arith.constant 4.471500e-02 : f32
    %146 = vector.broadcast %cst_58 : f32 to vector<64x128xf32>
    %147 = arith.mulf %146, %143 : vector<64x128xf32>
    %148 = arith.mulf %147, %143 : vector<64x128xf32>
    %149 = arith.mulf %148, %143 : vector<64x128xf32>
    %150 = arith.addf %143, %149 : vector<64x128xf32>
    %cst_59 = arith.constant 0.797884583 : f32
    %151 = vector.broadcast %cst_59 : f32 to vector<64x128xf32>
    %152 = arith.mulf %151, %150 : vector<64x128xf32>
    %153 = math.tanh %152 : vector<64x128xf32>
    %cst_60 = arith.constant 1.000000e+00 : f32
    %154 = vector.broadcast %cst_60 : f32 to vector<64x128xf32>
    %155 = arith.addf %154, %153 : vector<64x128xf32>
    %156 = arith.mulf %145, %155 : vector<64x128xf32>
    %157 = vector.broadcast %6 : vector<64x1xf32> to vector<64x128xf32>
    %158 = arith.mulf %156, %157 : vector<64x128xf32>
    %159 = arith.truncf %158 : vector<64x128xf32> to vector<64x128xbf16>
    %cst_61 = arith.constant dense<0.000000e+00> : vector<256x128xf32>
    %160 = tpu.matmul %0, %159, %cst_61 {dimension_numbers = #tpu.dot_dimension_numbers<[1], [0], [0], [1], [0, 0, 1, 1], [], []>} : vector<256x64xbf16>, vector<64x128xbf16>, vector<256x128xf32> -> vector<256x128xf32>
    %c10 = arith.constant 10 : index
    %c0_62 = arith.constant 0 : index
    %c0_63 = arith.constant 0 : index
    %161 = vector.load %arg2[%c10, %c0_62, %c0_63] : memref<20x128x128xbf16, #tpu.memory_space<vmem>>, vector<1x128x128xbf16>
    %162 = vector.shape_cast %161 : vector<1x128x128xbf16> to vector<128x128xbf16>
    %cst_64 = arith.constant dense<0.000000e+00> : vector<64x128xf32>
    %163 = tpu.matmul %159, %162, %cst_64 {dimension_numbers = #tpu.dot_dimension_numbers<[1], [0], [0], [1], [0, 0, 1, 1], [], []>} : vector<64x128xbf16>, vector<128x128xbf16>, vector<64x128xf32> -> vector<64x128xf32>
    %164 = vector.extract_strided_slice %160 {offsets = [0, 0], sizes = [64, 128], strides = [1, 1]} : vector<256x128xf32> to vector<64x128xf32>
    %165 = arith.truncf %164 : vector<64x128xf32> to vector<64x128xbf16>
    %c11 = arith.constant 11 : index
    %c0_65 = arith.constant 0 : index
    %c0_66 = arith.constant 0 : index
    %166 = vector.load %arg2[%c11, %c0_65, %c0_66] : memref<20x128x128xbf16, #tpu.memory_space<vmem>>, vector<1x128x128xbf16>
    %167 = vector.shape_cast %166 : vector<1x128x128xbf16> to vector<128x128xbf16>
    %cst_67 = arith.constant dense<0.000000e+00> : vector<64x128xf32>
    %168 = tpu.matmul %165, %167, %cst_67 {dimension_numbers = #tpu.dot_dimension_numbers<[1], [0], [0], [1], [0, 0, 1, 1], [], []>} : vector<64x128xbf16>, vector<128x128xbf16>, vector<64x128xf32> -> vector<64x128xf32>
    %169 = arith.addf %163, %168 : vector<64x128xf32>
    %170 = vector.extract_strided_slice %160 {offsets = [64, 0], sizes = [64, 128], strides = [1, 1]} : vector<256x128xf32> to vector<64x128xf32>
    %171 = arith.truncf %170 : vector<64x128xf32> to vector<64x128xbf16>
    %c12 = arith.constant 12 : index
    %c0_68 = arith.constant 0 : index
    %c0_69 = arith.constant 0 : index
    %172 = vector.load %arg2[%c12, %c0_68, %c0_69] : memref<20x128x128xbf16, #tpu.memory_space<vmem>>, vector<1x128x128xbf16>
    %173 = vector.shape_cast %172 : vector<1x128x128xbf16> to vector<128x128xbf16>
    %cst_70 = arith.constant dense<0.000000e+00> : vector<64x128xf32>
    %174 = tpu.matmul %171, %173, %cst_70 {dimension_numbers = #tpu.dot_dimension_numbers<[1], [0], [0], [1], [0, 0, 1, 1], [], []>} : vector<64x128xbf16>, vector<128x128xbf16>, vector<64x128xf32> -> vector<64x128xf32>
    %175 = arith.addf %169, %174 : vector<64x128xf32>
    %176 = vector.extract_strided_slice %160 {offsets = [128, 0], sizes = [64, 128], strides = [1, 1]} : vector<256x128xf32> to vector<64x128xf32>
    %177 = arith.truncf %176 : vector<64x128xf32> to vector<64x128xbf16>
    %c13 = arith.constant 13 : index
    %c0_71 = arith.constant 0 : index
    %c0_72 = arith.constant 0 : index
    %178 = vector.load %arg2[%c13, %c0_71, %c0_72] : memref<20x128x128xbf16, #tpu.memory_space<vmem>>, vector<1x128x128xbf16>
    %179 = vector.shape_cast %178 : vector<1x128x128xbf16> to vector<128x128xbf16>
    %cst_73 = arith.constant dense<0.000000e+00> : vector<64x128xf32>
    %180 = tpu.matmul %177, %179, %cst_73 {dimension_numbers = #tpu.dot_dimension_numbers<[1], [0], [0], [1], [0, 0, 1, 1], [], []>} : vector<64x128xbf16>, vector<128x128xbf16>, vector<64x128xf32> -> vector<64x128xf32>
    %181 = arith.addf %175, %180 : vector<64x128xf32>
    %182 = vector.extract_strided_slice %160 {offsets = [192, 0], sizes = [64, 128], strides = [1, 1]} : vector<256x128xf32> to vector<64x128xf32>
    %183 = arith.truncf %182 : vector<64x128xf32> to vector<64x128xbf16>
    %c14 = arith.constant 14 : index
    %c0_74 = arith.constant 0 : index
    %c0_75 = arith.constant 0 : index
    %184 = vector.load %arg2[%c14, %c0_74, %c0_75] : memref<20x128x128xbf16, #tpu.memory_space<vmem>>, vector<1x128x128xbf16>
    %185 = vector.shape_cast %184 : vector<1x128x128xbf16> to vector<128x128xbf16>
    %cst_76 = arith.constant dense<0.000000e+00> : vector<64x128xf32>
    %186 = tpu.matmul %183, %185, %cst_76 {dimension_numbers = #tpu.dot_dimension_numbers<[1], [0], [0], [1], [0, 0, 1, 1], [], []>} : vector<64x128xbf16>, vector<128x128xbf16>, vector<64x128xf32> -> vector<64x128xf32>
    %187 = arith.addf %181, %186 : vector<64x128xf32>
    %c2_77 = arith.constant 2 : index
    %c0_78 = arith.constant 0 : index
    %c0_79 = arith.constant 0 : index
    %188 = vector.load %arg4[%c2_77, %c0_78, %c0_79] : memref<5x8x128xf32, #tpu.memory_space<vmem>>, vector<1x8x128xf32>
    %189 = vector.shape_cast %188 : vector<1x8x128xf32> to vector<8x128xf32>
    %190 = vector.extract_strided_slice %189 {offsets = [0, 0], sizes = [1, 128], strides = [1, 1]} : vector<8x128xf32> to vector<1x128xf32>
    %191 = vector.extract_strided_slice %189 {offsets = [1, 0], sizes = [1, 128], strides = [1, 1]} : vector<8x128xf32> to vector<1x128xf32>
    %192 = vector.extract_strided_slice %189 {offsets = [2, 0], sizes = [1, 128], strides = [1, 1]} : vector<8x128xf32> to vector<1x128xf32>
    %193 = vector.broadcast %190 : vector<1x128xf32> to vector<64x128xf32>
    %194 = arith.addf %187, %193 : vector<64x128xf32>
    %195 = vector.broadcast %6 : vector<64x1xf32> to vector<64x128xf32>
    %196 = arith.mulf %194, %195 : vector<64x128xf32>
    %cst_80 = arith.constant dense<0.000000e+00> : vector<128xf32>
    %197 = vector.multi_reduction <add>, %196, %cst_80 [0] : vector<64x128xf32> to vector<128xf32>
    %198 = vector.shape_cast %197 : vector<128xf32> to vector<1x128xf32>
    %cst_81 = arith.constant 1.562500e-02 : f32
    %199 = vector.broadcast %cst_81 : f32 to vector<1x128xf32>
    %200 = arith.mulf %198, %199 : vector<1x128xf32>
    %201 = arith.mulf %196, %196 : vector<64x128xf32>
    %cst_82 = arith.constant dense<0.000000e+00> : vector<128xf32>
    %202 = vector.multi_reduction <add>, %201, %cst_82 [0] : vector<64x128xf32> to vector<128xf32>
    %203 = vector.shape_cast %202 : vector<128xf32> to vector<1x128xf32>
    %cst_83 = arith.constant 1.562500e-02 : f32
    %204 = vector.broadcast %cst_83 : f32 to vector<1x128xf32>
    %205 = arith.mulf %203, %204 : vector<1x128xf32>
    %206 = arith.mulf %200, %200 : vector<1x128xf32>
    %207 = arith.subf %205, %206 : vector<1x128xf32>
    %cst_84 = arith.constant 0.000000e+00 : f32
    %208 = vector.broadcast %cst_84 : f32 to vector<1x128xf32>
    %209 = arith.maximumf %207, %208 : vector<1x128xf32>
    %cst_85 = arith.constant 9.99999974E-6 : f32
    %210 = vector.broadcast %cst_85 : f32 to vector<1x128xf32>
    %211 = arith.addf %209, %210 : vector<1x128xf32>
    %212 = math.rsqrt %211 : vector<1x128xf32>
    %213 = arith.mulf %191, %212 : vector<1x128xf32>
    %214 = arith.mulf %200, %213 : vector<1x128xf32>
    %215 = arith.subf %192, %214 : vector<1x128xf32>
    %216 = vector.broadcast %213 : vector<1x128xf32> to vector<64x128xf32>
    %217 = arith.mulf %196, %216 : vector<64x128xf32>
    %218 = vector.broadcast %215 : vector<1x128xf32> to vector<64x128xf32>
    %219 = arith.addf %217, %218 : vector<64x128xf32>
    %cst_86 = arith.constant 5.000000e-01 : f32
    %220 = vector.broadcast %cst_86 : f32 to vector<64x128xf32>
    %221 = arith.mulf %220, %219 : vector<64x128xf32>
    %cst_87 = arith.constant 4.471500e-02 : f32
    %222 = vector.broadcast %cst_87 : f32 to vector<64x128xf32>
    %223 = arith.mulf %222, %219 : vector<64x128xf32>
    %224 = arith.mulf %223, %219 : vector<64x128xf32>
    %225 = arith.mulf %224, %219 : vector<64x128xf32>
    %226 = arith.addf %219, %225 : vector<64x128xf32>
    %cst_88 = arith.constant 0.797884583 : f32
    %227 = vector.broadcast %cst_88 : f32 to vector<64x128xf32>
    %228 = arith.mulf %227, %226 : vector<64x128xf32>
    %229 = math.tanh %228 : vector<64x128xf32>
    %cst_89 = arith.constant 1.000000e+00 : f32
    %230 = vector.broadcast %cst_89 : f32 to vector<64x128xf32>
    %231 = arith.addf %230, %229 : vector<64x128xf32>
    %232 = arith.mulf %221, %231 : vector<64x128xf32>
    %233 = vector.broadcast %6 : vector<64x1xf32> to vector<64x128xf32>
    %234 = arith.mulf %232, %233 : vector<64x128xf32>
    %235 = arith.truncf %234 : vector<64x128xf32> to vector<64x128xbf16>
    %cst_90 = arith.constant dense<0.000000e+00> : vector<256x128xf32>
    %236 = tpu.matmul %0, %235, %cst_90 {dimension_numbers = #tpu.dot_dimension_numbers<[1], [0], [0], [1], [0, 0, 1, 1], [], []>} : vector<256x64xbf16>, vector<64x128xbf16>, vector<256x128xf32> -> vector<256x128xf32>
    %c15 = arith.constant 15 : index
    %c0_91 = arith.constant 0 : index
    %c0_92 = arith.constant 0 : index
    %237 = vector.load %arg2[%c15, %c0_91, %c0_92] : memref<20x128x128xbf16, #tpu.memory_space<vmem>>, vector<1x128x128xbf16>
    %238 = vector.shape_cast %237 : vector<1x128x128xbf16> to vector<128x128xbf16>
    %cst_93 = arith.constant dense<0.000000e+00> : vector<64x128xf32>
    %239 = tpu.matmul %235, %238, %cst_93 {dimension_numbers = #tpu.dot_dimension_numbers<[1], [0], [0], [1], [0, 0, 1, 1], [], []>} : vector<64x128xbf16>, vector<128x128xbf16>, vector<64x128xf32> -> vector<64x128xf32>
    %240 = vector.extract_strided_slice %236 {offsets = [0, 0], sizes = [64, 128], strides = [1, 1]} : vector<256x128xf32> to vector<64x128xf32>
    %241 = arith.truncf %240 : vector<64x128xf32> to vector<64x128xbf16>
    %c16 = arith.constant 16 : index
    %c0_94 = arith.constant 0 : index
    %c0_95 = arith.constant 0 : index
    %242 = vector.load %arg2[%c16, %c0_94, %c0_95] : memref<20x128x128xbf16, #tpu.memory_space<vmem>>, vector<1x128x128xbf16>
    %243 = vector.shape_cast %242 : vector<1x128x128xbf16> to vector<128x128xbf16>
    %cst_96 = arith.constant dense<0.000000e+00> : vector<64x128xf32>
    %244 = tpu.matmul %241, %243, %cst_96 {dimension_numbers = #tpu.dot_dimension_numbers<[1], [0], [0], [1], [0, 0, 1, 1], [], []>} : vector<64x128xbf16>, vector<128x128xbf16>, vector<64x128xf32> -> vector<64x128xf32>
    %245 = arith.addf %239, %244 : vector<64x128xf32>
    %246 = vector.extract_strided_slice %236 {offsets = [64, 0], sizes = [64, 128], strides = [1, 1]} : vector<256x128xf32> to vector<64x128xf32>
    %247 = arith.truncf %246 : vector<64x128xf32> to vector<64x128xbf16>
    %c17 = arith.constant 17 : index
    %c0_97 = arith.constant 0 : index
    %c0_98 = arith.constant 0 : index
    %248 = vector.load %arg2[%c17, %c0_97, %c0_98] : memref<20x128x128xbf16, #tpu.memory_space<vmem>>, vector<1x128x128xbf16>
    %249 = vector.shape_cast %248 : vector<1x128x128xbf16> to vector<128x128xbf16>
    %cst_99 = arith.constant dense<0.000000e+00> : vector<64x128xf32>
    %250 = tpu.matmul %247, %249, %cst_99 {dimension_numbers = #tpu.dot_dimension_numbers<[1], [0], [0], [1], [0, 0, 1, 1], [], []>} : vector<64x128xbf16>, vector<128x128xbf16>, vector<64x128xf32> -> vector<64x128xf32>
    %251 = arith.addf %245, %250 : vector<64x128xf32>
    %252 = vector.extract_strided_slice %236 {offsets = [128, 0], sizes = [64, 128], strides = [1, 1]} : vector<256x128xf32> to vector<64x128xf32>
    %253 = arith.truncf %252 : vector<64x128xf32> to vector<64x128xbf16>
    %c18 = arith.constant 18 : index
    %c0_100 = arith.constant 0 : index
    %c0_101 = arith.constant 0 : index
    %254 = vector.load %arg2[%c18, %c0_100, %c0_101] : memref<20x128x128xbf16, #tpu.memory_space<vmem>>, vector<1x128x128xbf16>
    %255 = vector.shape_cast %254 : vector<1x128x128xbf16> to vector<128x128xbf16>
    %cst_102 = arith.constant dense<0.000000e+00> : vector<64x128xf32>
    %256 = tpu.matmul %253, %255, %cst_102 {dimension_numbers = #tpu.dot_dimension_numbers<[1], [0], [0], [1], [0, 0, 1, 1], [], []>} : vector<64x128xbf16>, vector<128x128xbf16>, vector<64x128xf32> -> vector<64x128xf32>
    %257 = arith.addf %251, %256 : vector<64x128xf32>
    %258 = vector.extract_strided_slice %236 {offsets = [192, 0], sizes = [64, 128], strides = [1, 1]} : vector<256x128xf32> to vector<64x128xf32>
    %259 = arith.truncf %258 : vector<64x128xf32> to vector<64x128xbf16>
    %c19 = arith.constant 19 : index
    %c0_103 = arith.constant 0 : index
    %c0_104 = arith.constant 0 : index
    %260 = vector.load %arg2[%c19, %c0_103, %c0_104] : memref<20x128x128xbf16, #tpu.memory_space<vmem>>, vector<1x128x128xbf16>
    %261 = vector.shape_cast %260 : vector<1x128x128xbf16> to vector<128x128xbf16>
    %cst_105 = arith.constant dense<0.000000e+00> : vector<64x128xf32>
    %262 = tpu.matmul %259, %261, %cst_105 {dimension_numbers = #tpu.dot_dimension_numbers<[1], [0], [0], [1], [0, 0, 1, 1], [], []>} : vector<64x128xbf16>, vector<128x128xbf16>, vector<64x128xf32> -> vector<64x128xf32>
    %263 = arith.addf %257, %262 : vector<64x128xf32>
    %c3_106 = arith.constant 3 : index
    %c0_107 = arith.constant 0 : index
    %c0_108 = arith.constant 0 : index
    %264 = vector.load %arg4[%c3_106, %c0_107, %c0_108] : memref<5x8x128xf32, #tpu.memory_space<vmem>>, vector<1x8x128xf32>
    %265 = vector.shape_cast %264 : vector<1x8x128xf32> to vector<8x128xf32>
    %266 = vector.extract_strided_slice %265 {offsets = [0, 0], sizes = [1, 128], strides = [1, 1]} : vector<8x128xf32> to vector<1x128xf32>
    %267 = vector.extract_strided_slice %265 {offsets = [1, 0], sizes = [1, 128], strides = [1, 1]} : vector<8x128xf32> to vector<1x128xf32>
    %268 = vector.extract_strided_slice %265 {offsets = [2, 0], sizes = [1, 128], strides = [1, 1]} : vector<8x128xf32> to vector<1x128xf32>
    %269 = vector.broadcast %266 : vector<1x128xf32> to vector<64x128xf32>
    %270 = arith.addf %263, %269 : vector<64x128xf32>
    %271 = vector.broadcast %6 : vector<64x1xf32> to vector<64x128xf32>
    %272 = arith.mulf %270, %271 : vector<64x128xf32>
    %cst_109 = arith.constant dense<0.000000e+00> : vector<128xf32>
    %273 = vector.multi_reduction <add>, %272, %cst_109 [0] : vector<64x128xf32> to vector<128xf32>
    %274 = vector.shape_cast %273 : vector<128xf32> to vector<1x128xf32>
    %cst_110 = arith.constant 1.562500e-02 : f32
    %275 = vector.broadcast %cst_110 : f32 to vector<1x128xf32>
    %276 = arith.mulf %274, %275 : vector<1x128xf32>
    %277 = arith.mulf %272, %272 : vector<64x128xf32>
    %cst_111 = arith.constant dense<0.000000e+00> : vector<128xf32>
    %278 = vector.multi_reduction <add>, %277, %cst_111 [0] : vector<64x128xf32> to vector<128xf32>
    %279 = vector.shape_cast %278 : vector<128xf32> to vector<1x128xf32>
    %cst_112 = arith.constant 1.562500e-02 : f32
    %280 = vector.broadcast %cst_112 : f32 to vector<1x128xf32>
    %281 = arith.mulf %279, %280 : vector<1x128xf32>
    %282 = arith.mulf %276, %276 : vector<1x128xf32>
    %283 = arith.subf %281, %282 : vector<1x128xf32>
    %cst_113 = arith.constant 0.000000e+00 : f32
    %284 = vector.broadcast %cst_113 : f32 to vector<1x128xf32>
    %285 = arith.maximumf %283, %284 : vector<1x128xf32>
    %cst_114 = arith.constant 9.99999974E-6 : f32
    %286 = vector.broadcast %cst_114 : f32 to vector<1x128xf32>
    %287 = arith.addf %285, %286 : vector<1x128xf32>
    %288 = math.rsqrt %287 : vector<1x128xf32>
    %289 = arith.mulf %267, %288 : vector<1x128xf32>
    %290 = arith.mulf %276, %289 : vector<1x128xf32>
    %291 = arith.subf %268, %290 : vector<1x128xf32>
    %292 = vector.broadcast %289 : vector<1x128xf32> to vector<64x128xf32>
    %293 = arith.mulf %272, %292 : vector<64x128xf32>
    %294 = vector.broadcast %291 : vector<1x128xf32> to vector<64x128xf32>
    %295 = arith.addf %293, %294 : vector<64x128xf32>
    %cst_115 = arith.constant 5.000000e-01 : f32
    %296 = vector.broadcast %cst_115 : f32 to vector<64x128xf32>
    %297 = arith.mulf %296, %295 : vector<64x128xf32>
    %cst_116 = arith.constant 4.471500e-02 : f32
    %298 = vector.broadcast %cst_116 : f32 to vector<64x128xf32>
    %299 = arith.mulf %298, %295 : vector<64x128xf32>
    %300 = arith.mulf %299, %295 : vector<64x128xf32>
    %301 = arith.mulf %300, %295 : vector<64x128xf32>
    %302 = arith.addf %295, %301 : vector<64x128xf32>
    %cst_117 = arith.constant 0.797884583 : f32
    %303 = vector.broadcast %cst_117 : f32 to vector<64x128xf32>
    %304 = arith.mulf %303, %302 : vector<64x128xf32>
    %305 = math.tanh %304 : vector<64x128xf32>
    %cst_118 = arith.constant 1.000000e+00 : f32
    %306 = vector.broadcast %cst_118 : f32 to vector<64x128xf32>
    %307 = arith.addf %306, %305 : vector<64x128xf32>
    %308 = arith.mulf %297, %307 : vector<64x128xf32>
    %309 = vector.broadcast %6 : vector<64x1xf32> to vector<64x128xf32>
    %310 = arith.mulf %308, %309 : vector<64x128xf32>
    %c4_119 = arith.constant 4 : index
    %c0_120 = arith.constant 0 : index
    %c0_121 = arith.constant 0 : index
    %311 = vector.load %arg4[%c4_119, %c0_120, %c0_121] : memref<5x8x128xf32, #tpu.memory_space<vmem>>, vector<1x8x128xf32>
    %312 = vector.shape_cast %311 : vector<1x8x128xf32> to vector<8x128xf32>
    %313 = vector.extract_strided_slice %312 {offsets = [0, 0], sizes = [1, 128], strides = [1, 1]} : vector<8x128xf32> to vector<1x128xf32>
    %314 = vector.extract_strided_slice %312 {offsets = [1, 0], sizes = [1, 128], strides = [1, 1]} : vector<8x128xf32> to vector<1x128xf32>
    %315 = vector.extract_strided_slice %312 {offsets = [2, 0], sizes = [1, 128], strides = [1, 1]} : vector<8x128xf32> to vector<1x128xf32>
    %316 = arith.truncf %310 : vector<64x128xf32> to vector<64x128xbf16>
    %c0_122 = arith.constant 0 : index
    %c0_123 = arith.constant 0 : index
    %c0_124 = arith.constant 0 : index
    %317 = vector.load %arg3[%c0_122, %c0_123, %c0_124] : memref<3x128x128xbf16, #tpu.memory_space<vmem>>, vector<1x128x128xbf16>
    %318 = vector.shape_cast %317 : vector<1x128x128xbf16> to vector<128x128xbf16>
    %cst_125 = arith.constant dense<0.000000e+00> : vector<64x128xf32>
    %319 = tpu.matmul %316, %318, %cst_125 {dimension_numbers = #tpu.dot_dimension_numbers<[1], [0], [0], [1], [0, 0, 1, 1], [], []>} : vector<64x128xbf16>, vector<128x128xbf16>, vector<64x128xf32> -> vector<64x128xf32>
    %320 = vector.broadcast %313 : vector<1x128xf32> to vector<64x128xf32>
    %321 = arith.addf %319, %320 : vector<64x128xf32>
    %cst_126 = arith.constant 5.000000e-01 : f32
    %322 = vector.broadcast %cst_126 : f32 to vector<64x128xf32>
    %323 = arith.mulf %322, %321 : vector<64x128xf32>
    %cst_127 = arith.constant 4.471500e-02 : f32
    %324 = vector.broadcast %cst_127 : f32 to vector<64x128xf32>
    %325 = arith.mulf %324, %321 : vector<64x128xf32>
    %326 = arith.mulf %325, %321 : vector<64x128xf32>
    %327 = arith.mulf %326, %321 : vector<64x128xf32>
    %328 = arith.addf %321, %327 : vector<64x128xf32>
    %cst_128 = arith.constant 0.797884583 : f32
    %329 = vector.broadcast %cst_128 : f32 to vector<64x128xf32>
    %330 = arith.mulf %329, %328 : vector<64x128xf32>
    %331 = math.tanh %330 : vector<64x128xf32>
    %cst_129 = arith.constant 1.000000e+00 : f32
    %332 = vector.broadcast %cst_129 : f32 to vector<64x128xf32>
    %333 = arith.addf %332, %331 : vector<64x128xf32>
    %334 = arith.mulf %323, %333 : vector<64x128xf32>
    %335 = arith.truncf %334 : vector<64x128xf32> to vector<64x128xbf16>
    %c1_130 = arith.constant 1 : index
    %c0_131 = arith.constant 0 : index
    %c0_132 = arith.constant 0 : index
    %336 = vector.load %arg3[%c1_130, %c0_131, %c0_132] : memref<3x128x128xbf16, #tpu.memory_space<vmem>>, vector<1x128x128xbf16>
    %337 = vector.shape_cast %336 : vector<1x128x128xbf16> to vector<128x128xbf16>
    %cst_133 = arith.constant dense<0.000000e+00> : vector<64x128xf32>
    %338 = tpu.matmul %335, %337, %cst_133 {dimension_numbers = #tpu.dot_dimension_numbers<[1], [0], [0], [1], [0, 0, 1, 1], [], []>} : vector<64x128xbf16>, vector<128x128xbf16>, vector<64x128xf32> -> vector<64x128xf32>
    %339 = vector.broadcast %314 : vector<1x128xf32> to vector<64x128xf32>
    %340 = arith.addf %338, %339 : vector<64x128xf32>
    %c2_134 = arith.constant 2 : index
    %c0_135 = arith.constant 0 : index
    %c0_136 = arith.constant 0 : index
    %341 = vector.load %arg3[%c2_134, %c0_135, %c0_136] : memref<3x128x128xbf16, #tpu.memory_space<vmem>>, vector<1x128x128xbf16>
    %342 = vector.shape_cast %341 : vector<1x128x128xbf16> to vector<128x128xbf16>
    %cst_137 = arith.constant dense<0.000000e+00> : vector<64x128xf32>
    %343 = tpu.matmul %316, %342, %cst_137 {dimension_numbers = #tpu.dot_dimension_numbers<[1], [0], [0], [1], [0, 0, 1, 1], [], []>} : vector<64x128xbf16>, vector<128x128xbf16>, vector<64x128xf32> -> vector<64x128xf32>
    %344 = arith.addf %340, %343 : vector<64x128xf32>
    %345 = vector.broadcast %315 : vector<1x128xf32> to vector<64x128xf32>
    %346 = arith.addf %344, %345 : vector<64x128xf32>
    %347 = tpu.iota {dimensions = array<i32: 1>} : vector<64x128xi32>
    %cst_138 = arith.constant -3.000000e+01 : f32
    %cst_139 = arith.constant 2.000000e+01 : f32
    %348 = vector.broadcast %cst_138 : f32 to vector<64x128xf32>
    %349 = arith.maximumf %348, %346 : vector<64x128xf32>
    %350 = vector.broadcast %cst_139 : f32 to vector<64x128xf32>
    %351 = arith.minimumf %350, %349 : vector<64x128xf32>
    %352 = math.exp %351 : vector<64x128xf32>
    %c16_i32 = arith.constant 16 : i32
    %353 = vector.broadcast %c16_i32 : i32 to vector<64x128xi32>
    %354 = arith.cmpi sge, %347, %353 : vector<64x128xi32>
    %c32_i32 = arith.constant 32 : i32
    %355 = vector.broadcast %c32_i32 : i32 to vector<64x128xi32>
    %356 = arith.cmpi slt, %347, %355 : vector<64x128xi32>
    %357 = arith.andi %354, %356 : vector<64x128xi1>
    %358 = arith.select %357, %352, %346 : vector<64x128xi1>, vector<64x128xf32>
    %c0_140 = arith.constant 0 : index
    %c0_141 = arith.constant 0 : index
    %359 = vector.load %arg5[%c0_140, %c0_141] : memref<64x128xf32, #tpu.memory_space<vmem>>, vector<64x128xf32>
    tpu.vector_store %arg5[%c0_140, %c0_141], %358 {strides = array<i32>} : memref<64x128xf32, #tpu.memory_space<vmem>>, vector<64x128xf32>,
    return
  }
}

</mosaic_0001>

<bundles_post_ra>
// kernel: _encoder_forward.1
= control target key start
LH: loop header
LB: loop body
LE: loop exit
PB: predicated region body
PF: predicated region fallthrough
CT: control target
= control target key end

     0   :  { %10 = vsyncpa [#allocation3], 0  ;;  %s7947_s0 = inlined_call_operand.vmem [shape: f32[64,128], index: 0, kind: input, shape index: {}]   ;;  %s7948_s1 = inlined_call_operand.vmem [shape: bf16[256,64], index: 1, kind: input, shape index: {}]   ;;  %s7949_s2 = inlined_call_operand.hbm [shape: bf16[20,128,128], index: 2, kind: input, shape index: {}]   ;;  %s7950_s3 = inlined_call_operand.vmem [shape: bf16[3,128,128], index: 3, kind: input, shape index: {}]   ;;  %s7951_s4 = inlined_call_operand.vmem [shape: f32[5,8,128], index: 4, kind: input, shape index: {}]   ;;  %s7952_s5 = inlined_call_operand.hbm [shape: f32[64,128], index: 5, kind: output, shape index: {}]  }
   0x1   :  { %11 = vsyncpa [#allocation4], 0  ;;  %s6818_s18 = smov [#allocation2]   ;;  %s6770_s22 = scalar_lea.hbm %s7949_s2, 20480 }
   0x2   :  { %s21_s19 = sshll.u32 %s6818_s18, 4  ;;  %p6771_p0 = scmp.ne.s32.totalorder %s7949_s2, %s6770_s22  ;;  %s22_s19 = int_to_ptr.vmem [resolvable:$true] %s21_s19 }
   0x3   :  { %p6774_p1 = scmp.lt.u32.totalorder %s6770_s22, %s7949_s2 }
   0x5   :  { %p6776_p2 = pnand %p6774_p1, %p6771_p0 }
   0x7   :  { %6779 = shalt.err (!%p6776_p2)
}
   0x8   :  { %s6780_s27 = scalar_lea.vmem %s22_s19, 20480  ;;  %p6785_p4 = scmp.lt.s32.totalorder %s22_s19, %s22_s19 }
   0x9   :  { %p6781_p3 = scmp.ne.s32.totalorder %s22_s19, %s6780_s27  ;;  %p6786_p5 = scmp.lt.s32.totalorder %s6780_s27, %s6780_s27 }
   0xb   :  { %p6787_p6 = por %p6786_p5, %p6785_p4 }
   0xd   :  { %p6788_p7 = pnand %p6787_p6, %p6781_p3 }
   0xf   :  { %6791 = shalt.err (!%p6788_p7)
}
  0x10   :  { %s6819_s28 = smov 64   ;;  %s6820_s29 = smov 4  }
  0x11   :  { %27 = dma.hbm_to_vmem [thread:$0]  %s7949_s2, 20480, %s22_s19, [#allocation3], %s6819_s28, %s6819_s28, %s6820_s29  }
  0x12   :  { %6814 = dma.done.wait [#allocation3], 20480  }
  0x13   :  { %6815 = vsyncadd [#allocation3], 4294946816  ;;  %v68_v0 = vld [vmem:[%s7947_s0] sm:$0xff]  ;;  %v69_v1 = vld [vmem:[%s7947_s0 + $0x8] sm:$0xff]  ;;  %vm193_vm0 = vcmask 523264  }
  0x14   :  { %v70_v2 = vld [vmem:[%s7947_s0 + $0x10] sm:$0xff]  ;;  %v6875_v3 = vpack.c.bf16 %v69_v1, %v68_v0  ;;  %v71_v4 = vld [vmem:[%s7947_s0 + $0x18] sm:$0xff]  ;;  %v72_v6 = vld [vmem:[%s7947_s0 + $0x20] sm:$0xff] }
  0x15   :  { %v6880_v5 = vpack.c.bf16 %v71_v4, %v70_v2  ;;  %v73_v7 = vld [vmem:[%s7947_s0 + $0x28] sm:$0xff]  ;;  %v6892_v8 = vld [vmem:[%s7948_s1] sm:$0xff]   ;;  %v74_v10 = vld [vmem:[%s7947_s0 + $0x30] sm:$0xff] }
  0x16   :  { %5573 = vmatprep.subr.bf16.mxu0 %v6875_v3  ;;  %v6896_v9 = vpack.c.bf16 %v73_v7, %v72_v6  ;;  %5581 = vmatprep.mubr.msk.bf16.mxu0 %vm193_vm0, %v6892_v8  ;;  %v75_v11 = vld [vmem:[%s7947_s0 + $0x38] sm:$0xff]  ;;  %v6436_v13 = vld [vmem:[%s7948_s1 + $0x8] sm:$0xff]   ;;  %v6437_v14 = vld [vmem:[%s7948_s1 + $0x10] sm:$0xff]  }
  0x17   :  { %5574 = vmatpush3.bf16.msra.mxu0 %v6875_v3  ;;  %v6908_v12 = vpack.c.bf16 %v75_v11, %v74_v10  ;;  %v6451_v15 = vld [vmem:[#allocation2 + $0x40] sm:$0xff]   ;;  %v6452_v16 = vld [vmem:[#allocation2 + $0x48] sm:$0xff]   ;;  %v6438_v17 = vld [vmem:[%s7948_s1 + $0x18] sm:$0xff]  }
  0x18   :  { %5575 = vmatprep.subr.bf16.mxu0 %v6880_v5  ;;  %5613 = vmatprep.subr.bf16.mxu1 %v6451_v15  ;;  %v6453_v18 = vld [vmem:[#allocation2 + $0x50] sm:$0xff]   ;;  %v6439_v19 = vld [vmem:[%s7948_s1 + $0x20] sm:$0xff]   ;;  %v6454_v20 = vld [vmem:[#allocation2 + $0x58] sm:$0xff]  }
  0x19   :  { %5614 = vmatpush3.bf16.msra.mxu1 %v6451_v15  ;;  %v6440_v21 = vld [vmem:[%s7948_s1 + $0x28] sm:$0xff]   ;;  %v6455_v22 = vld [vmem:[#allocation2 + $0x60] sm:$0xff]   ;;  %v6441_v23 = vld [vmem:[%s7948_s1 + $0x30] sm:$0xff]  }
  0x1a   :  { %5615 = vmatprep.subr.bf16.mxu1 %v6452_v16  ;;  %v6456_v24 = vld [vmem:[#allocation2 + $0x68] sm:$0xff]   ;;  %v6442_v25 = vld [vmem:[%s7948_s1 + $0x38] sm:$0xff]   ;;  %v6457_v26 = vld [vmem:[#allocation2 + $0x70] sm:$0xff]  }
  0x1b   :  { %5576 = vmatpush3.bf16.msra.mxu0 %v6880_v5  ;;  %v6443_v27 = vld [vmem:[%s7948_s1 + $0x40] sm:$0xff]   ;;  %v6444_v28 = vld [vmem:[%s7948_s1 + $0x48] sm:$0xff]   ;;  %v6445_v29 = vld [vmem:[%s7948_s1 + $0x50] sm:$0xff]  }
  0x1c   :  { %5577 = vmatprep.subr.bf16.mxu0 %v6896_v9  ;;  %v6446_v30 = vld [vmem:[%s7948_s1 + $0x58] sm:$0xff]   ;;  %v6447_v31 = vld [vmem:[%s7948_s1 + $0x60] sm:$0xff]   ;;  %v6448_v32 = vld [vmem:[%s7948_s1 + $0x68] sm:$0xff]  }
  0x1d   :  { %5616 = vmatpush3.bf16.msra.mxu1 %v6452_v16  ;;  %v6449_v33 = vld [vmem:[%s7948_s1 + $0x70] sm:$0xff]   ;;  %v6450_v34 = vld [vmem:[%s7948_s1 + $0x78] sm:$0xff]   ;;  %v6459_v36 = vld [vmem:[#allocation2] sm:$0xff]  }
  0x1e   :  { %5617 = vmatprep.subr.bf16.mxu1 %v6453_v18  ;;  %v6458_v35 = vld [vmem:[#allocation2 + $0x78] sm:$0xff]   ;;  %v6460_v43 = vld [vmem:[#allocation2 + $0x8] sm:$0xff]   ;;  %v6461_v45 = vld [vmem:[#allocation2 + $0x10] sm:$0xff]  }
  0x1f   :  { %5578 = vmatpush3.bf16.msra.mxu0 %v6896_v9  ;;  %v6462_v51 = vld [vmem:[#allocation2 + $0x18] sm:$0xff]   ;;  %v6463_v53 = vld [vmem:[#allocation2 + $0x20] sm:$0xff]   ;;  %v6464_v59 = vld [vmem:[#allocation2 + $0x28] sm:$0xff]  }
  0x20   :  { %5579 = vmatprep.subr.bf16.mxu0 %v6908_v12  ;;  %v6465_v61 = vld [vmem:[#allocation2 + $0x30] sm:$0xff]   ;;  %v6467_v6 = vld [vmem:[#allocation2 + $0x80] sm:$0xff]  }
  0x21   :  { %5618 = vmatpush3.bf16.msra.mxu1 %v6453_v18  ;;  %v6469_v16 = vld [vmem:[#allocation2 + $0x90] sm:$0xff]  }
  0x22   :  { %5619 = vmatprep.subr.bf16.mxu1 %v6454_v20 }
  0x23   :  { %5580 = vmatpush3.bf16.msra.mxu0 %v6908_v12 }
  0x25   :  { %5620 = vmatpush3.bf16.msra.mxu1 %v6454_v20 }
  0x26   :  { %5582 = vmatmul.mubr.msk.bf16.vlgmr.msra.gmra.mrb[0].mxu0 %vm193_vm0, %v6436_v13  ;;  %5621 = vmatprep.subr.bf16.mxu1 %v6455_v22 }
  0x27   :  { %5585 = vmatprep.mubr.msk.bf16.mxu0 %vm193_vm0, %v6437_v14  ;;  %v6468_v14 = vld [vmem:[#allocation2 + $0x88] sm:$0xff]  }
  0x29   :  { %5622 = vmatpush3.bf16.msra.mxu1 %v6455_v22  ;;  %v6471_v22 = vld [vmem:[#allocation2 + $0xa0] sm:$0xff]  }
  0x2a   :  { %5623 = vmatprep.subr.bf16.mxu1 %v6456_v24 }
  0x2d   :  { %5624 = vmatpush3.bf16.msra.mxu1 %v6456_v24 }
  0x2e   :  { %5586 = vmatmul.mubr.msk.bf16.gmra.mrb[4].mxu0 %vm193_vm0, %v6438_v17  ;;  %5625 = vmatprep.subr.bf16.mxu1 %v6457_v26 }
  0x2f   :  { %5589 = vmatprep.mubr.msk.bf16.mxu0 %vm193_vm0, %v6439_v19 }
  0x31   :  { %5626 = vmatpush3.bf16.msra.mxu1 %v6457_v26 }
  0x32   :  { %5627 = vmatprep.subr.bf16.mxu1 %v6458_v35 }
  0x35   :  { %5628 = vmatpush3.bf16.msra.mxu1 %v6458_v35  ;;  %v6474_v35 = vld [vmem:[#allocation2 + $0xb8] sm:$0xff]  }
  0x36   :  { %5590 = vmatmul.mubr.msk.bf16.gmra.mrb[8].mxu0 %vm193_vm0, %v6440_v21  ;;  %5637 = vmatprep.subr.bf16.mxu1 %v6459_v36  ;;  %v6470_v21 = vld [vmem:[#allocation2 + $0x98] sm:$0xff]  }
  0x37   :  { %5593 = vmatprep.mubr.msk.bf16.mxu0 %vm193_vm0, %v6441_v23 }
  0x3e   :  { %5594 = vmatmul.mubr.msk.bf16.gmra.mrb[12].mxu0 %vm193_vm0, %v6442_v25 }
  0x3f   :  { %5597 = vmatprep.mubr.msk.bf16.mxu0 %vm193_vm0, %v6443_v27 }
  0x46   :  { %5598 = vmatmul.mubr.msk.bf16.gmra.mrb[16].mxu0 %vm193_vm0, %v6444_v28  ;;  %v6472_v28 = vld [vmem:[#allocation2 + $0xa8] sm:$0xff]  }
  0x47   :  { %5601 = vmatprep.mubr.msk.bf16.mxu0 %vm193_vm0, %v6445_v29  ;;  %v6473_v29 = vld [vmem:[#allocation2 + $0xb0] sm:$0xff]  }
  0x4e   :  { %5602 = vmatmul.mubr.msk.bf16.gmra.mrb[20].mxu0 %vm193_vm0, %v6446_v30 }
  0x4f   :  { %5605 = vmatprep.mubr.msk.bf16.mxu0 %vm193_vm0, %v6447_v31 }
  0x56   :  { %5606 = vmatmul.mubr.msk.bf16.gmra.mrb[24].mxu0 %vm193_vm0, %v6448_v32 }
  0x57   :  { %5609 = vmatprep.mubr.msk.bf16.mxu0 %vm193_vm0, %v6449_v33 }
  0x5e   :  { %5610 = vmatmul.mubr.msk.bf16.gmra.mrb[28].mxu0 %vm193_vm0, %v6450_v34 }
  0x5f   :  { %5741 = vmatprep.mubr.msk.bf16.mxu0 %vm193_vm0, %v6892_v8 }
  0xf9   :  { %v5583_v37 = vpop.f32.mrb[0].mxu0 }
  0xfa   :  { %v276_v38 = vpop.f32.mrb[1].mxu0 }
  0xfb   :  { %v5584_v39 = vpop.f32.mrb[2].mxu0 }
  0xfc   :  { %v420_v40 = vpack.c.bf16 %v5584_v39, %v5583_v37  ;;  %v279_v41 = vpop.f32.mrb[3].mxu0  ;;  %v6476_v37 = vld [vmem:[#allocation2 + $0xc8] sm:$0xff]   ;;  %v6478_v39 = vld [vmem:[#allocation2 + $0xd8] sm:$0xff]  }
  0xfd   :  { %v419_v42 = vpack.c.bf16 %v279_v41, %v276_v38  ;;  %v6477_v38 = vld [vmem:[#allocation2 + $0xd0] sm:$0xff]   ;;  %v6480_v41 = vld [vmem:[#allocation2 + $0xe8] sm:$0xff]  }
  0xff   :  { %5629 = vmatprep.mubr.bf16.mxu1 %v419_v42  ;;  %v6481_v42 = vld [vmem:[#allocation2 + $0xf0] sm:$0xff]  }
 0x100   :  { %5630 = vmatmul.mubr.bf16.vlgmr.msra.gmra.mrb[0].mxu1 %v420_v40  ;;  %v6479_v40 = vld [vmem:[#allocation2 + $0xe0] sm:$0xff]  }
 0x101   :  { %5638 = vmatpush3.bf16.msra.mxu1 %v6459_v36  ;;  %v5587_v44 = vpop.f32.mrb[4].mxu0  ;;  %v6475_v36 = vld [vmem:[#allocation2 + $0xc0] sm:$0xff]  }
 0x102   :  { %5639 = vmatprep.subr.bf16.mxu1 %v6460_v43  ;;  %v292_v46 = vpop.f32.mrb[5].mxu0 }
 0x103   :  { %v5588_v47 = vpop.f32.mrb[6].mxu0 }
 0x104   :  { %v422_v48 = vpack.c.bf16 %v5588_v47, %v5587_v44  ;;  %v295_v49 = vpop.f32.mrb[7].mxu0  ;;  %v6483_v44 = vld [vmem:[#allocation2 + $0x100] sm:$0xff]   ;;  %v6486_v47 = vld [vmem:[#allocation2 + $0x118] sm:$0xff]  }
 0x105   :  { %5640 = vmatpush3.bf16.msra.mxu1 %v6460_v43  ;;  %v421_v50 = vpack.c.bf16 %v295_v49, %v292_v46  ;;  %v6482_v43 = vld [vmem:[#allocation2 + $0xf8] sm:$0xff]   ;;  %v6485_v46 = vld [vmem:[#allocation2 + $0x110] sm:$0xff]   ;;  %v6488_v49 = vld [vmem:[#allocation2 + $0x128] sm:$0xff]  }
 0x106   :  { %5641 = vmatprep.subr.bf16.mxu1 %v6461_v45 }
 0x107   :  { %5633 = vmatprep.mubr.bf16.mxu1 %v421_v50  ;;  %v6489_v50 = vld [vmem:[#allocation2 + $0x130] sm:$0xff]  }
 0x108   :  { %5634 = vmatmul.mubr.bf16.gmra.mrb[4].mxu1 %v422_v48  ;;  %v6487_v48 = vld [vmem:[#allocation2 + $0x120] sm:$0xff]  }
 0x109   :  { %5642 = vmatpush3.bf16.msra.mxu1 %v6461_v45  ;;  %5653 = vmatprep.mubr.bf16.mxu1 %v6875_v3  ;;  %v6976_v52 = vpop.f32.mrb[8].mxu0  ;;  %v6466_v3 = vld [vmem:[#allocation2 + $0x38] sm:$0xff]   ;;  %v6484_v45 = vld [vmem:[#allocation2 + $0x108] sm:$0xff]  }
 0x10a   :  { %5643 = vmatprep.subr.bf16.mxu1 %v6462_v51  ;;  %v308_v54 = vpop.f32.mrb[9].mxu0 }
 0x10b   :  { %v6978_v55 = vpop.f32.mrb[10].mxu0 }
 0x10c   :  { %v667_v56 = vpack.c.bf16 %v6978_v55, %v6976_v52  ;;  %v311_v57 = vpop.f32.mrb[11].mxu0  ;;  %v7063_v52 = vld [vmem:[%s7948_s1] sm:$0xff]  }
 0x10d   :  { %5644 = vmatpush3.bf16.msra.mxu1 %v6462_v51  ;;  %v666_v58 = vpack.c.bf16 %v311_v57, %v308_v54  ;;  %v6490_v51 = vld [vmem:[#allocation2 + $0x138] sm:$0xff]  }
 0x10e   :  { %5645 = vmatprep.subr.bf16.mxu1 %v6463_v53 }
 0x111   :  { %5646 = vmatpush3.bf16.msra.mxu1 %v6463_v53  ;;  %v6982_v60 = vpop.f32.mrb[12].mxu0  ;;  %v1093_v53 = vlaneseq }
 0x112   :  { %5647 = vmatprep.subr.bf16.mxu1 %v6464_v59  ;;  %v6984_v62 = vpop.f32.mrb[13].mxu0 }
 0x113   :  { %v6986_v63 = vpop.f32.mrb[14].mxu0  ;;  %v7068_v54 = vshrl.u32 %v1093_v53, 7 }
 0x114   :  { %v669_v0 = vpack.c.bf16 %v6986_v63, %v6982_v60  ;;  %v6990_v1 = vpop.f32.mrb[15].mxu0 }
 0x115   :  { %5648 = vmatpush3.bf16.msra.mxu1 %v6464_v59  ;;  %v668_v2 = vpack.c.bf16 %v6990_v1, %v6984_v62  ;;  %v7071_v55 = vsub.s32 0, %v7068_v54 }
 0x116   :  { %5649 = vmatprep.subr.bf16.mxu1 %v6465_v61 }
 0x119   :  { %5650 = vmatpush3.bf16.msra.mxu1 %v6465_v61  ;;  %v6994_v4 = vpop.f32.mrb[16].mxu0 }
 0x11a   :  { %5651 = vmatprep.subr.bf16.mxu1 %v6466_v3  ;;  %v6996_v7 = vpop.f32.mrb[17].mxu0 }
 0x11b   :  { %v6998_v8 = vpop.f32.mrb[18].mxu0 }
 0x11c   :  { %v809_v10 = vpack.c.bf16 %v6998_v8, %v6994_v4  ;;  %v343_v11 = vpop.f32.mrb[19].mxu0 }
 0x11d   :  { %5652 = vmatpush3.bf16.msra.mxu1 %v6466_v3  ;;  %v808_v13 = vpack.c.bf16 %v343_v11, %v6996_v7 }
 0x11e   :  { %5661 = vmatprep.subr.bf16.mxu1 %v6467_v6 }
 0x120   :  { %5654 = vmatmul.mubr.bf16.vlgmr.msra.gmra.mrb[0].mxu1 %v6880_v5 }
 0x121   :  { %5662 = vmatpush3.bf16.msra.mxu1 %v6467_v6  ;;  %5657 = vmatprep.mubr.bf16.mxu1 %v6896_v9  ;;  %v7005_v15 = vpop.f32.mrb[20].mxu0 }
 0x122   :  { %5663 = vmatprep.subr.bf16.mxu1 %v6468_v14  ;;  %v7007_v17 = vpop.f32.mrb[21].mxu0 }
 0x123   :  { %v7009_v18 = vpop.f32.mrb[22].mxu0 }
 0x124   :  { %v811_v19 = vpack.c.bf16 %v7009_v18, %v7005_v15  ;;  %v7013_v20 = vpop.f32.mrb[23].mxu0 }
 0x125   :  { %5664 = vmatpush3.bf16.msra.mxu1 %v6468_v14  ;;  %v810_v5 = vpack.c.bf16 %v7013_v20, %v7007_v17 }
 0x126   :  { %5665 = vmatprep.subr.bf16.mxu1 %v6469_v16 }
 0x128   :  { %5658 = vmatmul.mubr.bf16.gmra.mrb[4].mxu1 %v6908_v12 }
 0x129   :  { %5666 = vmatpush3.bf16.msra.mxu1 %v6469_v16  ;;  %5677 = vmatprep.mubr.bf16.mxu1 %v666_v58  ;;  %v7018_v9 = vpop.f32.mrb[24].mxu0 }
 0x12a   :  { %5667 = vmatprep.subr.bf16.mxu1 %v6470_v21  ;;  %v7020_v23 = vpop.f32.mrb[25].mxu0 }
 0x12b   :  { %v7022_v24 = vpop.f32.mrb[26].mxu0 }
 0x12c   :  { %v951_v25 = vpack.c.bf16 %v7022_v24, %v7018_v9  ;;  %v375_v26 = vpop.f32.mrb[27].mxu0 }
 0x12d   :  { %5668 = vmatpush3.bf16.msra.mxu1 %v6470_v21  ;;  %v950_v27 = vpack.c.bf16 %v375_v26, %v7020_v23 }
 0x12e   :  { %5669 = vmatprep.subr.bf16.mxu1 %v6471_v22 }
 0x131   :  { %5670 = vmatpush3.bf16.msra.mxu1 %v6471_v22  ;;  %v7027_v12 = vpop.f32.mrb[28].mxu0 }
 0x132   :  { %5671 = vmatprep.subr.bf16.mxu1 %v6472_v28  ;;  %v7029_v30 = vpop.f32.mrb[29].mxu0 }
 0x133   :  { %v7031_v31 = vpop.f32.mrb[30].mxu0 }
 0x134   :  { %v953_v32 = vpack.c.bf16 %v7031_v31, %v7027_v12  ;;  %v7035_v33 = vpop.f32.mrb[31].mxu0 }
 0x135   :  { %5672 = vmatpush3.bf16.msra.mxu1 %v6472_v28  ;;  %v952_v34 = vpack.c.bf16 %v7035_v33, %v7029_v30 }
 0x136   :  { %5673 = vmatprep.subr.bf16.mxu1 %v6473_v29 }
 0x139   :  { %5674 = vmatpush3.bf16.msra.mxu1 %v6473_v29 }
 0x13a   :  { %5675 = vmatprep.subr.bf16.mxu1 %v6474_v35 }
 0x13d   :  { %5676 = vmatpush3.bf16.msra.mxu1 %v6474_v35 }
 0x13e   :  { %5685 = vmatprep.subr.bf16.mxu1 %v6475_v36 }
 0x140   :  { %5678 = vmatmul.mubr.bf16.vlgmr.msra.gmra.mrb[0].mxu1 %v667_v56  ;;  %v7076_v56 = vld [vmem:[%s7951_s4] sm:$0xff] }
 0x141   :  { %5686 = vmatpush3.bf16.msra.mxu1 %v6475_v36  ;;  %5681 = vmatprep.mubr.bf16.mxu1 %v668_v2  ;;  %v1096_v57 = vrot.slane %v7076_v56, %v7071_v55 }
 0x142   :  { %5687 = vmatprep.subr.bf16.mxu1 %v6476_v37 }
 0x145   :  { %5688 = vmatpush3.bf16.msra.mxu1 %v6476_v37 }
 0x146   :  { %5689 = vmatprep.subr.bf16.mxu1 %v6477_v38 }
 0x148   :  { %5682 = vmatmul.mubr.bf16.gmra.mrb[4].mxu1 %v669_v0 }
 0x149   :  { %5690 = vmatpush3.bf16.msra.mxu1 %v6477_v38  ;;  %5701 = vmatprep.mubr.bf16.mxu1 %v808_v13 }
 0x14a   :  { %5691 = vmatprep.subr.bf16.mxu1 %v6478_v39 }
 0x14d   :  { %5692 = vmatpush3.bf16.msra.mxu1 %v6478_v39 }
 0x14e   :  { %5693 = vmatprep.subr.bf16.mxu1 %v6479_v40 }
 0x151   :  { %5694 = vmatpush3.bf16.msra.mxu1 %v6479_v40 }
 0x152   :  { %5695 = vmatprep.subr.bf16.mxu1 %v6480_v41 }
 0x155   :  { %5696 = vmatpush3.bf16.msra.mxu1 %v6480_v41 }
 0x156   :  { %5697 = vmatprep.subr.bf16.mxu1 %v6481_v42 }
 0x159   :  { %5698 = vmatpush3.bf16.msra.mxu1 %v6481_v42 }
 0x15a   :  { %5699 = vmatprep.subr.bf16.mxu1 %v6482_v43 }
 0x15d   :  { %5700 = vmatpush3.bf16.msra.mxu1 %v6482_v43 }
 0x15e   :  { %5709 = vmatprep.subr.bf16.mxu1 %v6483_v44 }
 0x160   :  { %5702 = vmatmul.mubr.bf16.vlgmr.msra.gmra.mrb[0].mxu1 %v809_v10 }
 0x161   :  { %5710 = vmatpush3.bf16.msra.mxu1 %v6483_v44  ;;  %5705 = vmatprep.mubr.bf16.mxu1 %v810_v5 }
 0x162   :  { %5711 = vmatprep.subr.bf16.mxu1 %v6484_v45 }
 0x165   :  { %5712 = vmatpush3.bf16.msra.mxu1 %v6484_v45 }
 0x166   :  { %5713 = vmatprep.subr.bf16.mxu1 %v6485_v46 }
 0x168   :  { %5706 = vmatmul.mubr.bf16.gmra.mrb[4].mxu1 %v811_v19 }
 0x169   :  { %5714 = vmatpush3.bf16.msra.mxu1 %v6485_v46  ;;  %5725 = vmatprep.mubr.bf16.mxu1 %v950_v27 }
 0x16a   :  { %5715 = vmatprep.subr.bf16.mxu1 %v6486_v47 }
 0x16d   :  { %5716 = vmatpush3.bf16.msra.mxu1 %v6486_v47 }
 0x16e   :  { %5717 = vmatprep.subr.bf16.mxu1 %v6487_v48 }
 0x171   :  { %5718 = vmatpush3.bf16.msra.mxu1 %v6487_v48 }
 0x172   :  { %5719 = vmatprep.subr.bf16.mxu1 %v6488_v49 }
 0x175   :  { %5720 = vmatpush3.bf16.msra.mxu1 %v6488_v49 }
 0x176   :  { %5721 = vmatprep.subr.bf16.mxu1 %v6489_v50 }
 0x179   :  { %5722 = vmatpush3.bf16.msra.mxu1 %v6489_v50  ;;  %v7086_v50 = vsub.s32 1, %v7068_v54 }
 0x17a   :  { %5723 = vmatprep.subr.bf16.mxu1 %v6490_v51 }
 0x17d   :  { %5724 = vmatpush3.bf16.msra.mxu1 %v6490_v51 }
 0x180   :  { %5726 = vmatmul.mubr.bf16.vlgmr.msra.gmra.mrb[0].mxu1 %v951_v25 }
 0x181   :  { %5729 = vmatprep.mubr.bf16.mxu1 %v952_v34 }
 0x188   :  { %5730 = vmatmul.mubr.bf16.gmra.mrb[4].mxu1 %v953_v32 }
 0x189   :  { %5901 = vmatprep.mubr.msk.bf16.mxu1 %vm193_vm0, %v7063_v52 }
 0x253   :  { %v5727_v58 = vpop.f32.mrb[0].mxu1 }
 0x254   :  { %v1053_v59 = vpop.f32.mrb[1].mxu1  ;;  %v1099_v63 = vadd.f32 %v5727_v58, %v1096_v57 }
 0x255   :  { %v7080_v60 = vadd.f32 %v1096_v57, %v1053_v59  ;;  %v5728_v61 = vpop.f32.mrb[2].mxu1 }
 0x256   :  { %v1056_v62 = vpop.f32.mrb[3].mxu1  ;;  %v1100_v2 = vadd.f32 %v5728_v61, %v1096_v57  ;;  %v1129_v6 = vmul.f32 %v1099_v63, %v1099_v63  ;;  %v7091_v61 = vsub.s32 2, %v7068_v54 }
 0x257   :  { %v1098_v0 = vadd.f32 %v1096_v57, %v1056_v62  ;;  %v1127_v1 = vmul.f32 %v7080_v60, %v7080_v60 }
 0x258   :  { %v1130_v13 = vmul.f32 %v1100_v2, %v1100_v2 }
 0x259   :  { %v1113_v3 = vadd.f32 %v1098_v0, %v7080_v60  ;;  %v1128_v4 = vmul.f32 %v1098_v0, %v1098_v0 }
 0x25b   :  { %v1114_v7 = vadd.f32 %v1113_v3, %v1099_v63  ;;  %v1135_v8 = vadd.f32 %v1128_v4, %v1127_v1  ;;  %v5731_v10 = vpop.f32.mrb[4].mxu1 }
 0x25c   :  { %v1069_v11 = vpop.f32.mrb[5].mxu1  ;;  %v1103_v18 = vadd.f32 %v5731_v10, %v1096_v57 }
 0x25d   :  { %v1136_v14 = vadd.f32 %v1135_v8, %v1129_v6  ;;  %v1101_v15 = vadd.f32 %v1096_v57, %v1069_v11  ;;  %v1115_v16 = vadd.f32 %v1114_v7, %v1100_v2  ;;  %v5732_v17 = vpop.f32.mrb[6].mxu1 }
 0x25e   :  { %v1072_v19 = vpop.f32.mrb[7].mxu1  ;;  %v1104_v23 = vadd.f32 %v5732_v17, %v1096_v57  ;;  %v1133_v26 = vmul.f32 %v1103_v18, %v1103_v18 }
 0x25f   :  { %v1116_v20 = vadd.f32 %v1115_v16, %v1101_v15  ;;  %v1131_v5 = vmul.f32 %v1101_v15, %v1101_v15  ;;  %v1137_v21 = vadd.f32 %v1136_v14, %v1130_v13  ;;  %v1102_v9 = vadd.f32 %v1096_v57, %v1072_v19 }
 0x260   :  { %v1134_v12 = vmul.f32 %v1104_v23, %v1104_v23 }
 0x261   :  { %v1138_v22 = vadd.f32 %v1137_v21, %v1131_v5  ;;  %v1117_v24 = vadd.f32 %v1116_v20, %v1102_v9  ;;  %v1132_v25 = vmul.f32 %v1102_v9, %v1102_v9 }
 0x263   :  { %v1118_v27 = vadd.f32 %v1117_v24, %v1103_v18  ;;  %v1139_v28 = vadd.f32 %v1138_v22, %v1132_v25 }
 0x265   :  { %v1119_v29 = vadd.f32 %v1118_v27, %v1104_v23  ;;  %v1140_v30 = vadd.f32 %v1139_v28, %v1133_v26 }
 0x267   :  { %v1120_v31 = vrot.slane %v1119_v29, 4  ;;  %v1141_v32 = vadd.f32 %v1140_v30, %v1134_v12 }
 0x269   :  { %v1121_v33 = vadd.f32 %v1120_v31, %v1119_v29  ;;  %v1142_v34 = vrot.slane %v1141_v32, 4 }
 0x26b   :  { %v1122_v35 = vrot.slane %v1121_v33, 2  ;;  %v1143_v36 = vadd.f32 %v1142_v34, %v1141_v32 }
 0x26d   :  { %v1123_v37 = vadd.f32 %v1122_v35, %v1121_v33  ;;  %v1144_v38 = vrot.slane %v1143_v36, 2 }
 0x26f   :  { %v1124_v39 = vrot.slane %v1123_v37, 1  ;;  %v1145_v40 = vadd.f32 %v1144_v38, %v1143_v36 }
 0x271   :  { %v1125_v41 = vadd.f32 %v1124_v39, %v1123_v37  ;;  %v1146_v42 = vrot.slane %v1145_v40, 1 }
 0x273   :  { %v1126_v43 = vmul.f32 0.015625, %v1125_v41  ;;  %v1147_v44 = vadd.f32 %v1146_v42, %v1145_v40 }
 0x275   :  { %v1148_v45 = vmul.f32 0.015625, %v1147_v44  ;;  %v1149_v46 = vmul.f32 %v1126_v43, %v1126_v43 }
 0x277   :  { %v1150_v47 = vsub.f32 %v1148_v45, %v1149_v46 }
 0x279   :  { %v1151_v48 = vmax.f32 %v1150_v47, 0.0 }
 0x27b   :  { %v1152_v49 = vadd.f32 1e-05, %v1151_v48 }
 0x27d   :  { %6635 = vrsqrt.f32 %v1152_v49 }
 0x287   :  { %v6636_v51 = vpop.eup %6635 }
 0x288   :  { %v1154_v57 = vmul.f32 %v6636_v51, %v7076_v56 }
 0x28a   :  { %v1155_v58 = vmul.f32 %v1154_v57, %v1126_v43  ;;  %v1163_v59 = vrot.slane %v1154_v57, %v7086_v50 }
 0x28c   :  { %v1157_v62 = vrot.slane %v1155_v58, 7  ;;  %v1169_v1 = vmul.f32 %v1163_v59, %v1102_v9  ;;  %v1164_v3 = vmul.f32 %v1163_v59, %v7080_v60  ;;  %v1165_v4 = vmul.f32 %v1163_v59, %v1098_v0 }
 0x28d   :  { %v1166_v6 = vmul.f32 %v1163_v59, %v1099_v63  ;;  %v1167_v7 = vmul.f32 %v1163_v59, %v1100_v2  ;;  %v1168_v8 = vmul.f32 %v1163_v59, %v1101_v15  ;;  %v1170_v10 = vmul.f32 %v1163_v59, %v1103_v18 }
 0x28e   :  { %v1159_v11 = vsub.f32 %v7076_v56, %v1157_v62  ;;  %v1171_v13 = vmul.f32 %v1163_v59, %v1104_v23 }
 0x290   :  { %v1175_v14 = vrot.slane %v1159_v11, %v7091_v61 }
 0x292   :  { %v7096_v16 = vadd.f32 %v1175_v14, %v1169_v1  ;;  %v1176_v17 = vadd.f32 %v1175_v14, %v1164_v3  ;;  %v1177_v19 = vadd.f32 %v1175_v14, %v1165_v4  ;;  %v1178_v54 = vadd.f32 %v1175_v14, %v1166_v6 }
 0x293   :  { %v7098_v20 = vadd.f32 %v1175_v14, %v1167_v7  ;;  %v7100_v5 = vadd.f32 %v1175_v14, %v1168_v8  ;;  %v7102_v60 = vadd.f32 %v1175_v14, %v1170_v10  ;;  %v7104_v63 = vadd.f32 %v1175_v14, %v1171_v13 }
 0x294   :  { %v1192_v0 = vmul.f32 0.044715, %v1176_v17  ;;  %v1193_v2 = vmul.f32 0.044715, %v1177_v19  ;;  %v1194_v15 = vmul.f32 0.044715, %v1178_v54 }
 0x295   :  { %v1195_v56 = vmul.f32 0.044715, %v7098_v20  ;;  %v1196_v23 = vmul.f32 0.044715, %v7100_v5  ;;  %v1197_v24 = vmul.f32 0.044715, %v7096_v16 }
 0x296   :  { %v1200_v18 = vmul.f32 %v1192_v0, %v1176_v17  ;;  %v1201_v21 = vmul.f32 %v1193_v2, %v1177_v19  ;;  %v1202_v9 = vmul.f32 %v1194_v15, %v1178_v54  ;;  %v1198_v32 = vmul.f32 0.044715, %v7102_v60 }
 0x297   :  { %v1203_v22 = vmul.f32 %v1195_v56, %v7098_v20  ;;  %v1204_v12 = vmul.f32 %v1196_v23, %v7100_v5  ;;  %v1205_v29 = vmul.f32 %v1197_v24, %v7096_v16  ;;  %v1199_v33 = vmul.f32 0.044715, %v7104_v63 }
 0x298   :  { %v1208_v25 = vmul.f32 %v1200_v18, %v1176_v17  ;;  %v1209_v26 = vmul.f32 %v1201_v21, %v1177_v19  ;;  %v1210_v27 = vmul.f32 %v1202_v9, %v1178_v54  ;;  %v1206_v40 = vmul.f32 %v1198_v32, %v7102_v60 }
 0x299   :  { %v1211_v28 = vmul.f32 %v1203_v22, %v7098_v20  ;;  %v1212_v36 = vmul.f32 %v1204_v12, %v7100_v5  ;;  %v1213_v37 = vmul.f32 %v1205_v29, %v7096_v16  ;;  %v1207_v41 = vmul.f32 %v1199_v33, %v7104_v63  ;;  %v7150_v33 = vld [vmem:[%s7948_s1 + $0x8] sm:$0xff]  }
 0x29a   :  { %v1216_v30 = vadd.f32 %v1208_v25, %v1176_v17  ;;  %v1217_v31 = vadd.f32 %v1209_v26, %v1177_v19  ;;  %v1218_v34 = vadd.f32 %v1210_v27, %v1178_v54  ;;  %v1214_v46 = vmul.f32 %v1206_v40, %v7102_v60  ;;  %v6496_v40 = vld [vmem:[#allocation2 + $0x1a8] sm:$0xff]  }
 0x29b   :  { %v1219_v35 = vadd.f32 %v1211_v28, %v7098_v20  ;;  %v1220_v44 = vadd.f32 %v1212_v36, %v7100_v5  ;;  %v1221_v45 = vadd.f32 %v1213_v37, %v7096_v16  ;;  %v1215_v47 = vmul.f32 %v1207_v41, %v7104_v63  ;;  %v6494_v36 = vld [vmem:[#allocation2 + $0x198] sm:$0xff]   ;;  %v7178_v41 = vld [vmem:[%s7948_s1 + $0x28] sm:$0xff]  }
 0x29c   :  { %v1224_v38 = vmul.f32 0.7978846, %v1216_v30  ;;  %v1225_v39 = vmul.f32 0.7978846, %v1217_v31  ;;  %v1226_v42 = vmul.f32 0.7978846, %v1218_v34  ;;  %v1222_v51 = vadd.f32 %v1214_v46, %v7102_v60 }
 0x29d   :  { %v1227_v43 = vmul.f32 0.7978846, %v1219_v35  ;;  %v1228_v48 = vmul.f32 0.7978846, %v1220_v44  ;;  %v1229_v49 = vmul.f32 0.7978846, %v1221_v45  ;;  %v1223_v57 = vadd.f32 %v1215_v47, %v7104_v63 }
 0x29e   :  { %6637 = vtanh.f32 %v1224_v38  ;;  %v1230_v58 = vmul.f32 0.7978846, %v1222_v51  ;;  %v1184_v3 = vmul.f32 0.5, %v1176_v17  ;;  %v1185_v7 = vmul.f32 0.5, %v1177_v19  ;;  %v7157_v34 = vld [vmem:[%s7948_s1 + $0x10] sm:$0xff]   ;;  %v7164_v37 = vld [vmem:[%s7948_s1 + $0x18] sm:$0xff]  }
 0x29f   :  { %6639 = vtanh.f32 %v1225_v39  ;;  %v1231_v59 = vmul.f32 0.7978846, %v1223_v57  ;;  %v1186_v13 = vmul.f32 0.5, %v1178_v54  ;;  %v1187_v15 = vmul.f32 0.5, %v7098_v20  ;;  %v6493_v35 = vld [vmem:[#allocation2 + $0x190] sm:$0xff]   ;;  %v7171_v38 = vld [vmem:[%s7948_s1 + $0x20] sm:$0xff]  }
 0x2a0   :  { %6641 = vtanh.f32 %v1226_v42  ;;  %v1188_v9 = vmul.f32 0.5, %v7100_v5  ;;  %v1189_v19 = vmul.f32 0.5, %v7096_v16  ;;  %v1190_v27 = vmul.f32 0.5, %v7102_v60  ;;  %v6491_v60 = vld [vmem:[#allocation2 + $0x180] sm:$0xff]   ;;  %v7185_v42 = vld [vmem:[%s7948_s1 + $0x30] sm:$0xff]   ;;  %v7192_v44 = vld [vmem:[%s7948_s1 + $0x38] sm:$0xff]  }
 0x2a1   :  { %6643 = vtanh.f32 %v1227_v43  ;;  %v1191_v5 = vmul.f32 0.5, %v7104_v63  ;;  %v6492_v63 = vld [vmem:[#allocation2 + $0x188] sm:$0xff]   ;;  %v6495_v39 = vld [vmem:[#allocation2 + $0x1a0] sm:$0xff]   ;;  %v6497_v43 = vld [vmem:[#allocation2 + $0x1b0] sm:$0xff]  }
 0x2a2   :  { %6645 = vtanh.f32 %v1228_v48  ;;  %v7199_v45 = vld [vmem:[%s7948_s1 + $0x40] sm:$0xff]   ;;  %v7206_v46 = vld [vmem:[%s7948_s1 + $0x48] sm:$0xff]   ;;  %v7213_v47 = vld [vmem:[%s7948_s1 + $0x50] sm:$0xff]  }
 0x2a3   :  { %6647 = vtanh.f32 %v1229_v49  ;;  %v7220_v48 = vld [vmem:[%s7948_s1 + $0x58] sm:$0xff]   ;;  %v7227_v49 = vld [vmem:[%s7948_s1 + $0x60] sm:$0xff]   ;;  %v7234_v51 = vld [vmem:[%s7948_s1 + $0x68] sm:$0xff]  }
 0x2a4   :  { %6649 = vtanh.f32 %v1230_v58  ;;  %v7241_v57 = vld [vmem:[%s7948_s1 + $0x70] sm:$0xff]   ;;  %v7248_v58 = vld [vmem:[%s7948_s1 + $0x78] sm:$0xff]  }
 0x2a5   :  { %6651 = vtanh.f32 %v1231_v59  ;;  %v6498_v59 = vld [vmem:[#allocation2 + $0x1b8] sm:$0xff]  }
 0x2a8   :  { %v6638_v62 = vpop.eup %6637 }
 0x2a9   :  { %v6640_v1 = vpop.eup %6639  ;;  %v1240_v4 = vadd.f32 1.0, %v6638_v62  ;;  %v6499_v62 = vld [vmem:[#allocation2 + $0x140] sm:$0xff]  }
 0x2aa   :  { %v6642_v6 = vpop.eup %6641  ;;  %v1241_v8 = vadd.f32 1.0, %v6640_v1 }
 0x2ab   :  { %v6644_v10 = vpop.eup %6643  ;;  %v1248_v11 = vmul.f32 %v1240_v4, %v1184_v3  ;;  %v1242_v14 = vadd.f32 1.0, %v6642_v6 }
 0x2ac   :  { %v6646_v0 = vpop.eup %6645  ;;  %v1249_v2 = vmul.f32 %v1241_v8, %v1185_v7  ;;  %v1243_v56 = vadd.f32 1.0, %v6644_v10  ;;  %v6500_v10 = vld [vmem:[#allocation2 + $0x148] sm:$0xff]  }
 0x2ad   :  { %v6648_v18 = vpop.eup %6647  ;;  %v1250_v21 = vmul.f32 %v1242_v14, %v1186_v13  ;;  %v1244_v22 = vadd.f32 1.0, %v6646_v0  ;;  %v6501_v14 = vld [vmem:[#allocation2 + $0x150] sm:$0xff]  }
 0x2ae   :  { %v6650_v23 = vpop.eup %6649  ;;  %v7128_v17 = vpack.c.bf16 %v1249_v2, %v1248_v11  ;;  %v1251_v24 = vmul.f32 %v1243_v56, %v1187_v15  ;;  %v1245_v25 = vadd.f32 1.0, %v6648_v18  ;;  %v6502_v18 = vld [vmem:[#allocation2 + $0x158] sm:$0xff]  }
 0x2af   :  { %v6652_v26 = vpop.eup %6651  ;;  %v1252_v54 = vmul.f32 %v1244_v22, %v1188_v9  ;;  %v1246_v28 = vadd.f32 1.0, %v6650_v23  ;;  %v6503_v9 = vld [vmem:[#allocation2 + $0x160] sm:$0xff]  }
 0x2b0   :  { %5733 = vmatprep.subr.bf16.mxu0 %v7128_v17  ;;  %v7133_v20 = vpack.c.bf16 %v1251_v24, %v1250_v21  ;;  %v1253_v12 = vmul.f32 %v1245_v25, %v1189_v19  ;;  %v1247_v29 = vadd.f32 1.0, %v6652_v26  ;;  %v6504_v26 = vld [vmem:[#allocation2 + $0x168] sm:$0xff]  }
 0x2b1   :  { %5734 = vmatpush3.bf16.msra.mxu0 %v7128_v17  ;;  %v1254_v30 = vmul.f32 %v1246_v28, %v1190_v27 }
 0x2b2   :  { %5735 = vmatprep.subr.bf16.mxu0 %v7133_v20  ;;  %v7138_v16 = vpack.c.bf16 %v1253_v12, %v1252_v54  ;;  %v1255_v31 = vmul.f32 %v1247_v29, %v1191_v5 }
 0x2b4   :  { %v7140_v32 = vpack.c.bf16 %v1255_v31, %v1254_v30  ;;  %v6506_v30 = vld [vmem:[#allocation2 + $0x178] sm:$0xff]  }
 0x2b5   :  { %5736 = vmatpush3.bf16.msra.mxu0 %v7133_v20 }
 0x2b6   :  { %5737 = vmatprep.subr.bf16.mxu0 %v7138_v16 }
 0x2b9   :  { %5738 = vmatpush3.bf16.msra.mxu0 %v7138_v16 }
 0x2ba   :  { %5739 = vmatprep.subr.bf16.mxu0 %v7140_v32 }
 0x2bd   :  { %5740 = vmatpush3.bf16.msra.mxu0 %v7140_v32 }
 0x2be   :  { %5773 = vmatprep.subr.bf16.mxu0 %v6491_v60 }
 0x2c0   :  { %5742 = vmatmul.mubr.msk.bf16.vlgmr.msra.gmra.mrb[32].mxu0 %vm193_vm0, %v7150_v33 }
 0x2c1   :  { %5745 = vmatprep.mubr.msk.bf16.mxu0 %vm193_vm0, %v7157_v34  ;;  %5774 = vmatpush3.bf16.msra.mxu0 %v6491_v60  ;;  %v6507_v60 = vld [vmem:[#allocation2 + $0x1c0] sm:$0xff]  }
 0x2c2   :  { %5775 = vmatprep.subr.bf16.mxu0 %v6492_v63 }
 0x2c5   :  { %5776 = vmatpush3.bf16.msra.mxu0 %v6492_v63 }
 0x2c6   :  { %5777 = vmatprep.subr.bf16.mxu0 %v6493_v35 }
 0x2c8   :  { %5746 = vmatmul.mubr.msk.bf16.gmra.mrb[36].mxu0 %vm193_vm0, %v7164_v37 }
 0x2c9   :  { %5749 = vmatprep.mubr.msk.bf16.mxu0 %vm193_vm0, %v7171_v38  ;;  %5778 = vmatpush3.bf16.msra.mxu0 %v6493_v35 }
 0x2ca   :  { %5779 = vmatprep.subr.bf16.mxu0 %v6494_v36 }
 0x2cd   :  { %5780 = vmatpush3.bf16.msra.mxu0 %v6494_v36 }
 0x2ce   :  { %5781 = vmatprep.subr.bf16.mxu0 %v6495_v39 }
 0x2d0   :  { %5750 = vmatmul.mubr.msk.bf16.gmra.mrb[40].mxu0 %vm193_vm0, %v7178_v41 }
 0x2d1   :  { %5753 = vmatprep.mubr.msk.bf16.mxu0 %vm193_vm0, %v7185_v42  ;;  %5782 = vmatpush3.bf16.msra.mxu0 %v6495_v39 }
 0x2d2   :  { %5783 = vmatprep.subr.bf16.mxu0 %v6496_v40 }
 0x2d5   :  { %5784 = vmatpush3.bf16.msra.mxu0 %v6496_v40 }
 0x2d6   :  { %5785 = vmatprep.subr.bf16.mxu0 %v6497_v43 }
 0x2d8   :  { %5754 = vmatmul.mubr.msk.bf16.gmra.mrb[44].mxu0 %vm193_vm0, %v7192_v44 }
 0x2d9   :  { %5757 = vmatprep.mubr.msk.bf16.mxu0 %vm193_vm0, %v7199_v45  ;;  %5786 = vmatpush3.bf16.msra.mxu0 %v6497_v43  ;;  %v6508_v43 = vld [vmem:[#allocation2 + $0x1c8] sm:$0xff]  }
 0x2da   :  { %5787 = vmatprep.subr.bf16.mxu0 %v6498_v59 }
 0x2dd   :  { %5788 = vmatpush3.bf16.msra.mxu0 %v6498_v59 }
 0x2de   :  { %5797 = vmatprep.subr.bf16.mxu0 %v6499_v62 }
 0x2e0   :  { %5758 = vmatmul.mubr.msk.bf16.gmra.mrb[48].mxu0 %vm193_vm0, %v7206_v46 }
 0x2e1   :  { %5761 = vmatprep.mubr.msk.bf16.mxu0 %vm193_vm0, %v7213_v47 }
 0x2e8   :  { %5762 = vmatmul.mubr.msk.bf16.gmra.mrb[52].mxu0 %vm193_vm0, %v7220_v48 }
 0x2e9   :  { %5765 = vmatprep.mubr.msk.bf16.mxu0 %vm193_vm0, %v7227_v49 }
 0x2f0   :  { %5766 = vmatmul.mubr.msk.bf16.gmra.mrb[56].mxu0 %vm193_vm0, %v7234_v51 }
 0x2f1   :  { %5769 = vmatprep.mubr.msk.bf16.mxu0 %vm193_vm0, %v7241_v57 }
 0x2f8   :  { %5770 = vmatmul.mubr.msk.bf16.gmra.mrb[60].mxu0 %vm193_vm0, %v7248_v58 }
 0x393   :  { %v5743_v1 = vpop.f32.mrb[32].mxu0 }
 0x394   :  { %v1302_v3 = vpop.f32.mrb[33].mxu0 }
 0x395   :  { %v5744_v4 = vpop.f32.mrb[34].mxu0 }
 0x396   :  { %v1447_v6 = vpack.c.bf16 %v5744_v4, %v5743_v1  ;;  %v1305_v7 = vpop.f32.mrb[35].mxu0 }
 0x397   :  { %v1446_v8 = vpack.c.bf16 %v1305_v7, %v1302_v3 }
 0x399   :  { %5789 = vmatprep.mubr.bf16.mxu0 %v1446_v8  ;;  %v6511_v8 = vld [vmem:[#allocation2 + $0x1e0] sm:$0xff]  }
 0x39a   :  { %5790 = vmatmul.mubr.bf16.vlgmr.msra.gmra.mrb[64].mxu0 %v1447_v6 }
 0x39b   :  { %5798 = vmatpush3.bf16.msra.mxu0 %v6499_v62  ;;  %v5747_v11 = vpop.f32.mrb[36].mxu0  ;;  %v6509_v62 = vld [vmem:[#allocation2 + $0x1d0] sm:$0xff]  }
 0x39c   :  { %v1318_v13 = vpop.f32.mrb[37].mxu0  ;;  %5799 = vmatprep.subr.bf16.mxu0 %v6500_v10 }
 0x39d   :  { %v5748_v0 = vpop.f32.mrb[38].mxu0 }
 0x39e   :  { %v1449_v2 = vpack.c.bf16 %v5748_v0, %v5747_v11  ;;  %v1321_v15 = vpop.f32.mrb[39].mxu0 }
 0x39f   :  { %v1448_v56 = vpack.c.bf16 %v1321_v15, %v1318_v13  ;;  %5800 = vmatpush3.bf16.msra.mxu0 %v6500_v10  ;;  %v6513_v15 = vld [vmem:[#allocation2 + $0x1f0] sm:$0xff]  }
 0x3a0   :  { %5801 = vmatprep.subr.bf16.mxu0 %v6501_v14 }
 0x3a1   :  { %5793 = vmatprep.mubr.bf16.mxu0 %v1448_v56 }
 0x3a2   :  { %5794 = vmatmul.mubr.bf16.gmra.mrb[68].mxu0 %v1449_v2  ;;  %v6512_v2 = vld [vmem:[#allocation2 + $0x1e8] sm:$0xff]  }
 0x3a3   :  { %5802 = vmatpush3.bf16.msra.mxu0 %v6501_v14  ;;  %5813 = vmatprep.mubr.bf16.mxu0 %v7128_v17  ;;  %v7253_v21 = vpop.f32.mrb[40].mxu0  ;;  %v6505_v17 = vld [vmem:[#allocation2 + $0x170] sm:$0xff]  }
 0x3a4   :  { %5803 = vmatprep.subr.bf16.mxu0 %v6502_v18  ;;  %v1334_v22 = vpop.f32.mrb[41].mxu0 }
 0x3a5   :  { %v7255_v23 = vpop.f32.mrb[42].mxu0 }
 0x3a6   :  { %v1694_v24 = vpack.c.bf16 %v7255_v23, %v7253_v21  ;;  %v1337_v19 = vpop.f32.mrb[43].mxu0  ;;  %v6521_v21 = vld [vmem:[#allocation2 + $0x230] sm:$0xff]   ;;  %v6522_v23 = vld [vmem:[#allocation2 + $0x238] sm:$0xff]  }
 0x3a7   :  { %5804 = vmatpush3.bf16.msra.mxu0 %v6502_v18  ;;  %v1693_v25 = vpack.c.bf16 %v1337_v19, %v1334_v22 }
 0x3a8   :  { %5805 = vmatprep.subr.bf16.mxu0 %v6503_v9 }
 0x3ab   :  { %5806 = vmatpush3.bf16.msra.mxu0 %v6503_v9  ;;  %v7259_v54 = vpop.f32.mrb[44].mxu0 }
 0x3ac   :  { %5807 = vmatprep.subr.bf16.mxu0 %v6504_v26  ;;  %v7261_v27 = vpop.f32.mrb[45].mxu0 }
 0x3ad   :  { %v7263_v28 = vpop.f32.mrb[46].mxu0 }
 0x3ae   :  { %v1696_v12 = vpack.c.bf16 %v7263_v28, %v7259_v54  ;;  %v7267_v5 = vpop.f32.mrb[47].mxu0  ;;  %v6524_v54 = vld [vmem:[#allocation2 + $0x248] sm:$0xff]   ;;  %v6525_v28 = vld [vmem:[#allocation2 + $0x250] sm:$0xff]  }
 0x3af   :  { %5808 = vmatpush3.bf16.msra.mxu0 %v6504_v26  ;;  %v1695_v29 = vpack.c.bf16 %v7267_v5, %v7261_v27  ;;  %v6515_v26 = vld [vmem:[#allocation2 + $0x200] sm:$0xff]   ;;  %v6517_v27 = vld [vmem:[#allocation2 + $0x210] sm:$0xff]   ;;  %v6518_v5 = vld [vmem:[#allocation2 + $0x218] sm:$0xff]  }
 0x3b0   :  { %5809 = vmatprep.subr.bf16.mxu0 %v6505_v17 }
 0x3b3   :  { %5810 = vmatpush3.bf16.msra.mxu0 %v6505_v17  ;;  %v7271_v31 = vpop.f32.mrb[48].mxu0  ;;  %v6516_v17 = vld [vmem:[#allocation2 + $0x208] sm:$0xff]  }
 0x3b4   :  { %5811 = vmatprep.subr.bf16.mxu0 %v6506_v30  ;;  %v7273_v63 = vpop.f32.mrb[49].mxu0 }
 0x3b5   :  { %v7275_v35 = vpop.f32.mrb[50].mxu0 }
 0x3b6   :  { %v1836_v36 = vpack.c.bf16 %v7275_v35, %v7271_v31  ;;  %v1369_v39 = vpop.f32.mrb[51].mxu0  ;;  %v6528_v31 = vld [vmem:[#allocation2 + $0x268] sm:$0xff]   ;;  %v6530_v35 = vld [vmem:[#allocation2 + $0x278] sm:$0xff]  }
 0x3b7   :  { %5812 = vmatpush3.bf16.msra.mxu0 %v6506_v30  ;;  %v1835_v40 = vpack.c.bf16 %v1369_v39, %v7273_v63  ;;  %v6519_v30 = vld [vmem:[#allocation2 + $0x220] sm:$0xff]   ;;  %v6529_v63 = vld [vmem:[#allocation2 + $0x270] sm:$0xff]  }
 0x3b8   :  { %5821 = vmatprep.subr.bf16.mxu0 %v6507_v60 }
 0x3ba   :  { %5814 = vmatmul.mubr.bf16.vlgmr.msra.gmra.mrb[64].mxu0 %v7133_v20 }
 0x3bb   :  { %5817 = vmatprep.mubr.bf16.mxu0 %v7138_v16  ;;  %5822 = vmatpush3.bf16.msra.mxu0 %v6507_v60  ;;  %v7282_v59 = vpop.f32.mrb[52].mxu0  ;;  %v6510_v16 = vld [vmem:[#allocation2 + $0x1d8] sm:$0xff]   ;;  %v6520_v60 = vld [vmem:[#allocation2 + $0x228] sm:$0xff]  }
 0x3bc   :  { %5823 = vmatprep.subr.bf16.mxu0 %v6508_v43  ;;  %v7284_v1 = vpop.f32.mrb[53].mxu0 }
 0x3bd   :  { %v7286_v3 = vpop.f32.mrb[54].mxu0 }
 0x3be   :  { %v1838_v4 = vpack.c.bf16 %v7286_v3, %v7282_v59  ;;  %v7290_v6 = vpop.f32.mrb[55].mxu0 }
 0x3bf   :  { %5824 = vmatpush3.bf16.msra.mxu0 %v6508_v43  ;;  %v1837_v20 = vpack.c.bf16 %v7290_v6, %v7284_v1 }
 0x3c0   :  { %5825 = vmatprep.subr.bf16.mxu0 %v6509_v62 }
 0x3c2   :  { %5818 = vmatmul.mubr.bf16.gmra.mrb[68].mxu0 %v7140_v32 }
 0x3c3   :  { %5826 = vmatpush3.bf16.msra.mxu0 %v6509_v62  ;;  %5837 = vmatprep.mubr.bf16.mxu0 %v1693_v25  ;;  %v7295_v7 = vpop.f32.mrb[56].mxu0  ;;  %v6514_v25 = vld [vmem:[#allocation2 + $0x1f8] sm:$0xff]  }
 0x3c4   :  { %5827 = vmatprep.subr.bf16.mxu0 %v6510_v16  ;;  %v7297_v10 = vpop.f32.mrb[57].mxu0 }
 0x3c5   :  { %v7299_v11 = vpop.f32.mrb[58].mxu0 }
 0x3c6   :  { %v1978_v13 = vpack.c.bf16 %v7299_v11, %v7295_v7  ;;  %v1401_v14 = vpop.f32.mrb[59].mxu0 }
 0x3c7   :  { %5828 = vmatpush3.bf16.msra.mxu0 %v6510_v16  ;;  %v1977_v0 = vpack.c.bf16 %v1401_v14, %v7297_v10 }
 0x3c8   :  { %5829 = vmatprep.subr.bf16.mxu0 %v6511_v8 }
 0x3cb   :  { %5830 = vmatpush3.bf16.msra.mxu0 %v6511_v8  ;;  %v7304_v32 = vpop.f32.mrb[60].mxu0 }
 0x3cc   :  { %5831 = vmatprep.subr.bf16.mxu0 %v6512_v2  ;;  %v7306_v56 = vpop.f32.mrb[61].mxu0 }
 0x3cd   :  { %v7308_v18 = vpop.f32.mrb[62].mxu0 }
 0x3ce   :  { %v1980_v9 = vpack.c.bf16 %v7308_v18, %v7304_v32  ;;  %v7312_v22 = vpop.f32.mrb[63].mxu0 }
 0x3cf   :  { %5832 = vmatpush3.bf16.msra.mxu0 %v6512_v2  ;;  %v1979_v19 = vpack.c.bf16 %v7312_v22, %v7306_v56 }
 0x3d0   :  { %5833 = vmatprep.subr.bf16.mxu0 %v6513_v15 }
 0x3d3   :  { %5834 = vmatpush3.bf16.msra.mxu0 %v6513_v15 }
 0x3d4   :  { %5835 = vmatprep.subr.bf16.mxu0 %v6514_v25 }
 0x3d7   :  { %5836 = vmatpush3.bf16.msra.mxu0 %v6514_v25 }
 0x3d8   :  { %5845 = vmatprep.subr.bf16.mxu0 %v6515_v26 }
 0x3da   :  { %5838 = vmatmul.mubr.bf16.vlgmr.msra.gmra.mrb[64].mxu0 %v1694_v24  ;;  %v6523_v24 = vld [vmem:[#allocation2 + $0x240] sm:$0xff]  }
 0x3db   :  { %5846 = vmatpush3.bf16.msra.mxu0 %v6515_v26  ;;  %5841 = vmatprep.mubr.bf16.mxu0 %v1695_v29  ;;  %v6527_v29 = vld [vmem:[#allocation2 + $0x260] sm:$0xff]  }
 0x3dc   :  { %5847 = vmatprep.subr.bf16.mxu0 %v6516_v17 }
 0x3df   :  { %5848 = vmatpush3.bf16.msra.mxu0 %v6516_v17 }
 0x3e0   :  { %5849 = vmatprep.subr.bf16.mxu0 %v6517_v27 }
 0x3e2   :  { %5842 = vmatmul.mubr.bf16.gmra.mrb[68].mxu0 %v1696_v12  ;;  %v6526_v12 = vld [vmem:[#allocation2 + $0x258] sm:$0xff]  }
 0x3e3   :  { %5850 = vmatpush3.bf16.msra.mxu0 %v6517_v27  ;;  %5861 = vmatprep.mubr.bf16.mxu0 %v1835_v40 }
 0x3e4   :  { %5851 = vmatprep.subr.bf16.mxu0 %v6518_v5 }
 0x3e7   :  { %5852 = vmatpush3.bf16.msra.mxu0 %v6518_v5 }
 0x3e8   :  { %5853 = vmatprep.subr.bf16.mxu0 %v6519_v30 }
 0x3eb   :  { %5854 = vmatpush3.bf16.msra.mxu0 %v6519_v30 }
 0x3ec   :  { %5855 = vmatprep.subr.bf16.mxu0 %v6520_v60 }
 0x3ef   :  { %5856 = vmatpush3.bf16.msra.mxu0 %v6520_v60 }
 0x3f0   :  { %5857 = vmatprep.subr.bf16.mxu0 %v6521_v21 }
 0x3f3   :  { %5858 = vmatpush3.bf16.msra.mxu0 %v6521_v21 }
 0x3f4   :  { %5859 = vmatprep.subr.bf16.mxu0 %v6522_v23 }
 0x3f7   :  { %5860 = vmatpush3.bf16.msra.mxu0 %v6522_v23 }
 0x3f8   :  { %5869 = vmatprep.subr.bf16.mxu0 %v6523_v24 }
 0x3fa   :  { %5862 = vmatmul.mubr.bf16.vlgmr.msra.gmra.mrb[64].mxu0 %v1836_v36  ;;  %v7342_v36 = vld [vmem:[%s7951_s4 + $0x8] sm:$0xff] }
 0x3fb   :  { %5870 = vmatpush3.bf16.msra.mxu0 %v6523_v24  ;;  %5865 = vmatprep.mubr.bf16.mxu0 %v1837_v20  ;;  %v2124_v39 = vrot.slane %v7342_v36, %v7071_v55 }
 0x3fc   :  { %5871 = vmatprep.subr.bf16.mxu0 %v6524_v54 }
 0x3ff   :  { %5872 = vmatpush3.bf16.msra.mxu0 %v6524_v54 }
 0x400   :  { %5873 = vmatprep.subr.bf16.mxu0 %v6525_v28 }
 0x402   :  { %5866 = vmatmul.mubr.bf16.gmra.mrb[68].mxu0 %v1838_v4 }
 0x403   :  { %5874 = vmatpush3.bf16.msra.mxu0 %v6525_v28  ;;  %5885 = vmatprep.mubr.bf16.mxu0 %v1977_v0 }
 0x404   :  { %5875 = vmatprep.subr.bf16.mxu0 %v6526_v12 }
 0x407   :  { %5876 = vmatpush3.bf16.msra.mxu0 %v6526_v12 }
 0x408   :  { %5877 = vmatprep.subr.bf16.mxu0 %v6527_v29 }
 0x40b   :  { %5878 = vmatpush3.bf16.msra.mxu0 %v6527_v29 }
 0x40c   :  { %5879 = vmatprep.subr.bf16.mxu0 %v6528_v31 }
 0x40f   :  { %5880 = vmatpush3.bf16.msra.mxu0 %v6528_v31 }
 0x410   :  { %5881 = vmatprep.subr.bf16.mxu0 %v6529_v63 }
 0x413   :  { %5882 = vmatpush3.bf16.msra.mxu0 %v6529_v63 }
 0x414   :  { %5883 = vmatprep.subr.bf16.mxu0 %v6530_v35 }
 0x417   :  { %5884 = vmatpush3.bf16.msra.mxu0 %v6530_v35 }
 0x41a   :  { %5886 = vmatmul.mubr.bf16.vlgmr.msra.gmra.mrb[64].mxu0 %v1978_v13 }
 0x41b   :  { %5889 = vmatprep.mubr.bf16.mxu0 %v1979_v19 }
 0x422   :  { %5890 = vmatmul.mubr.bf16.gmra.mrb[68].mxu0 %v1980_v9 }
 0x423   :  { %6061 = vmatprep.mubr.msk.bf16.mxu0 %vm193_vm0, %v7063_v52 }
 0x4ed   :  { %v5887_v40 = vpop.f32.mrb[64].mxu0 }
 0x4ee   :  { %v2080_v43 = vpop.f32.mrb[65].mxu0  ;;  %v2127_v3 = vadd.f32 %v5887_v40, %v2124_v39 }
 0x4ef   :  { %v2125_v59 = vadd.f32 %v2124_v39, %v2080_v43  ;;  %v5888_v62 = vpop.f32.mrb[66].mxu0 }
 0x4f0   :  { %v2083_v1 = vpop.f32.mrb[67].mxu0  ;;  %v2128_v20 = vadd.f32 %v5888_v62, %v2124_v39  ;;  %v2157_v52 = vmul.f32 %v2127_v3, %v2127_v3 }
 0x4f1   :  { %v2126_v4 = vadd.f32 %v2124_v39, %v2083_v1  ;;  %v2155_v6 = vmul.f32 %v2125_v59, %v2125_v59 }
 0x4f2   :  { %v2158_v14 = vmul.f32 %v2128_v20, %v2128_v20 }
 0x4f3   :  { %v2141_v16 = vadd.f32 %v2126_v4, %v2125_v59  ;;  %v2156_v7 = vmul.f32 %v2126_v4, %v2126_v4 }
 0x4f5   :  { %v2142_v8 = vadd.f32 %v2141_v16, %v2127_v3  ;;  %v2163_v10 = vadd.f32 %v2156_v7, %v2155_v6  ;;  %v5891_v11 = vpop.f32.mrb[68].mxu0 }
 0x4f6   :  { %v2096_v13 = vpop.f32.mrb[69].mxu0  ;;  %v2131_v56 = vadd.f32 %v5891_v11, %v2124_v39 }
 0x4f7   :  { %v2164_v0 = vadd.f32 %v2163_v10, %v2157_v52  ;;  %v2129_v2 = vadd.f32 %v2124_v39, %v2096_v13  ;;  %v2143_v32 = vadd.f32 %v2142_v8, %v2128_v20  ;;  %v5892_v15 = vpop.f32.mrb[70].mxu0 }
 0x4f8   :  { %v2099_v18 = vpop.f32.mrb[71].mxu0  ;;  %v2132_v17 = vadd.f32 %v5892_v15, %v2124_v39  ;;  %v2161_v30 = vmul.f32 %v2131_v56, %v2131_v56 }
 0x4f9   :  { %v2144_v9 = vadd.f32 %v2143_v32, %v2129_v2  ;;  %v2159_v22 = vmul.f32 %v2129_v2, %v2129_v2  ;;  %v2165_v19 = vadd.f32 %v2164_v0, %v2158_v14  ;;  %v2130_v25 = vadd.f32 %v2124_v39, %v2099_v18 }
 0x4fa   :  { %v2162_v23 = vmul.f32 %v2132_v17, %v2132_v17 }
 0x4fb   :  { %v2166_v26 = vadd.f32 %v2165_v19, %v2159_v22  ;;  %v2145_v27 = vadd.f32 %v2144_v9, %v2130_v25  ;;  %v2160_v5 = vmul.f32 %v2130_v25, %v2130_v25 }
 0x4fd   :  { %v2146_v60 = vadd.f32 %v2145_v27, %v2131_v56  ;;  %v2167_v21 = vadd.f32 %v2166_v26, %v2160_v5 }
 0x4ff   :  { %v2147_v24 = vadd.f32 %v2146_v60, %v2132_v17  ;;  %v2168_v54 = vadd.f32 %v2167_v21, %v2161_v30 }
 0x501   :  { %v2148_v28 = vrot.slane %v2147_v24, 4  ;;  %v2169_v12 = vadd.f32 %v2168_v54, %v2162_v23 }
 0x503   :  { %v2149_v29 = vadd.f32 %v2148_v28, %v2147_v24  ;;  %v2170_v31 = vrot.slane %v2169_v12, 4 }
 0x505   :  { %v2150_v63 = vrot.slane %v2149_v29, 2  ;;  %v2171_v35 = vadd.f32 %v2170_v31, %v2169_v12 }
 0x507   :  { %v2151_v40 = vadd.f32 %v2150_v63, %v2149_v29  ;;  %v2172_v43 = vrot.slane %v2171_v35, 2 }
 0x509   :  { %v2152_v62 = vrot.slane %v2151_v40, 1  ;;  %v2173_v1 = vadd.f32 %v2172_v43, %v2171_v35 }
 0x50b   :  { %v2153_v6 = vadd.f32 %v2152_v62, %v2151_v40  ;;  %v2174_v39 = vrot.slane %v2173_v1, 1 }
 0x50d   :  { %v2154_v16 = vmul.f32 0.015625, %v2153_v6  ;;  %v2175_v7 = vadd.f32 %v2174_v39, %v2173_v1 }
 0x50f   :  { %v2176_v52 = vmul.f32 0.015625, %v2175_v7  ;;  %v2177_v8 = vmul.f32 %v2154_v16, %v2154_v16 }
 0x511   :  { %v2178_v10 = vsub.f32 %v2176_v52, %v2177_v8 }
 0x513   :  { %v2179_v11 = vmax.f32 %v2178_v10, 0.0 }
 0x515   :  { %v2180_v13 = vadd.f32 1e-05, %v2179_v11 }
 0x517   :  { %6653 = vrsqrt.f32 %v2180_v13 }
 0x521   :  { %v6654_v14 = vpop.eup %6653 }
 0x522   :  { %v2182_v0 = vmul.f32 %v6654_v14, %v7342_v36 }
 0x524   :  { %v2183_v32 = vmul.f32 %v2182_v0, %v2154_v16  ;;  %v2191_v15 = vrot.slane %v2182_v0, %v7086_v50 }
 0x526   :  { %v2185_v18 = vrot.slane %v2183_v32, 7  ;;  %v2197_v9 = vmul.f32 %v2191_v15, %v2130_v25  ;;  %v2192_v22 = vmul.f32 %v2191_v15, %v2125_v59  ;;  %v2193_v19 = vmul.f32 %v2191_v15, %v2126_v4 }
 0x527   :  { %v2194_v26 = vmul.f32 %v2191_v15, %v2127_v3  ;;  %v2195_v27 = vmul.f32 %v2191_v15, %v2128_v20  ;;  %v2196_v5 = vmul.f32 %v2191_v15, %v2129_v2  ;;  %v2198_v30 = vmul.f32 %v2191_v15, %v2131_v56 }
 0x528   :  { %v2187_v60 = vsub.f32 %v7342_v36, %v2185_v18  ;;  %v2199_v21 = vmul.f32 %v2191_v15, %v2132_v17 }
 0x52a   :  { %v2203_v23 = vrot.slane %v2187_v60, %v7091_v61 }
 0x52c   :  { %v7350_v24 = vadd.f32 %v2203_v23, %v2197_v9  ;;  %v2204_v54 = vadd.f32 %v2203_v23, %v2192_v22  ;;  %v2205_v28 = vadd.f32 %v2203_v23, %v2193_v19  ;;  %v2206_v12 = vadd.f32 %v2203_v23, %v2194_v26 }
 0x52d   :  { %v7352_v29 = vadd.f32 %v2203_v23, %v2195_v27  ;;  %v7354_v31 = vadd.f32 %v2203_v23, %v2196_v5  ;;  %v7356_v59 = vadd.f32 %v2203_v23, %v2198_v30  ;;  %v7358_v3 = vadd.f32 %v2203_v23, %v2199_v21 }
 0x52e   :  { %v2220_v4 = vmul.f32 0.044715, %v2204_v54  ;;  %v2221_v20 = vmul.f32 0.044715, %v2205_v28  ;;  %v2222_v2 = vmul.f32 0.044715, %v2206_v12 }
 0x52f   :  { %v2223_v36 = vmul.f32 0.044715, %v7352_v29  ;;  %v2224_v35 = vmul.f32 0.044715, %v7354_v31  ;;  %v2225_v40 = vmul.f32 0.044715, %v7350_v24 }
 0x530   :  { %v2228_v56 = vmul.f32 %v2220_v4, %v2204_v54  ;;  %v2229_v25 = vmul.f32 %v2221_v20, %v2205_v28  ;;  %v2230_v17 = vmul.f32 %v2222_v2, %v2206_v12  ;;  %v2226_v8 = vmul.f32 0.044715, %v7356_v59 }
 0x531   :  { %v2231_v63 = vmul.f32 %v2223_v36, %v7352_v29  ;;  %v2232_v39 = vmul.f32 %v2224_v35, %v7354_v31  ;;  %v2233_v16 = vmul.f32 %v2225_v40, %v7350_v24  ;;  %v2227_v10 = vmul.f32 0.044715, %v7358_v3 }
 0x532   :  { %v2236_v43 = vmul.f32 %v2228_v56, %v2204_v54  ;;  %v2237_v62 = vmul.f32 %v2229_v25, %v2205_v28  ;;  %v2238_v1 = vmul.f32 %v2230_v17, %v2206_v12  ;;  %v2234_v18 = vmul.f32 %v2226_v8, %v7356_v59 }
 0x533   :  { %v2239_v6 = vmul.f32 %v2231_v63, %v7352_v29  ;;  %v2240_v14 = vmul.f32 %v2232_v39, %v7354_v31  ;;  %v2241_v0 = vmul.f32 %v2233_v16, %v7350_v24  ;;  %v2235_v9 = vmul.f32 %v2227_v10, %v7358_v3 }
 0x534   :  { %v2244_v7 = vadd.f32 %v2236_v43, %v2204_v54  ;;  %v2245_v52 = vadd.f32 %v2237_v62, %v2205_v28  ;;  %v2246_v11 = vadd.f32 %v2238_v1, %v2206_v12  ;;  %v2242_v5 = vmul.f32 %v2234_v18, %v7356_v59 }
 0x535   :  { %v2247_v13 = vadd.f32 %v2239_v6, %v7352_v29  ;;  %v2248_v26 = vadd.f32 %v2240_v14, %v7354_v31  ;;  %v2249_v27 = vadd.f32 %v2241_v0, %v7350_v24  ;;  %v2243_v30 = vmul.f32 %v2235_v9, %v7358_v3 }
 0x536   :  { %v2252_v32 = vmul.f32 0.7978846, %v2244_v7  ;;  %v2253_v15 = vmul.f32 0.7978846, %v2245_v52  ;;  %v2254_v22 = vmul.f32 0.7978846, %v2246_v11  ;;  %v2250_v23 = vadd.f32 %v2242_v5, %v7356_v59 }
 0x537   :  { %v2255_v19 = vmul.f32 0.7978846, %v2247_v13  ;;  %v2256_v60 = vmul.f32 0.7978846, %v2248_v26  ;;  %v2257_v21 = vmul.f32 0.7978846, %v2249_v27  ;;  %v2251_v4 = vadd.f32 %v2243_v30, %v7358_v3 }
 0x538   :  { %6655 = vtanh.f32 %v2252_v32  ;;  %v2258_v20 = vmul.f32 0.7978846, %v2250_v23  ;;  %v2212_v25 = vmul.f32 0.5, %v2204_v54  ;;  %v2213_v35 = vmul.f32 0.5, %v2205_v28  ;;  %v6533_v30 = vld [vmem:[#allocation2 + $0x2d0] sm:$0xff]  }
 0x539   :  { %6657 = vtanh.f32 %v2253_v15  ;;  %v2259_v2 = vmul.f32 0.7978846, %v2251_v4  ;;  %v2214_v1 = vmul.f32 0.5, %v2206_v12  ;;  %v2215_v7 = vmul.f32 0.5, %v7352_v29 }
 0x53a   :  { %6659 = vtanh.f32 %v2254_v22  ;;  %v2216_v11 = vmul.f32 0.5, %v7354_v31  ;;  %v2217_v28 = vmul.f32 0.5, %v7350_v24  ;;  %v2218_v18 = vmul.f32 0.5, %v7356_v59  ;;  %v6531_v59 = vld [vmem:[#allocation2 + $0x2c0] sm:$0xff]  }
 0x53b   :  { %6661 = vtanh.f32 %v2255_v19  ;;  %v2219_v31 = vmul.f32 0.5, %v7358_v3  ;;  %v6532_v3 = vld [vmem:[#allocation2 + $0x2c8] sm:$0xff]  }
 0x53c   :  { %6663 = vtanh.f32 %v2256_v60  ;;  %v6534_v60 = vld [vmem:[#allocation2 + $0x2d8] sm:$0xff]  }
 0x53d   :  { %6665 = vtanh.f32 %v2257_v21  ;;  %v6535_v21 = vld [vmem:[#allocation2 + $0x2e0] sm:$0xff]  }
 0x53e   :  { %6667 = vtanh.f32 %v2258_v20 }
 0x53f   :  { %6669 = vtanh.f32 %v2259_v2  ;;  %v6542_v2 = vld [vmem:[#allocation2 + $0x298] sm:$0xff]  }
 0x542   :  { %v6656_v36 = vpop.eup %6655 }
 0x543   :  { %v6658_v56 = vpop.eup %6657  ;;  %v2268_v17 = vadd.f32 1.0, %v6656_v36 }
 0x544   :  { %v6660_v63 = vpop.eup %6659  ;;  %v2269_v40 = vadd.f32 1.0, %v6658_v56  ;;  %v6543_v56 = vld [vmem:[#allocation2 + $0x2a0] sm:$0xff]  }
 0x545   :  { %v6662_v43 = vpop.eup %6661  ;;  %v2276_v62 = vmul.f32 %v2268_v17, %v2212_v25  ;;  %v2270_v6 = vadd.f32 1.0, %v6660_v63 }
 0x546   :  { %v6664_v39 = vpop.eup %6663  ;;  %v2277_v16 = vmul.f32 %v2269_v40, %v2213_v35  ;;  %v2271_v52 = vadd.f32 1.0, %v6662_v43  ;;  %v6544_v43 = vld [vmem:[#allocation2 + $0x2a8] sm:$0xff]  }
 0x547   :  { %v6666_v8 = vpop.eup %6665  ;;  %v2278_v10 = vmul.f32 %v2270_v6, %v2214_v1  ;;  %v2272_v13 = vadd.f32 1.0, %v6664_v39  ;;  %v6545_v1 = vld [vmem:[#allocation2 + $0x2b0] sm:$0xff]  }
 0x548   :  { %v6668_v14 = vpop.eup %6667  ;;  %v7382_v54 = vpack.c.bf16 %v2277_v16, %v2276_v62  ;;  %v2279_v0 = vmul.f32 %v2271_v52, %v2215_v7  ;;  %v2273_v32 = vadd.f32 1.0, %v6666_v8  ;;  %v6546_v8 = vld [vmem:[#allocation2 + $0x2b8] sm:$0xff]  }
 0x549   :  { %v6670_v15 = vpop.eup %6669  ;;  %v2280_v12 = vmul.f32 %v2272_v13, %v2216_v11  ;;  %v2274_v9 = vadd.f32 1.0, %v6668_v14  ;;  %v6547_v11 = vld [vmem:[#allocation2 + $0x300] sm:$0xff]  }
 0x54a   :  { %5893 = vmatprep.subr.bf16.mxu1 %v7382_v54  ;;  %v7387_v29 = vpack.c.bf16 %v2279_v0, %v2278_v10  ;;  %v2281_v22 = vmul.f32 %v2273_v32, %v2217_v28  ;;  %v2275_v19 = vadd.f32 1.0, %v6670_v15  ;;  %v6548_v32 = vld [vmem:[#allocation2 + $0x308] sm:$0xff]  }
 0x54b   :  { %5894 = vmatpush3.bf16.msra.mxu1 %v7382_v54  ;;  %v2282_v26 = vmul.f32 %v2274_v9, %v2218_v18 }
 0x54c   :  { %5895 = vmatprep.subr.bf16.mxu1 %v7387_v29  ;;  %v7392_v24 = vpack.c.bf16 %v2281_v22, %v2280_v12  ;;  %v2283_v27 = vmul.f32 %v2275_v19, %v2219_v31  ;;  %v6549_v12 = vld [vmem:[#allocation2 + $0x310] sm:$0xff]   ;;  %v6550_v19 = vld [vmem:[#allocation2 + $0x318] sm:$0xff]  }
 0x54e   :  { %v7394_v5 = vpack.c.bf16 %v2283_v27, %v2282_v26 }
 0x54f   :  { %5896 = vmatpush3.bf16.msra.mxu1 %v7387_v29 }
 0x550   :  { %5897 = vmatprep.subr.bf16.mxu1 %v7392_v24 }
 0x553   :  { %5898 = vmatpush3.bf16.msra.mxu1 %v7392_v24 }
 0x554   :  { %5899 = vmatprep.subr.bf16.mxu1 %v7394_v5 }
 0x557   :  { %5900 = vmatpush3.bf16.msra.mxu1 %v7394_v5 }
 0x558   :  { %5933 = vmatprep.subr.bf16.mxu1 %v6531_v59 }
 0x55a   :  { %5902 = vmatmul.mubr.msk.bf16.vlgmr.msra.gmra.mrb[8].mxu1 %vm193_vm0, %v7150_v33  ;;  %v6536_v33 = vld [vmem:[#allocation2 + $0x2e8] sm:$0xff]  }
 0x55b   :  { %5905 = vmatprep.mubr.msk.bf16.mxu1 %vm193_vm0, %v7157_v34  ;;  %5934 = vmatpush3.bf16.msra.mxu1 %v6531_v59  ;;  %v6537_v34 = vld [vmem:[#allocation2 + $0x2f0] sm:$0xff]  }
 0x55c   :  { %5935 = vmatprep.subr.bf16.mxu1 %v6532_v3 }
 0x55f   :  { %5936 = vmatpush3.bf16.msra.mxu1 %v6532_v3 }
 0x560   :  { %5937 = vmatprep.subr.bf16.mxu1 %v6533_v30 }
 0x562   :  { %5906 = vmatmul.mubr.msk.bf16.gmra.mrb[12].mxu1 %vm193_vm0, %v7164_v37  ;;  %v6538_v37 = vld [vmem:[#allocation2 + $0x2f8] sm:$0xff]  }
 0x563   :  { %5909 = vmatprep.mubr.msk.bf16.mxu1 %vm193_vm0, %v7171_v38  ;;  %5938 = vmatpush3.bf16.msra.mxu1 %v6533_v30  ;;  %v6539_v38 = vld [vmem:[#allocation2 + $0x280] sm:$0xff]  }
 0x564   :  { %5939 = vmatprep.subr.bf16.mxu1 %v6534_v60 }
 0x567   :  { %5940 = vmatpush3.bf16.msra.mxu1 %v6534_v60 }
 0x568   :  { %5941 = vmatprep.subr.bf16.mxu1 %v6535_v21 }
 0x56a   :  { %5910 = vmatmul.mubr.msk.bf16.gmra.mrb[16].mxu1 %vm193_vm0, %v7178_v41 }
 0x56b   :  { %5913 = vmatprep.mubr.msk.bf16.mxu1 %vm193_vm0, %v7185_v42  ;;  %5942 = vmatpush3.bf16.msra.mxu1 %v6535_v21  ;;  %v6552_v21 = vld [vmem:[#allocation2 + $0x328] sm:$0xff]  }
 0x56c   :  { %5943 = vmatprep.subr.bf16.mxu1 %v6536_v33 }
 0x56f   :  { %5944 = vmatpush3.bf16.msra.mxu1 %v6536_v33  ;;  %v6553_v33 = vld [vmem:[#allocation2 + $0x330] sm:$0xff]  }
 0x570   :  { %5945 = vmatprep.subr.bf16.mxu1 %v6537_v34 }
 0x572   :  { %5914 = vmatmul.mubr.msk.bf16.gmra.mrb[20].mxu1 %vm193_vm0, %v7192_v44 }
 0x573   :  { %5917 = vmatprep.mubr.msk.bf16.mxu1 %vm193_vm0, %v7199_v45  ;;  %5946 = vmatpush3.bf16.msra.mxu1 %v6537_v34 }
 0x574   :  { %5947 = vmatprep.subr.bf16.mxu1 %v6538_v37 }
 0x577   :  { %5948 = vmatpush3.bf16.msra.mxu1 %v6538_v37 }
 0x578   :  { %5957 = vmatprep.subr.bf16.mxu1 %v6539_v38 }
 0x57a   :  { %5918 = vmatmul.mubr.msk.bf16.gmra.mrb[24].mxu1 %vm193_vm0, %v7206_v46 }
 0x57b   :  { %5921 = vmatprep.mubr.msk.bf16.mxu1 %vm193_vm0, %v7213_v47 }
 0x582   :  { %5922 = vmatmul.mubr.msk.bf16.gmra.mrb[28].mxu1 %vm193_vm0, %v7220_v48  ;;  %v6540_v48 = vld [vmem:[#allocation2 + $0x288] sm:$0xff]  }
 0x583   :  { %5925 = vmatprep.mubr.msk.bf16.mxu1 %vm193_vm0, %v7227_v49 }
 0x58a   :  { %5926 = vmatmul.mubr.msk.bf16.gmra.mrb[32].mxu1 %vm193_vm0, %v7234_v51 }
 0x58b   :  { %5929 = vmatprep.mubr.msk.bf16.mxu1 %vm193_vm0, %v7241_v57  ;;  %v6541_v57 = vld [vmem:[#allocation2 + $0x290] sm:$0xff]  }
 0x592   :  { %5930 = vmatmul.mubr.msk.bf16.gmra.mrb[36].mxu1 %vm193_vm0, %v7248_v58 }
 0x62d   :  { %v5903_v41 = vpop.f32.mrb[8].mxu1 }
 0x62e   :  { %v2330_v42 = vpop.f32.mrb[9].mxu1 }
 0x62f   :  { %v5904_v44 = vpop.f32.mrb[10].mxu1 }
 0x630   :  { %v2475_v45 = vpack.c.bf16 %v5904_v44, %v5903_v41  ;;  %v2333_v46 = vpop.f32.mrb[11].mxu1  ;;  %v6554_v44 = vld [vmem:[#allocation2 + $0x338] sm:$0xff]  }
 0x631   :  { %v2474_v47 = vpack.c.bf16 %v2333_v46, %v2330_v42  ;;  %v6556_v46 = vld [vmem:[#allocation2 + $0x348] sm:$0xff]  }
 0x633   :  { %5949 = vmatprep.mubr.bf16.mxu1 %v2474_v47  ;;  %v6557_v47 = vld [vmem:[#allocation2 + $0x350] sm:$0xff]  }
 0x634   :  { %5950 = vmatmul.mubr.bf16.vlgmr.msra.gmra.mrb[40].mxu1 %v2475_v45  ;;  %v6555_v45 = vld [vmem:[#allocation2 + $0x340] sm:$0xff]  }
 0x635   :  { %5958 = vmatpush3.bf16.msra.mxu1 %v6539_v38  ;;  %v5907_v49 = vpop.f32.mrb[12].mxu1 }
 0x636   :  { %v2346_v51 = vpop.f32.mrb[13].mxu1  ;;  %5959 = vmatprep.subr.bf16.mxu1 %v6540_v48 }
 0x637   :  { %v5908_v58 = vpop.f32.mrb[14].mxu1 }
 0x638   :  { %v2477_v23 = vpack.c.bf16 %v5908_v58, %v5907_v49  ;;  %v2349_v4 = vpop.f32.mrb[15].mxu1  ;;  %v6559_v49 = vld [vmem:[#allocation2 + $0x360] sm:$0xff]   ;;  %v6562_v58 = vld [vmem:[#allocation2 + $0x378] sm:$0xff]  }
 0x639   :  { %v2476_v20 = vpack.c.bf16 %v2349_v4, %v2346_v51  ;;  %5960 = vmatpush3.bf16.msra.mxu1 %v6540_v48  ;;  %v6558_v48 = vld [vmem:[#allocation2 + $0x358] sm:$0xff]   ;;  %v6560_v51 = vld [vmem:[#allocation2 + $0x368] sm:$0xff]  }
 0x63a   :  { %5961 = vmatprep.subr.bf16.mxu1 %v6541_v57  ;;  %v6564_v4 = vld [vmem:[#allocation2 + $0x388] sm:$0xff]  }
 0x63b   :  { %5953 = vmatprep.mubr.bf16.mxu1 %v2476_v20  ;;  %v6565_v20 = vld [vmem:[#allocation2 + $0x390] sm:$0xff]  }
 0x63c   :  { %5954 = vmatmul.mubr.bf16.gmra.mrb[44].mxu1 %v2477_v23  ;;  %v6563_v23 = vld [vmem:[#allocation2 + $0x380] sm:$0xff]  }
 0x63d   :  { %5962 = vmatpush3.bf16.msra.mxu1 %v6541_v57  ;;  %5973 = vmatprep.mubr.bf16.mxu1 %v7382_v54  ;;  %v7432_v36 = vpop.f32.mrb[16].mxu1  ;;  %v6561_v57 = vld [vmem:[#allocation2 + $0x370] sm:$0xff]  }
 0x63e   :  { %5963 = vmatprep.subr.bf16.mxu1 %v6542_v2  ;;  %v2362_v25 = vpop.f32.mrb[17].mxu1 }
 0x63f   :  { %v7434_v17 = vpop.f32.mrb[18].mxu1 }
 0x640   :  { %v2722_v63 = vpack.c.bf16 %v7434_v17, %v7432_v36  ;;  %v2365_v35 = vpop.f32.mrb[19].mxu1  ;;  %v6567_v36 = vld [vmem:[#allocation2 + $0x3a0] sm:$0xff]   ;;  %v6570_v17 = vld [vmem:[#allocation2 + $0x3b8] sm:$0xff]  }
 0x641   :  { %5964 = vmatpush3.bf16.msra.mxu1 %v6542_v2  ;;  %v2721_v40 = vpack.c.bf16 %v2365_v35, %v2362_v25  ;;  %v6566_v2 = vld [vmem:[#allocation2 + $0x398] sm:$0xff]   ;;  %v6569_v25 = vld [vmem:[#allocation2 + $0x3b0] sm:$0xff]  }
 0x642   :  { %5965 = vmatprep.subr.bf16.mxu1 %v6543_v56 }
 0x645   :  { %5966 = vmatpush3.bf16.msra.mxu1 %v6543_v56  ;;  %v7438_v62 = vpop.f32.mrb[20].mxu1  ;;  %v6568_v56 = vld [vmem:[#allocation2 + $0x3a8] sm:$0xff]  }
 0x646   :  { %5967 = vmatprep.subr.bf16.mxu1 %v6544_v43  ;;  %v7440_v6 = vpop.f32.mrb[21].mxu1 }
 0x647   :  { %v7442_v39 = vpop.f32.mrb[22].mxu1 }
 0x648   :  { %v2724_v16 = vpack.c.bf16 %v7442_v39, %v7438_v62  ;;  %v7446_v7 = vpop.f32.mrb[23].mxu1 }
 0x649   :  { %5968 = vmatpush3.bf16.msra.mxu1 %v6544_v43  ;;  %v2723_v52 = vpack.c.bf16 %v7446_v7, %v7440_v6 }
 0x64a   :  { %5969 = vmatprep.subr.bf16.mxu1 %v6545_v1 }
 0x64d   :  { %5970 = vmatpush3.bf16.msra.mxu1 %v6545_v1  ;;  %v7450_v10 = vpop.f32.mrb[24].mxu1 }
 0x64e   :  { %5971 = vmatprep.subr.bf16.mxu1 %v6546_v8  ;;  %v7452_v13 = vpop.f32.mrb[25].mxu1 }
 0x64f   :  { %v7454_v14 = vpop.f32.mrb[26].mxu1 }
 0x650   :  { %v2864_v54 = vpack.c.bf16 %v7454_v14, %v7450_v10  ;;  %v2397_v0 = vpop.f32.mrb[27].mxu1 }
 0x651   :  { %5972 = vmatpush3.bf16.msra.mxu1 %v6546_v8  ;;  %v2863_v28 = vpack.c.bf16 %v2397_v0, %v7452_v13 }
 0x652   :  { %5981 = vmatprep.subr.bf16.mxu1 %v6547_v11 }
 0x654   :  { %5974 = vmatmul.mubr.bf16.vlgmr.msra.gmra.mrb[40].mxu1 %v7387_v29 }
 0x655   :  { %5977 = vmatprep.mubr.bf16.mxu1 %v7392_v24  ;;  %5982 = vmatpush3.bf16.msra.mxu1 %v6547_v11  ;;  %v7461_v15 = vpop.f32.mrb[28].mxu1  ;;  %v6551_v24 = vld [vmem:[#allocation2 + $0x320] sm:$0xff]  }
 0x656   :  { %5983 = vmatprep.subr.bf16.mxu1 %v6548_v32  ;;  %v7463_v18 = vpop.f32.mrb[29].mxu1 }
 0x657   :  { %v7465_v9 = vpop.f32.mrb[30].mxu1 }
 0x658   :  { %v2866_v22 = vpack.c.bf16 %v7465_v9, %v7461_v15  ;;  %v7469_v31 = vpop.f32.mrb[31].mxu1 }
 0x659   :  { %5984 = vmatpush3.bf16.msra.mxu1 %v6548_v32  ;;  %v2865_v29 = vpack.c.bf16 %v7469_v31, %v7463_v18 }
 0x65a   :  { %5985 = vmatprep.subr.bf16.mxu1 %v6549_v12 }
 0x65c   :  { %5978 = vmatmul.mubr.bf16.gmra.mrb[44].mxu1 %v7394_v5 }
 0x65d   :  { %5986 = vmatpush3.bf16.msra.mxu1 %v6549_v12  ;;  %5997 = vmatprep.mubr.bf16.mxu1 %v2721_v40  ;;  %v7474_v26 = vpop.f32.mrb[32].mxu1 }
 0x65e   :  { %5987 = vmatprep.subr.bf16.mxu1 %v6550_v19  ;;  %v7476_v27 = vpop.f32.mrb[33].mxu1 }
 0x65f   :  { %v7478_v59 = vpop.f32.mrb[34].mxu1 }
 0x660   :  { %v3006_v3 = vpack.c.bf16 %v7478_v59, %v7474_v26  ;;  %v2429_v30 = vpop.f32.mrb[35].mxu1 }
 0x661   :  { %5988 = vmatpush3.bf16.msra.mxu1 %v6550_v19  ;;  %v3005_v60 = vpack.c.bf16 %v2429_v30, %v7476_v27 }
 0x662   :  { %5989 = vmatprep.subr.bf16.mxu1 %v6551_v24 }
 0x665   :  { %5990 = vmatpush3.bf16.msra.mxu1 %v6551_v24  ;;  %v7483_v5 = vpop.f32.mrb[36].mxu1 }
 0x666   :  { %5991 = vmatprep.subr.bf16.mxu1 %v6552_v21  ;;  %v7485_v34 = vpop.f32.mrb[37].mxu1 }
 0x667   :  { %v7487_v37 = vpop.f32.mrb[38].mxu1 }
 0x668   :  { %v3008_v38 = vpack.c.bf16 %v7487_v37, %v7483_v5  ;;  %v7491_v41 = vpop.f32.mrb[39].mxu1 }
 0x669   :  { %5992 = vmatpush3.bf16.msra.mxu1 %v6552_v21  ;;  %v3007_v42 = vpack.c.bf16 %v7491_v41, %v7485_v34 }
 0x66a   :  { %5993 = vmatprep.subr.bf16.mxu1 %v6553_v33 }
 0x66d   :  { %5994 = vmatpush3.bf16.msra.mxu1 %v6553_v33 }
 0x66e   :  { %5995 = vmatprep.subr.bf16.mxu1 %v6554_v44 }
 0x671   :  { %5996 = vmatpush3.bf16.msra.mxu1 %v6554_v44 }
 0x672   :  { %6005 = vmatprep.subr.bf16.mxu1 %v6555_v45 }
 0x674   :  { %5998 = vmatmul.mubr.bf16.vlgmr.msra.gmra.mrb[40].mxu1 %v2722_v63  ;;  %v7519_v63 = vld [vmem:[%s7951_s4 + $0x10] sm:$0xff] }
 0x675   :  { %6006 = vmatpush3.bf16.msra.mxu1 %v6555_v45  ;;  %6001 = vmatprep.mubr.bf16.mxu1 %v2723_v52  ;;  %v3152_v35 = vrot.slane %v7519_v63, %v7071_v55 }
 0x676   :  { %6007 = vmatprep.subr.bf16.mxu1 %v6556_v46 }
 0x679   :  { %6008 = vmatpush3.bf16.msra.mxu1 %v6556_v46 }
 0x67a   :  { %6009 = vmatprep.subr.bf16.mxu1 %v6557_v47 }
 0x67c   :  { %6002 = vmatmul.mubr.bf16.gmra.mrb[44].mxu1 %v2724_v16 }
 0x67d   :  { %6010 = vmatpush3.bf16.msra.mxu1 %v6557_v47  ;;  %6021 = vmatprep.mubr.bf16.mxu1 %v2863_v28 }
 0x67e   :  { %6011 = vmatprep.subr.bf16.mxu1 %v6558_v48 }
 0x681   :  { %6012 = vmatpush3.bf16.msra.mxu1 %v6558_v48 }
 0x682   :  { %6013 = vmatprep.subr.bf16.mxu1 %v6559_v49 }
 0x685   :  { %6014 = vmatpush3.bf16.msra.mxu1 %v6559_v49 }
 0x686   :  { %6015 = vmatprep.subr.bf16.mxu1 %v6560_v51 }
 0x689   :  { %6016 = vmatpush3.bf16.msra.mxu1 %v6560_v51 }
 0x68a   :  { %6017 = vmatprep.subr.bf16.mxu1 %v6561_v57 }
 0x68d   :  { %6018 = vmatpush3.bf16.msra.mxu1 %v6561_v57 }
 0x68e   :  { %6019 = vmatprep.subr.bf16.mxu1 %v6562_v58 }
 0x691   :  { %6020 = vmatpush3.bf16.msra.mxu1 %v6562_v58 }
 0x692   :  { %6029 = vmatprep.subr.bf16.mxu1 %v6563_v23 }
 0x694   :  { %6022 = vmatmul.mubr.bf16.vlgmr.msra.gmra.mrb[40].mxu1 %v2864_v54 }
 0x695   :  { %6030 = vmatpush3.bf16.msra.mxu1 %v6563_v23  ;;  %6025 = vmatprep.mubr.bf16.mxu1 %v2865_v29 }
 0x696   :  { %6031 = vmatprep.subr.bf16.mxu1 %v6564_v4 }
 0x699   :  { %6032 = vmatpush3.bf16.msra.mxu1 %v6564_v4 }
 0x69a   :  { %6033 = vmatprep.subr.bf16.mxu1 %v6565_v20 }
 0x69c   :  { %6026 = vmatmul.mubr.bf16.gmra.mrb[44].mxu1 %v2866_v22 }
 0x69d   :  { %6034 = vmatpush3.bf16.msra.mxu1 %v6565_v20  ;;  %6045 = vmatprep.mubr.bf16.mxu1 %v3005_v60 }
 0x69e   :  { %6035 = vmatprep.subr.bf16.mxu1 %v6566_v2 }
 0x6a1   :  { %6036 = vmatpush3.bf16.msra.mxu1 %v6566_v2 }
 0x6a2   :  { %6037 = vmatprep.subr.bf16.mxu1 %v6567_v36 }
 0x6a5   :  { %6038 = vmatpush3.bf16.msra.mxu1 %v6567_v36 }
 0x6a6   :  { %6039 = vmatprep.subr.bf16.mxu1 %v6568_v56 }
 0x6a9   :  { %6040 = vmatpush3.bf16.msra.mxu1 %v6568_v56 }
 0x6aa   :  { %6041 = vmatprep.subr.bf16.mxu1 %v6569_v25 }
 0x6ad   :  { %6042 = vmatpush3.bf16.msra.mxu1 %v6569_v25 }
 0x6ae   :  { %6043 = vmatprep.subr.bf16.mxu1 %v6570_v17 }
 0x6b1   :  { %6044 = vmatpush3.bf16.msra.mxu1 %v6570_v17 }
 0x6b4   :  { %6046 = vmatmul.mubr.bf16.vlgmr.msra.gmra.mrb[40].mxu1 %v3006_v3 }
 0x6b5   :  { %6049 = vmatprep.mubr.bf16.mxu1 %v3007_v42 }
 0x6bc   :  { %6050 = vmatmul.mubr.bf16.gmra.mrb[44].mxu1 %v3008_v38 }
 0x787   :  { %v6047_v40 = vpop.f32.mrb[40].mxu1 }
 0x788   :  { %v3108_v43 = vpop.f32.mrb[41].mxu1  ;;  %v3155_v39 = vadd.f32 %v6047_v40, %v3152_v35 }
 0x789   :  { %v3153_v62 = vadd.f32 %v3152_v35, %v3108_v43  ;;  %v6048_v1 = vpop.f32.mrb[42].mxu1 }
 0x78a   :  { %v3111_v6 = vpop.f32.mrb[43].mxu1  ;;  %v3156_v52 = vadd.f32 %v6048_v1, %v3152_v35  ;;  %v3185_v11 = vmul.f32 %v3155_v39, %v3155_v39 }
 0x78b   :  { %v3154_v16 = vadd.f32 %v3152_v35, %v3111_v6  ;;  %v3183_v7 = vmul.f32 %v3153_v62, %v3153_v62 }
 0x78c   :  { %v3186_v28 = vmul.f32 %v3156_v52, %v3156_v52 }
 0x78d   :  { %v3169_v8 = vadd.f32 %v3154_v16, %v3153_v62  ;;  %v3184_v10 = vmul.f32 %v3154_v16, %v3154_v16 }
 0x78f   :  { %v3170_v13 = vadd.f32 %v3169_v8, %v3155_v39  ;;  %v3191_v14 = vadd.f32 %v3184_v10, %v3183_v7  ;;  %v6051_v54 = vpop.f32.mrb[44].mxu1 }
 0x790   :  { %v3124_v0 = vpop.f32.mrb[45].mxu1  ;;  %v3159_v9 = vadd.f32 %v6051_v54, %v3152_v35 }
 0x791   :  { %v3192_v32 = vadd.f32 %v3191_v14, %v3185_v11  ;;  %v3157_v15 = vadd.f32 %v3152_v35, %v3124_v0  ;;  %v3171_v12 = vadd.f32 %v3170_v13, %v3156_v52  ;;  %v6052_v18 = vpop.f32.mrb[46].mxu1 }
 0x792   :  { %v3127_v22 = vpop.f32.mrb[47].mxu1  ;;  %v3160_v27 = vadd.f32 %v6052_v18, %v3152_v35  ;;  %v3189_v30 = vmul.f32 %v3159_v9, %v3159_v9 }
 0x793   :  { %v3172_v31 = vadd.f32 %v3171_v12, %v3157_v15  ;;  %v3187_v29 = vmul.f32 %v3157_v15, %v3157_v15  ;;  %v3193_v19 = vadd.f32 %v3192_v32, %v3186_v28  ;;  %v3158_v26 = vadd.f32 %v3152_v35, %v3127_v22 }
 0x794   :  { %v3190_v5 = vmul.f32 %v3160_v27, %v3160_v27 }
 0x795   :  { %v3194_v24 = vadd.f32 %v3193_v19, %v3187_v29  ;;  %v3173_v59 = vadd.f32 %v3172_v31, %v3158_v26  ;;  %v3188_v3 = vmul.f32 %v3158_v26, %v3158_v26 }
 0x797   :  { %v3174_v60 = vadd.f32 %v3173_v59, %v3159_v9  ;;  %v3195_v21 = vadd.f32 %v3194_v24, %v3188_v3 }
 0x799   :  { %v3175_v33 = vadd.f32 %v3174_v60, %v3160_v27  ;;  %v3196_v34 = vadd.f32 %v3195_v21, %v3189_v30 }
 0x79b   :  { %v3176_v37 = vrot.slane %v3175_v33, 4  ;;  %v3197_v38 = vadd.f32 %v3196_v34, %v3190_v5 }
 0x79d   :  { %v3177_v41 = vadd.f32 %v3176_v37, %v3175_v33  ;;  %v3198_v42 = vrot.slane %v3197_v38, 4 }
 0x79f   :  { %v3178_v44 = vrot.slane %v3177_v41, 2  ;;  %v3199_v45 = vadd.f32 %v3198_v42, %v3197_v38 }
 0x7a1   :  { %v3179_v46 = vadd.f32 %v3178_v44, %v3177_v41  ;;  %v3200_v47 = vrot.slane %v3199_v45, 2 }
 0x7a3   :  { %v3180_v48 = vrot.slane %v3179_v46, 1  ;;  %v3201_v49 = vadd.f32 %v3200_v47, %v3199_v45 }
 0x7a5   :  { %v3181_v51 = vadd.f32 %v3180_v48, %v3179_v46  ;;  %v3202_v57 = vrot.slane %v3201_v49, 1 }
 0x7a7   :  { %v3182_v58 = vmul.f32 0.015625, %v3181_v51  ;;  %v3203_v23 = vadd.f32 %v3202_v57, %v3201_v49 }
 0x7a9   :  { %v3204_v4 = vmul.f32 0.015625, %v3203_v23  ;;  %v3205_v20 = vmul.f32 %v3182_v58, %v3182_v58 }
 0x7ab   :  { %v3206_v2 = vsub.f32 %v3204_v4, %v3205_v20 }
 0x7ad   :  { %v3207_v36 = vmax.f32 %v3206_v2, 0.0 }
 0x7af   :  { %v3208_v56 = vadd.f32 1e-05, %v3207_v36 }
 0x7b1   :  { %6671 = vrsqrt.f32 %v3208_v56 }
 0x7bb   :  { %v6672_v25 = vpop.eup %6671 }
 0x7bc   :  { %v3210_v17 = vmul.f32 %v6672_v25, %v7519_v63 }
 0x7be   :  { %v3211_v35 = vmul.f32 %v3210_v17, %v3182_v58  ;;  %v3219_v40 = vrot.slane %v3210_v17, %v7086_v50 }
 0x7c0   :  { %v3213_v43 = vrot.slane %v3211_v35, 7  ;;  %v3225_v1 = vmul.f32 %v3219_v40, %v3158_v26  ;;  %v3220_v6 = vmul.f32 %v3219_v40, %v3153_v62  ;;  %v3221_v7 = vmul.f32 %v3219_v40, %v3154_v16 }
 0x7c1   :  { %v3222_v8 = vmul.f32 %v3219_v40, %v3155_v39  ;;  %v3223_v10 = vmul.f32 %v3219_v40, %v3156_v52  ;;  %v3224_v11 = vmul.f32 %v3219_v40, %v3157_v15  ;;  %v3226_v13 = vmul.f32 %v3219_v40, %v3159_v9 }
 0x7c2   :  { %v3215_v14 = vsub.f32 %v7519_v63, %v3213_v43  ;;  %v3227_v54 = vmul.f32 %v3219_v40, %v3160_v27 }
 0x7c4   :  { %v3231_v0 = vrot.slane %v3215_v14, %v7091_v61 }
 0x7c6   :  { %v7527_v28 = vadd.f32 %v3231_v0, %v3225_v1  ;;  %v3232_v32 = vadd.f32 %v3231_v0, %v3220_v6  ;;  %v3233_v12 = vadd.f32 %v3231_v0, %v3221_v7  ;;  %v3234_v18 = vadd.f32 %v3231_v0, %v3222_v8 }
 0x7c7   :  { %v7529_v22 = vadd.f32 %v3231_v0, %v3223_v10  ;;  %v7531_v31 = vadd.f32 %v3231_v0, %v3224_v11  ;;  %v7533_v62 = vadd.f32 %v3231_v0, %v3226_v13  ;;  %v7535_v39 = vadd.f32 %v3231_v0, %v3227_v54 }
 0x7c8   :  { %v3248_v16 = vmul.f32 0.044715, %v3232_v32  ;;  %v3249_v52 = vmul.f32 0.044715, %v3233_v12  ;;  %v3250_v15 = vmul.f32 0.044715, %v3234_v18 }
 0x7c9   :  { %v3251_v63 = vmul.f32 0.044715, %v7529_v22  ;;  %v3252_v24 = vmul.f32 0.044715, %v7531_v31  ;;  %v3253_v27 = vmul.f32 0.044715, %v7527_v28 }
 0x7ca   :  { %v3256_v9 = vmul.f32 %v3248_v16, %v3232_v32  ;;  %v3257_v29 = vmul.f32 %v3249_v52, %v3233_v12  ;;  %v3258_v19 = vmul.f32 %v3250_v15, %v3234_v18  ;;  %v3254_v37 = vmul.f32 0.044715, %v7533_v62 }
 0x7cb   :  { %v3259_v26 = vmul.f32 %v3251_v63, %v7529_v22  ;;  %v3260_v21 = vmul.f32 %v3252_v24, %v7531_v31  ;;  %v3261_v5 = vmul.f32 %v3253_v27, %v7527_v28  ;;  %v3255_v38 = vmul.f32 0.044715, %v7535_v39 }
 0x7cc   :  { %v3264_v59 = vmul.f32 %v3256_v9, %v3232_v32  ;;  %v3265_v3 = vmul.f32 %v3257_v29, %v3233_v12  ;;  %v3266_v30 = vmul.f32 %v3258_v19, %v3234_v18  ;;  %v3262_v48 = vmul.f32 %v3254_v37, %v7533_v62  ;;  %v6755_v37 = vld [vmem:[%s7948_s1 + $0x8] sm:$0xff]  }
 0x7cd   :  { %v3267_v60 = vmul.f32 %v3259_v26, %v7529_v22  ;;  %v3268_v44 = vmul.f32 %v3260_v21, %v7531_v31  ;;  %v3269_v45 = vmul.f32 %v3261_v5, %v7527_v28  ;;  %v3263_v49 = vmul.f32 %v3255_v38, %v7535_v39  ;;  %v6756_v38 = vld [vmem:[%s7948_s1 + $0x10] sm:$0xff]  }
 0x7ce   :  { %v3272_v33 = vadd.f32 %v3264_v59, %v3232_v32  ;;  %v3273_v34 = vadd.f32 %v3265_v3, %v3233_v12  ;;  %v3274_v41 = vadd.f32 %v3266_v30, %v3234_v18  ;;  %v3270_v4 = vmul.f32 %v3262_v48, %v7533_v62  ;;  %v6759_v48 = vld [vmem:[%s7948_s1 + $0x28] sm:$0xff]  }
 0x7cf   :  { %v3275_v42 = vadd.f32 %v3267_v60, %v7529_v22  ;;  %v3276_v58 = vadd.f32 %v3268_v44, %v7531_v31  ;;  %v3277_v23 = vadd.f32 %v3269_v45, %v7527_v28  ;;  %v3271_v20 = vmul.f32 %v3263_v49, %v7535_v39  ;;  %v6757_v44 = vld [vmem:[%s7948_s1 + $0x18] sm:$0xff]   ;;  %v6758_v45 = vld [vmem:[%s7948_s1 + $0x20] sm:$0xff]   ;;  %v6760_v49 = vld [vmem:[%s7948_s1 + $0x30] sm:$0xff]  }
 0x7d0   :  { %v3280_v46 = vmul.f32 0.7978846, %v3272_v33  ;;  %v3281_v47 = vmul.f32 0.7978846, %v3273_v34  ;;  %v3282_v51 = vmul.f32 0.7978846, %v3274_v41  ;;  %v3278_v56 = vadd.f32 %v3270_v4, %v7533_v62 }
 0x7d1   :  { %v3283_v57 = vmul.f32 0.7978846, %v3275_v42  ;;  %v3284_v2 = vmul.f32 0.7978846, %v3276_v58  ;;  %v3285_v36 = vmul.f32 0.7978846, %v3277_v23  ;;  %v3279_v25 = vadd.f32 %v3271_v20, %v7535_v39 }
 0x7d2   :  { %6673 = vtanh.f32 %v3280_v46  ;;  %v3286_v17 = vmul.f32 0.7978846, %v3278_v56  ;;  %v3240_v1 = vmul.f32 0.5, %v3232_v32  ;;  %v3241_v8 = vmul.f32 0.5, %v3233_v12  ;;  %v6573_v41 = vld [vmem:[#allocation2 + $0x410] sm:$0xff]   ;;  %v6574_v42 = vld [vmem:[#allocation2 + $0x418] sm:$0xff]  }
 0x7d3   :  { %6675 = vtanh.f32 %v3281_v47  ;;  %v3287_v35 = vmul.f32 0.7978846, %v3279_v25  ;;  %v3242_v14 = vmul.f32 0.5, %v3234_v18  ;;  %v3243_v52 = vmul.f32 0.5, %v7529_v22  ;;  %v6575_v46 = vld [vmem:[#allocation2 + $0x420] sm:$0xff]   ;;  %v6576_v47 = vld [vmem:[#allocation2 + $0x428] sm:$0xff]  }
 0x7d4   :  { %6677 = vtanh.f32 %v3282_v51  ;;  %v3244_v29 = vmul.f32 0.5, %v7531_v31  ;;  %v3245_v12 = vmul.f32 0.5, %v7527_v28  ;;  %v3246_v3 = vmul.f32 0.5, %v7533_v62  ;;  %v6571_v62 = vld [vmem:[#allocation2 + $0x400] sm:$0xff]   ;;  %v6577_v51 = vld [vmem:[#allocation2 + $0x430] sm:$0xff]   ;;  %v6763_v23 = vld [vmem:[%s7948_s1 + $0x48] sm:$0xff]  }
 0x7d5   :  { %6679 = vtanh.f32 %v3283_v57  ;;  %v3247_v31 = vmul.f32 0.5, %v7535_v39  ;;  %v6572_v39 = vld [vmem:[#allocation2 + $0x408] sm:$0xff]   ;;  %v6761_v57 = vld [vmem:[%s7948_s1 + $0x38] sm:$0xff]   ;;  %v6762_v58 = vld [vmem:[%s7948_s1 + $0x40] sm:$0xff]  }
 0x7d6   :  { %6681 = vtanh.f32 %v3284_v2  ;;  %v6764_v4 = vld [vmem:[%s7948_s1 + $0x50] sm:$0xff]   ;;  %v6765_v20 = vld [vmem:[%s7948_s1 + $0x58] sm:$0xff]   ;;  %v6766_v2 = vld [vmem:[%s7948_s1 + $0x60] sm:$0xff]  }
 0x7d7   :  { %6683 = vtanh.f32 %v3285_v36  ;;  %v6767_v36 = vld [vmem:[%s7948_s1 + $0x68] sm:$0xff]   ;;  %v6768_v56 = vld [vmem:[%s7948_s1 + $0x70] sm:$0xff]   ;;  %v6769_v25 = vld [vmem:[%s7948_s1 + $0x78] sm:$0xff]  }
 0x7d8   :  { %6685 = vtanh.f32 %v3286_v17  ;;  %v6578_v17 = vld [vmem:[#allocation2 + $0x438] sm:$0xff]  }
 0x7d9   :  { %6687 = vtanh.f32 %v3287_v35  ;;  %v6579_v35 = vld [vmem:[#allocation2 + $0x3c0] sm:$0xff]  }
 0x7dc   :  { %v6674_v40 = vpop.eup %6673 }
 0x7dd   :  { %v6676_v43 = vpop.eup %6675  ;;  %v3296_v6 = vadd.f32 1.0, %v6674_v40 }
 0x7de   :  { %v6678_v7 = vpop.eup %6677  ;;  %v3297_v10 = vadd.f32 1.0, %v6676_v43 }
 0x7df   :  { %v6680_v11 = vpop.eup %6679  ;;  %v3304_v13 = vmul.f32 %v3296_v6, %v3240_v1  ;;  %v3298_v54 = vadd.f32 1.0, %v6678_v7 }
 0x7e0   :  { %v6682_v0 = vpop.eup %6681  ;;  %v3305_v16 = vmul.f32 %v3297_v10, %v3241_v8  ;;  %v3299_v15 = vadd.f32 1.0, %v6680_v11  ;;  %v6580_v10 = vld [vmem:[#allocation2 + $0x3c8] sm:$0xff]  }
 0x7e1   :  { %v6684_v63 = vpop.eup %6683  ;;  %v3306_v9 = vmul.f32 %v3298_v54, %v3242_v14  ;;  %v3300_v19 = vadd.f32 1.0, %v6682_v0  ;;  %v6581_v14 = vld [vmem:[#allocation2 + $0x3d0] sm:$0xff]  }
 0x7e2   :  { %v6686_v26 = vpop.eup %6685  ;;  %v7559_v32 = vpack.c.bf16 %v3305_v16, %v3304_v13  ;;  %v3307_v24 = vmul.f32 %v3299_v15, %v3243_v52  ;;  %v3301_v27 = vadd.f32 1.0, %v6684_v63  ;;  %v6582_v15 = vld [vmem:[#allocation2 + $0x3d8] sm:$0xff]  }
 0x7e3   :  { %v6688_v59 = vpop.eup %6687  ;;  %v3308_v18 = vmul.f32 %v3300_v19, %v3244_v29  ;;  %v3302_v30 = vadd.f32 1.0, %v6686_v26 }
 0x7e4   :  { %6053 = vmatprep.subr.bf16.mxu0 %v7559_v32  ;;  %v7564_v22 = vpack.c.bf16 %v3307_v24, %v3306_v9  ;;  %v3309_v60 = vmul.f32 %v3301_v27, %v3245_v12  ;;  %v3303_v21 = vadd.f32 1.0, %v6688_v59  ;;  %v6583_v9 = vld [vmem:[#allocation2 + $0x3e0] sm:$0xff]   ;;  %v6584_v27 = vld [vmem:[#allocation2 + $0x3e8] sm:$0xff]  }
 0x7e5   :  { %6054 = vmatpush3.bf16.msra.mxu0 %v7559_v32  ;;  %v3310_v5 = vmul.f32 %v3302_v30, %v3246_v3 }
 0x7e6   :  { %6055 = vmatprep.subr.bf16.mxu0 %v7564_v22  ;;  %v7569_v28 = vpack.c.bf16 %v3309_v60, %v3308_v18  ;;  %v3311_v33 = vmul.f32 %v3303_v21, %v3247_v31  ;;  %v6586_v21 = vld [vmem:[#allocation2 + $0x3f8] sm:$0xff]  }
 0x7e8   :  { %v7571_v34 = vpack.c.bf16 %v3311_v33, %v3310_v5  ;;  %v6587_v33 = vld [vmem:[#allocation2 + $0x440] sm:$0xff]  }
 0x7e9   :  { %6056 = vmatpush3.bf16.msra.mxu0 %v7564_v22 }
 0x7ea   :  { %6057 = vmatprep.subr.bf16.mxu0 %v7569_v28 }
 0x7ed   :  { %6058 = vmatpush3.bf16.msra.mxu0 %v7569_v28 }
 0x7ee   :  { %6059 = vmatprep.subr.bf16.mxu0 %v7571_v34 }
 0x7f1   :  { %6060 = vmatpush3.bf16.msra.mxu0 %v7571_v34 }
 0x7f2   :  { %6093 = vmatprep.subr.bf16.mxu0 %v6571_v62 }
 0x7f4   :  { %6062 = vmatmul.mubr.msk.bf16.vlgmr.msra.gmra.mrb[72].mxu0 %vm193_vm0, %v6755_v37 }
 0x7f5   :  { %6065 = vmatprep.mubr.msk.bf16.mxu0 %vm193_vm0, %v6756_v38  ;;  %6094 = vmatpush3.bf16.msra.mxu0 %v6571_v62 }
 0x7f6   :  { %6095 = vmatprep.subr.bf16.mxu0 %v6572_v39 }
 0x7f9   :  { %6096 = vmatpush3.bf16.msra.mxu0 %v6572_v39 }
 0x7fa   :  { %6097 = vmatprep.subr.bf16.mxu0 %v6573_v41 }
 0x7fc   :  { %6066 = vmatmul.mubr.msk.bf16.gmra.mrb[76].mxu0 %vm193_vm0, %v6757_v44 }
 0x7fd   :  { %6069 = vmatprep.mubr.msk.bf16.mxu0 %vm193_vm0, %v6758_v45  ;;  %6098 = vmatpush3.bf16.msra.mxu0 %v6573_v41  ;;  %v6589_v45 = vld [vmem:[#allocation2 + $0x450] sm:$0xff]  }
 0x7fe   :  { %6099 = vmatprep.subr.bf16.mxu0 %v6574_v42 }
 0x801   :  { %6100 = vmatpush3.bf16.msra.mxu0 %v6574_v42  ;;  %v6588_v42 = vld [vmem:[#allocation2 + $0x448] sm:$0xff]  }
 0x802   :  { %6101 = vmatprep.subr.bf16.mxu0 %v6575_v46 }
 0x804   :  { %6070 = vmatmul.mubr.msk.bf16.gmra.mrb[80].mxu0 %vm193_vm0, %v6759_v48 }
 0x805   :  { %6073 = vmatprep.mubr.msk.bf16.mxu0 %vm193_vm0, %v6760_v49  ;;  %6102 = vmatpush3.bf16.msra.mxu0 %v6575_v46 }
 0x806   :  { %6103 = vmatprep.subr.bf16.mxu0 %v6576_v47 }
 0x809   :  { %6104 = vmatpush3.bf16.msra.mxu0 %v6576_v47 }
 0x80a   :  { %6105 = vmatprep.subr.bf16.mxu0 %v6577_v51 }
 0x80c   :  { %6074 = vmatmul.mubr.msk.bf16.gmra.mrb[84].mxu0 %vm193_vm0, %v6761_v57  ;;  %v6591_v57 = vld [vmem:[#allocation2 + $0x460] sm:$0xff]  }
 0x80d   :  { %6077 = vmatprep.mubr.msk.bf16.mxu0 %vm193_vm0, %v6762_v58  ;;  %6106 = vmatpush3.bf16.msra.mxu0 %v6577_v51 }
 0x80e   :  { %6107 = vmatprep.subr.bf16.mxu0 %v6578_v17 }
 0x811   :  { %6108 = vmatpush3.bf16.msra.mxu0 %v6578_v17 }
 0x812   :  { %6117 = vmatprep.subr.bf16.mxu0 %v6579_v35 }
 0x814   :  { %6078 = vmatmul.mubr.msk.bf16.gmra.mrb[88].mxu0 %vm193_vm0, %v6763_v23 }
 0x815   :  { %6081 = vmatprep.mubr.msk.bf16.mxu0 %vm193_vm0, %v6764_v4 }
 0x81c   :  { %6082 = vmatmul.mubr.msk.bf16.gmra.mrb[92].mxu0 %vm193_vm0, %v6765_v20 }
 0x81d   :  { %6085 = vmatprep.mubr.msk.bf16.mxu0 %vm193_vm0, %v6766_v2 }
 0x824   :  { %6086 = vmatmul.mubr.msk.bf16.gmra.mrb[96].mxu0 %vm193_vm0, %v6767_v36  ;;  %v6592_v36 = vld [vmem:[#allocation2 + $0x468] sm:$0xff]  }
 0x825   :  { %6089 = vmatprep.mubr.msk.bf16.mxu0 %vm193_vm0, %v6768_v56  ;;  %v6593_v56 = vld [vmem:[#allocation2 + $0x470] sm:$0xff]  }
 0x82c   :  { %6090 = vmatmul.mubr.msk.bf16.gmra.mrb[100].mxu0 %vm193_vm0, %v6769_v25 }
 0x8c7   :  { %v6063_v40 = vpop.f32.mrb[72].mxu0 }
 0x8c8   :  { %v3358_v43 = vpop.f32.mrb[73].mxu0 }
 0x8c9   :  { %v6064_v1 = vpop.f32.mrb[74].mxu0 }
 0x8ca   :  { %v3503_v6 = vpack.c.bf16 %v6064_v1, %v6063_v40  ;;  %v3361_v7 = vpop.f32.mrb[75].mxu0  ;;  %v6594_v1 = vld [vmem:[#allocation2 + $0x478] sm:$0xff]  }
 0x8cb   :  { %v3502_v8 = vpack.c.bf16 %v3361_v7, %v3358_v43  ;;  %v6596_v7 = vld [vmem:[#allocation2 + $0x488] sm:$0xff]  }
 0x8cd   :  { %6109 = vmatprep.mubr.bf16.mxu0 %v3502_v8  ;;  %v6597_v8 = vld [vmem:[#allocation2 + $0x490] sm:$0xff]  }
 0x8ce   :  { %6110 = vmatmul.mubr.bf16.vlgmr.msra.gmra.mrb[104].mxu0 %v3503_v6  ;;  %v6595_v6 = vld [vmem:[#allocation2 + $0x480] sm:$0xff]  }
 0x8cf   :  { %6118 = vmatpush3.bf16.msra.mxu0 %v6579_v35  ;;  %v6067_v11 = vpop.f32.mrb[76].mxu0 }
 0x8d0   :  { %v3374_v13 = vpop.f32.mrb[77].mxu0  ;;  %6119 = vmatprep.subr.bf16.mxu0 %v6580_v10 }
 0x8d1   :  { %v6068_v54 = vpop.f32.mrb[78].mxu0 }
 0x8d2   :  { %v3505_v0 = vpack.c.bf16 %v6068_v54, %v6067_v11  ;;  %v3377_v16 = vpop.f32.mrb[79].mxu0  ;;  %v6599_v11 = vld [vmem:[#allocation2 + $0x4a0] sm:$0xff]   ;;  %v6602_v54 = vld [vmem:[#allocation2 + $0x4b8] sm:$0xff]  }
 0x8d3   :  { %v3504_v52 = vpack.c.bf16 %v3377_v16, %v3374_v13  ;;  %6120 = vmatpush3.bf16.msra.mxu0 %v6580_v10  ;;  %v6598_v10 = vld [vmem:[#allocation2 + $0x498] sm:$0xff]   ;;  %v6600_v13 = vld [vmem:[#allocation2 + $0x4a8] sm:$0xff]  }
 0x8d4   :  { %6121 = vmatprep.subr.bf16.mxu0 %v6581_v14  ;;  %v6604_v16 = vld [vmem:[#allocation2 + $0x4c8] sm:$0xff]  }
 0x8d5   :  { %6113 = vmatprep.mubr.bf16.mxu0 %v3504_v52  ;;  %v6605_v52 = vld [vmem:[#allocation2 + $0x4d0] sm:$0xff]  }
 0x8d6   :  { %6114 = vmatmul.mubr.bf16.gmra.mrb[108].mxu0 %v3505_v0  ;;  %v6603_v0 = vld [vmem:[#allocation2 + $0x4c0] sm:$0xff]  }
 0x8d7   :  { %6122 = vmatpush3.bf16.msra.mxu0 %v6581_v14  ;;  %6133 = vmatprep.mubr.bf16.mxu0 %v7559_v32  ;;  %v7639_v63 = vpop.f32.mrb[80].mxu0  ;;  %v6585_v32 = vld [vmem:[#allocation2 + $0x3f0] sm:$0xff]  }
 0x8d8   :  { %6123 = vmatprep.subr.bf16.mxu0 %v6582_v15  ;;  %v3390_v29 = vpop.f32.mrb[81].mxu0  ;;  %v6601_v14 = vld [vmem:[#allocation2 + $0x4b0] sm:$0xff]  }
 0x8d9   :  { %v7641_v19 = vpop.f32.mrb[82].mxu0 }
 0x8da   :  { %v3750_v26 = vpack.c.bf16 %v7641_v19, %v7639_v63  ;;  %v3393_v24 = vpop.f32.mrb[83].mxu0  ;;  %v6607_v63 = vld [vmem:[#allocation2 + $0x4e0] sm:$0xff]   ;;  %v6610_v19 = vld [vmem:[#allocation2 + $0x4f8] sm:$0xff]  }
 0x8db   :  { %6124 = vmatpush3.bf16.msra.mxu0 %v6582_v15  ;;  %v3749_v12 = vpack.c.bf16 %v3393_v24, %v3390_v29  ;;  %v6606_v15 = vld [vmem:[#allocation2 + $0x4d8] sm:$0xff]   ;;  %v6609_v29 = vld [vmem:[#allocation2 + $0x4f0] sm:$0xff]   ;;  %v6612_v24 = vld [vmem:[%s7950_s3 + $0x8] sm:$0xff]  }
 0x8dc   :  { %6125 = vmatprep.subr.bf16.mxu0 %v6583_v9 }
 0x8df   :  { %6126 = vmatpush3.bf16.msra.mxu0 %v6583_v9  ;;  %v7645_v59 = vpop.f32.mrb[84].mxu0  ;;  %v6608_v9 = vld [vmem:[#allocation2 + $0x4e8] sm:$0xff]  }
 0x8e0   :  { %6127 = vmatprep.subr.bf16.mxu0 %v6584_v27  ;;  %v7647_v18 = vpop.f32.mrb[85].mxu0 }
 0x8e1   :  { %v7649_v3 = vpop.f32.mrb[86].mxu0 }
 0x8e2   :  { %v3752_v30 = vpack.c.bf16 %v7649_v3, %v7645_v59  ;;  %v7653_v60 = vpop.f32.mrb[87].mxu0  ;;  %v6615_v59 = vld [vmem:[%s7950_s3 + $0x20] sm:$0xff]   ;;  %v6618_v3 = vld [vmem:[%s7950_s3 + $0x38] sm:$0xff]  }
 0x8e3   :  { %6128 = vmatpush3.bf16.msra.mxu0 %v6584_v27  ;;  %v3751_v31 = vpack.c.bf16 %v7653_v60, %v7647_v18  ;;  %v6614_v27 = vld [vmem:[%s7950_s3 + $0x18] sm:$0xff]   ;;  %v6617_v18 = vld [vmem:[%s7950_s3 + $0x30] sm:$0xff]  }
 0x8e4   :  { %6129 = vmatprep.subr.bf16.mxu0 %v6585_v32 }
 0x8e7   :  { %6130 = vmatpush3.bf16.msra.mxu0 %v6585_v32  ;;  %v7657_v5 = vpop.f32.mrb[88].mxu0  ;;  %v6616_v32 = vld [vmem:[%s7950_s3 + $0x28] sm:$0xff]  }
 0x8e8   :  { %6131 = vmatprep.subr.bf16.mxu0 %v6586_v21  ;;  %v7659_v62 = vpop.f32.mrb[89].mxu0 }
 0x8e9   :  { %v7661_v39 = vpop.f32.mrb[90].mxu0 }
 0x8ea   :  { %v3892_v37 = vpack.c.bf16 %v7661_v39, %v7657_v5  ;;  %v3425_v38 = vpop.f32.mrb[91].mxu0 }
 0x8eb   :  { %6132 = vmatpush3.bf16.msra.mxu0 %v6586_v21  ;;  %v3891_v41 = vpack.c.bf16 %v3425_v38, %v7659_v62 }
 0x8ec   :  { %6141 = vmatprep.subr.bf16.mxu0 %v6587_v33 }
 0x8ee   :  { %6134 = vmatmul.mubr.bf16.vlgmr.msra.gmra.mrb[104].mxu0 %v7564_v22 }
 0x8ef   :  { %6137 = vmatprep.mubr.bf16.mxu0 %v7569_v28  ;;  %6142 = vmatpush3.bf16.msra.mxu0 %v6587_v33  ;;  %v7668_v44 = vpop.f32.mrb[92].mxu0  ;;  %v6590_v28 = vld [vmem:[#allocation2 + $0x458] sm:$0xff]  }
 0x8f0   :  { %6143 = vmatprep.subr.bf16.mxu0 %v6588_v42  ;;  %v7670_v46 = vpop.f32.mrb[93].mxu0 }
 0x8f1   :  { %v7672_v47 = vpop.f32.mrb[94].mxu0 }
 0x8f2   :  { %v3894_v48 = vpack.c.bf16 %v7672_v47, %v7668_v44  ;;  %v7676_v49 = vpop.f32.mrb[95].mxu0 }
 0x8f3   :  { %6144 = vmatpush3.bf16.msra.mxu0 %v6588_v42  ;;  %v3893_v22 = vpack.c.bf16 %v7676_v49, %v7670_v46 }
 0x8f4   :  { %6145 = vmatprep.subr.bf16.mxu0 %v6589_v45 }
 0x8f6   :  { %6138 = vmatmul.mubr.bf16.gmra.mrb[108].mxu0 %v7571_v34 }
 0x8f7   :  { %6146 = vmatpush3.bf16.msra.mxu0 %v6589_v45  ;;  %6157 = vmatprep.mubr.bf16.mxu0 %v3749_v12  ;;  %v7681_v51 = vpop.f32.mrb[96].mxu0  ;;  %v6613_v12 = vld [vmem:[%s7950_s3 + $0x10] sm:$0xff]  }
 0x8f8   :  { %6147 = vmatprep.subr.bf16.mxu0 %v6590_v28  ;;  %v7683_v58 = vpop.f32.mrb[97].mxu0 }
 0x8f9   :  { %v7685_v23 = vpop.f32.mrb[98].mxu0 }
 0x8fa   :  { %v4034_v4 = vpack.c.bf16 %v7685_v23, %v7681_v51  ;;  %v3457_v20 = vpop.f32.mrb[99].mxu0 }
 0x8fb   :  { %6148 = vmatpush3.bf16.msra.mxu0 %v6590_v28  ;;  %v4033_v2 = vpack.c.bf16 %v3457_v20, %v7683_v58 }
 0x8fc   :  { %6149 = vmatprep.subr.bf16.mxu0 %v6591_v57 }
 0x8ff   :  { %6150 = vmatpush3.bf16.msra.mxu0 %v6591_v57  ;;  %v7690_v34 = vpop.f32.mrb[100].mxu0 }
 0x900   :  { %6151 = vmatprep.subr.bf16.mxu0 %v6592_v36  ;;  %v7692_v25 = vpop.f32.mrb[101].mxu0 }
 0x901   :  { %v7694_v17 = vpop.f32.mrb[102].mxu0 }
 0x902   :  { %v4036_v35 = vpack.c.bf16 %v7694_v17, %v7690_v34  ;;  %v7698_v40 = vpop.f32.mrb[103].mxu0 }
 0x903   :  { %6152 = vmatpush3.bf16.msra.mxu0 %v6592_v36  ;;  %v4035_v43 = vpack.c.bf16 %v7698_v40, %v7692_v25 }
 0x904   :  { %6153 = vmatprep.subr.bf16.mxu0 %v6593_v56 }
 0x907   :  { %6154 = vmatpush3.bf16.msra.mxu0 %v6593_v56 }
 0x908   :  { %6155 = vmatprep.subr.bf16.mxu0 %v6594_v1 }
 0x90b   :  { %6156 = vmatpush3.bf16.msra.mxu0 %v6594_v1 }
 0x90c   :  { %6165 = vmatprep.subr.bf16.mxu0 %v6595_v6 }
 0x90e   :  { %6158 = vmatmul.mubr.bf16.vlgmr.msra.gmra.mrb[104].mxu0 %v3750_v26  ;;  %v6611_v26 = vld [vmem:[%s7950_s3] sm:$0xff]  }
 0x90f   :  { %6166 = vmatpush3.bf16.msra.mxu0 %v6595_v6  ;;  %6161 = vmatprep.mubr.bf16.mxu0 %v3751_v31 }
 0x910   :  { %6167 = vmatprep.subr.bf16.mxu0 %v6596_v7  ;;  %6213 = vmatprep.subr.bf16.mxu1 %v6611_v26 }
 0x911   :  { %6214 = vmatpush3.bf16.msra.mxu1 %v6611_v26 }
 0x912   :  { %6215 = vmatprep.subr.bf16.mxu1 %v6612_v24 }
 0x913   :  { %6168 = vmatpush3.bf16.msra.mxu0 %v6596_v7 }
 0x914   :  { %6169 = vmatprep.subr.bf16.mxu0 %v6597_v8 }
 0x915   :  { %6216 = vmatpush3.bf16.msra.mxu1 %v6612_v24 }
 0x916   :  { %6162 = vmatmul.mubr.bf16.gmra.mrb[108].mxu0 %v3752_v30  ;;  %6217 = vmatprep.subr.bf16.mxu1 %v6613_v12  ;;  %v7750_v30 = vld [vmem:[%s7951_s4 + $0x18] sm:$0xff] }
 0x917   :  { %6170 = vmatpush3.bf16.msra.mxu0 %v6597_v8  ;;  %6181 = vmatprep.mubr.bf16.mxu0 %v3891_v41  ;;  %v4180_v60 = vrot.slane %v7750_v30, %v7071_v55 }
 0x918   :  { %6171 = vmatprep.subr.bf16.mxu0 %v6598_v10 }
 0x919   :  { %6218 = vmatpush3.bf16.msra.mxu1 %v6613_v12 }
 0x91a   :  { %6219 = vmatprep.subr.bf16.mxu1 %v6614_v27 }
 0x91b   :  { %6172 = vmatpush3.bf16.msra.mxu0 %v6598_v10 }
 0x91c   :  { %6173 = vmatprep.subr.bf16.mxu0 %v6599_v11 }
 0x91d   :  { %6220 = vmatpush3.bf16.msra.mxu1 %v6614_v27 }
 0x91e   :  { %6221 = vmatprep.subr.bf16.mxu1 %v6615_v59 }
 0x91f   :  { %6174 = vmatpush3.bf16.msra.mxu0 %v6599_v11 }
 0x920   :  { %6175 = vmatprep.subr.bf16.mxu0 %v6600_v13 }
 0x921   :  { %6222 = vmatpush3.bf16.msra.mxu1 %v6615_v59 }
 0x922   :  { %6223 = vmatprep.subr.bf16.mxu1 %v6616_v32 }
 0x923   :  { %6176 = vmatpush3.bf16.msra.mxu0 %v6600_v13 }
 0x924   :  { %6177 = vmatprep.subr.bf16.mxu0 %v6601_v14 }
 0x925   :  { %6224 = vmatpush3.bf16.msra.mxu1 %v6616_v32 }
 0x926   :  { %6225 = vmatprep.subr.bf16.mxu1 %v6617_v18 }
 0x927   :  { %6178 = vmatpush3.bf16.msra.mxu0 %v6601_v14 }
 0x928   :  { %6179 = vmatprep.subr.bf16.mxu0 %v6602_v54 }
 0x929   :  { %6226 = vmatpush3.bf16.msra.mxu1 %v6617_v18 }
 0x92a   :  { %6227 = vmatprep.subr.bf16.mxu1 %v6618_v3 }
 0x92b   :  { %6180 = vmatpush3.bf16.msra.mxu0 %v6602_v54 }
 0x92c   :  { %6189 = vmatprep.subr.bf16.mxu0 %v6603_v0 }
 0x92d   :  { %6228 = vmatpush3.bf16.msra.mxu1 %v6618_v3 }
 0x92e   :  { %6182 = vmatmul.mubr.bf16.vlgmr.msra.gmra.mrb[104].mxu0 %v3892_v37 }
 0x92f   :  { %6190 = vmatpush3.bf16.msra.mxu0 %v6603_v0  ;;  %6185 = vmatprep.mubr.bf16.mxu0 %v3893_v22 }
 0x930   :  { %6191 = vmatprep.subr.bf16.mxu0 %v6604_v16 }
 0x933   :  { %6192 = vmatpush3.bf16.msra.mxu0 %v6604_v16 }
 0x934   :  { %6193 = vmatprep.subr.bf16.mxu0 %v6605_v52 }
 0x936   :  { %6186 = vmatmul.mubr.bf16.gmra.mrb[108].mxu0 %v3894_v48 }
 0x937   :  { %6194 = vmatpush3.bf16.msra.mxu0 %v6605_v52  ;;  %6205 = vmatprep.mubr.bf16.mxu0 %v4033_v2 }
 0x938   :  { %6195 = vmatprep.subr.bf16.mxu0 %v6606_v15 }
 0x93b   :  { %6196 = vmatpush3.bf16.msra.mxu0 %v6606_v15 }
 0x93c   :  { %6197 = vmatprep.subr.bf16.mxu0 %v6607_v63 }
 0x93f   :  { %6198 = vmatpush3.bf16.msra.mxu0 %v6607_v63 }
 0x940   :  { %6199 = vmatprep.subr.bf16.mxu0 %v6608_v9 }
 0x943   :  { %6200 = vmatpush3.bf16.msra.mxu0 %v6608_v9 }
 0x944   :  { %6201 = vmatprep.subr.bf16.mxu0 %v6609_v29 }
 0x947   :  { %6202 = vmatpush3.bf16.msra.mxu0 %v6609_v29 }
 0x948   :  { %6203 = vmatprep.subr.bf16.mxu0 %v6610_v19 }
 0x94b   :  { %6204 = vmatpush3.bf16.msra.mxu0 %v6610_v19 }
 0x94e   :  { %6206 = vmatmul.mubr.bf16.vlgmr.msra.gmra.mrb[104].mxu0 %v4034_v4 }
 0x94f   :  { %6209 = vmatprep.mubr.bf16.mxu0 %v4035_v43 }
 0x956   :  { %6210 = vmatmul.mubr.bf16.gmra.mrb[108].mxu0 %v4036_v35 }
 0xa21   :  { %v6207_v31 = vpop.f32.mrb[104].mxu0 }
 0xa22   :  { %v4136_v21 = vpop.f32.mrb[105].mxu0  ;;  %v4183_v39 = vadd.f32 %v6207_v31, %v4180_v60 }
 0xa23   :  { %v4181_v5 = vadd.f32 %v4180_v60, %v4136_v21  ;;  %v6208_v33 = vpop.f32.mrb[106].mxu0 }
 0xa24   :  { %v4139_v62 = vpop.f32.mrb[107].mxu0  ;;  %v4184_v41 = vadd.f32 %v6208_v33, %v4180_v60  ;;  %v4213_v45 = vmul.f32 %v4183_v39, %v4183_v39 }
 0xa25   :  { %v4182_v37 = vadd.f32 %v4180_v60, %v4139_v62  ;;  %v4211_v38 = vmul.f32 %v4181_v5, %v4181_v5 }
 0xa26   :  { %v4214_v22 = vmul.f32 %v4184_v41, %v4184_v41 }
 0xa27   :  { %v4197_v42 = vadd.f32 %v4182_v37, %v4181_v5  ;;  %v4212_v44 = vmul.f32 %v4182_v37, %v4182_v37 }
 0xa29   :  { %v4198_v46 = vadd.f32 %v4197_v42, %v4183_v39  ;;  %v4219_v47 = vadd.f32 %v4212_v44, %v4211_v38  ;;  %v6211_v48 = vpop.f32.mrb[108].mxu0 }
 0xa2a   :  { %v4152_v49 = vpop.f32.mrb[109].mxu0  ;;  %v4187_v23 = vadd.f32 %v6211_v48, %v4180_v60 }
 0xa2b   :  { %v4220_v28 = vadd.f32 %v4219_v47, %v4213_v45  ;;  %v4185_v51 = vadd.f32 %v4180_v60, %v4152_v49  ;;  %v4199_v57 = vadd.f32 %v4198_v46, %v4184_v41  ;;  %v6212_v58 = vpop.f32.mrb[110].mxu0 }
 0xa2c   :  { %v4155_v4 = vpop.f32.mrb[111].mxu0  ;;  %v4188_v25 = vadd.f32 %v6212_v58, %v4180_v60  ;;  %v4217_v40 = vmul.f32 %v4187_v23, %v4187_v23 }
 0xa2d   :  { %v4200_v20 = vadd.f32 %v4199_v57, %v4185_v51  ;;  %v4215_v2 = vmul.f32 %v4185_v51, %v4185_v51  ;;  %v4221_v36 = vadd.f32 %v4220_v28, %v4214_v22  ;;  %v4186_v34 = vadd.f32 %v4180_v60, %v4155_v4 }
 0xa2e   :  { %v4218_v6 = vmul.f32 %v4188_v25, %v4188_v25 }
 0xa2f   :  { %v4222_v56 = vadd.f32 %v4221_v36, %v4215_v2  ;;  %v4201_v17 = vadd.f32 %v4200_v20, %v4186_v34  ;;  %v4216_v35 = vmul.f32 %v4186_v34, %v4186_v34 }
 0xa31   :  { %v4202_v43 = vadd.f32 %v4201_v17, %v4187_v23  ;;  %v4223_v1 = vadd.f32 %v4222_v56, %v4216_v35 }
 0xa33   :  { %v4203_v7 = vadd.f32 %v4202_v43, %v4188_v25  ;;  %v4224_v8 = vadd.f32 %v4223_v1, %v4217_v40 }
 0xa35   :  { %v4204_v10 = vrot.slane %v4203_v7, 4  ;;  %v4225_v11 = vadd.f32 %v4224_v8, %v4218_v6 }
 0xa37   :  { %v4205_v13 = vadd.f32 %v4204_v10, %v4203_v7  ;;  %v4226_v14 = vrot.slane %v4225_v11, 4 }
 0xa39   :  { %v4206_v54 = vrot.slane %v4205_v13, 2  ;;  %v4227_v0 = vadd.f32 %v4226_v14, %v4225_v11 }
 0xa3b   :  { %v4207_v16 = vadd.f32 %v4206_v54, %v4205_v13  ;;  %v4228_v52 = vrot.slane %v4227_v0, 2 }
 0xa3d   :  { %v4208_v15 = vrot.slane %v4207_v16, 1  ;;  %v4229_v63 = vadd.f32 %v4228_v52, %v4227_v0 }
 0xa3f   :  { %v4209_v9 = vadd.f32 %v4208_v15, %v4207_v16  ;;  %v4230_v29 = vrot.slane %v4229_v63, 1 }
 0xa41   :  { %v4210_v19 = vmul.f32 0.015625, %v4209_v9  ;;  %v4231_v26 = vadd.f32 %v4230_v29, %v4229_v63 }
 0xa43   :  { %v4232_v24 = vmul.f32 0.015625, %v4231_v26  ;;  %v4233_v12 = vmul.f32 %v4210_v19, %v4210_v19 }
 0xa45   :  { %v4234_v27 = vsub.f32 %v4232_v24, %v4233_v12 }
 0xa47   :  { %v4235_v59 = vmax.f32 %v4234_v27, 0.0 }
 0xa49   :  { %v4236_v32 = vadd.f32 1e-05, %v4235_v59 }
 0xa4b   :  { %6689 = vrsqrt.f32 %v4236_v32 }
 0xa55   :  { %v6690_v18 = vpop.eup %6689 }
 0xa56   :  { %v4238_v3 = vmul.f32 %v6690_v18, %v7750_v30 }
 0xa58   :  { %v4239_v60 = vmul.f32 %v4238_v3, %v4210_v19  ;;  %v4247_v31 = vrot.slane %v4238_v3, %v7086_v50 }
 0xa5a   :  { %v4241_v21 = vrot.slane %v4239_v60, 7  ;;  %v4253_v33 = vmul.f32 %v4247_v31, %v4186_v34  ;;  %v4248_v62 = vmul.f32 %v4247_v31, %v4181_v5  ;;  %v4249_v38 = vmul.f32 %v4247_v31, %v4182_v37 }
 0xa5b   :  { %v4250_v42 = vmul.f32 %v4247_v31, %v4183_v39  ;;  %v4251_v44 = vmul.f32 %v4247_v31, %v4184_v41  ;;  %v4252_v45 = vmul.f32 %v4247_v31, %v4185_v51  ;;  %v4254_v46 = vmul.f32 %v4247_v31, %v4187_v23 }
 0xa5c   :  { %v4243_v47 = vsub.f32 %v7750_v30, %v4241_v21  ;;  %v4255_v48 = vmul.f32 %v4247_v31, %v4188_v25 }
 0xa5e   :  { %v4259_v49 = vrot.slane %v4243_v47, %v7091_v61 }
 0xa60   :  { %v7758_v22 = vadd.f32 %v4259_v49, %v4253_v33  ;;  %v4260_v28 = vadd.f32 %v4259_v49, %v4248_v62  ;;  %v4261_v57 = vadd.f32 %v4259_v49, %v4249_v38  ;;  %v4262_v58 = vadd.f32 %v4259_v49, %v4250_v42 }
 0xa61   :  { %v7760_v4 = vadd.f32 %v4259_v49, %v4251_v44  ;;  %v7762_v20 = vadd.f32 %v4259_v49, %v4252_v45  ;;  %v7764_v5 = vadd.f32 %v4259_v49, %v4254_v46  ;;  %v7766_v39 = vadd.f32 %v4259_v49, %v4255_v48 }
 0xa62   :  { %v4276_v37 = vmul.f32 0.044715, %v4260_v28  ;;  %v4277_v41 = vmul.f32 0.044715, %v4261_v57  ;;  %v4278_v51 = vmul.f32 0.044715, %v4262_v58 }
 0xa63   :  { %v4279_v30 = vmul.f32 0.044715, %v7760_v4  ;;  %v4280_v56 = vmul.f32 0.044715, %v7762_v20  ;;  %v4281_v25 = vmul.f32 0.044715, %v7758_v22 }
 0xa64   :  { %v4284_v23 = vmul.f32 %v4276_v37, %v4260_v28  ;;  %v4285_v2 = vmul.f32 %v4277_v41, %v4261_v57  ;;  %v4286_v36 = vmul.f32 %v4278_v51, %v4262_v58  ;;  %v4282_v10 = vmul.f32 0.044715, %v7764_v5 }
 0xa65   :  { %v4287_v34 = vmul.f32 %v4279_v30, %v7760_v4  ;;  %v4288_v1 = vmul.f32 %v4280_v56, %v7762_v20  ;;  %v4289_v6 = vmul.f32 %v4281_v25, %v7758_v22  ;;  %v4283_v11 = vmul.f32 0.044715, %v7766_v39 }
 0xa66   :  { %v4292_v17 = vmul.f32 %v4284_v23, %v4260_v28  ;;  %v4293_v35 = vmul.f32 %v4285_v2, %v4261_v57  ;;  %v4294_v40 = vmul.f32 %v4286_v36, %v4262_v58  ;;  %v4290_v15 = vmul.f32 %v4282_v10, %v7764_v5  ;;  %v6621_v10 = vld [vmem:[%s7950_s3 + $0x50] sm:$0xff]  }
 0xa67   :  { %v4295_v43 = vmul.f32 %v4287_v34, %v7760_v4  ;;  %v4296_v54 = vmul.f32 %v4288_v1, %v7762_v20  ;;  %v4297_v0 = vmul.f32 %v4289_v6, %v7758_v22  ;;  %v4291_v63 = vmul.f32 %v4283_v11, %v7766_v39  ;;  %v6622_v11 = vld [vmem:[%s7950_s3 + $0x58] sm:$0xff]  }
 0xa68   :  { %v4300_v7 = vadd.f32 %v4292_v17, %v4260_v28  ;;  %v4301_v8 = vadd.f32 %v4293_v35, %v4261_v57  ;;  %v4302_v13 = vadd.f32 %v4294_v40, %v4262_v58  ;;  %v4298_v24 = vmul.f32 %v4290_v15, %v7764_v5 }
 0xa69   :  { %v4303_v14 = vadd.f32 %v4295_v43, %v7760_v4  ;;  %v4304_v19 = vadd.f32 %v4296_v54, %v7762_v20  ;;  %v4305_v26 = vadd.f32 %v4297_v0, %v7758_v22  ;;  %v4299_v12 = vmul.f32 %v4291_v63, %v7766_v39  ;;  %v6625_v54 = vld [vmem:[%s7950_s3 + $0x70] sm:$0xff]   ;;  %v6626_v0 = vld [vmem:[%s7950_s3 + $0x78] sm:$0xff]  }
 0xa6a   :  { %v4308_v16 = vmul.f32 0.7978846, %v4300_v7  ;;  %v4309_v52 = vmul.f32 0.7978846, %v4301_v8  ;;  %v4310_v9 = vmul.f32 0.7978846, %v4302_v13  ;;  %v4306_v32 = vadd.f32 %v4298_v24, %v7764_v5 }
 0xa6b   :  { %v4311_v29 = vmul.f32 0.7978846, %v4303_v14  ;;  %v4312_v27 = vmul.f32 0.7978846, %v4304_v19  ;;  %v4313_v59 = vmul.f32 0.7978846, %v4305_v26  ;;  %v4307_v18 = vadd.f32 %v4299_v12, %v7766_v39 }
 0xa6c   :  { %6691 = vtanh.f32 %v4308_v16  ;;  %v4314_v3 = vmul.f32 0.7978846, %v4306_v32  ;;  %v4268_v33 = vmul.f32 0.5, %v4260_v28  ;;  %v4269_v42 = vmul.f32 0.5, %v4261_v57  ;;  %v6623_v13 = vld [vmem:[%s7950_s3 + $0x60] sm:$0xff]   ;;  %v6624_v14 = vld [vmem:[%s7950_s3 + $0x68] sm:$0xff]  }
 0xa6d   :  { %6693 = vtanh.f32 %v4309_v52  ;;  %v4315_v60 = vmul.f32 0.7978846, %v4307_v18  ;;  %v4270_v47 = vmul.f32 0.5, %v4262_v58  ;;  %v4271_v41 = vmul.f32 0.5, %v7760_v4  ;;  %v7832_v16 = vld [vmem:[%s7950_s3 + $0x80] sm:$0xff]  }
 0xa6e   :  { %6695 = vtanh.f32 %v4310_v9  ;;  %v4272_v2 = vmul.f32 0.5, %v7762_v20  ;;  %v4273_v57 = vmul.f32 0.5, %v7758_v22  ;;  %v4274_v35 = vmul.f32 0.5, %v7764_v5  ;;  %v6619_v5 = vld [vmem:[%s7950_s3 + $0x40] sm:$0xff]  }
 0xa6f   :  { %6697 = vtanh.f32 %v4311_v29  ;;  %v4275_v20 = vmul.f32 0.5, %v7766_v39  ;;  %6237 = vmatprep.subr.bf16.mxu1 %v6619_v5  ;;  %v6620_v39 = vld [vmem:[%s7950_s3 + $0x48] sm:$0xff]   ;;  %v7838_v52 = vld [vmem:[%s7951_s4 + $0x20] sm:$0xff] }
 0xa70   :  { %6699 = vtanh.f32 %v4312_v27  ;;  %v4373_v15 = vrot.slane %v7838_v52, %v7071_v55 }
 0xa71   :  { %6701 = vtanh.f32 %v4313_v59 }
 0xa72   :  { %6703 = vtanh.f32 %v4314_v3 }
 0xa73   :  { %6705 = vtanh.f32 %v4315_v60 }
 0xa76   :  { %v6692_v31 = vpop.eup %6691 }
 0xa77   :  { %v6694_v21 = vpop.eup %6693  ;;  %v4324_v62 = vadd.f32 1.0, %v6692_v31 }
 0xa78   :  { %v6696_v38 = vpop.eup %6695  ;;  %v4325_v44 = vadd.f32 1.0, %v6694_v21 }
 0xa79   :  { %v6698_v45 = vpop.eup %6697  ;;  %v4332_v46 = vmul.f32 %v4324_v62, %v4268_v33  ;;  %v4326_v48 = vadd.f32 1.0, %v6696_v38 }
 0xa7a   :  { %v6700_v49 = vpop.eup %6699  ;;  %v4333_v37 = vmul.f32 %v4325_v44, %v4269_v42  ;;  %v4327_v51 = vadd.f32 1.0, %v6698_v45 }
 0xa7b   :  { %v6702_v30 = vpop.eup %6701  ;;  %v4334_v23 = vmul.f32 %v4326_v48, %v4270_v47  ;;  %v4328_v36 = vadd.f32 1.0, %v6700_v49 }
 0xa7c   :  { %v6704_v34 = vpop.eup %6703  ;;  %v7790_v28 = vpack.c.bf16 %v4333_v37, %v4332_v46  ;;  %v4335_v56 = vmul.f32 %v4327_v51, %v4271_v41  ;;  %v4329_v25 = vadd.f32 1.0, %v6702_v30 }
 0xa7d   :  { %v6706_v17 = vpop.eup %6705  ;;  %v4336_v58 = vmul.f32 %v4328_v36, %v4272_v2  ;;  %v4330_v40 = vadd.f32 1.0, %v6704_v34 }
 0xa7e   :  { %6229 = vmatprep.mubr.bf16.mxu1 %v7790_v28  ;;  %v7795_v4 = vpack.c.bf16 %v4335_v56, %v4334_v23  ;;  %v4337_v43 = vmul.f32 %v4329_v25, %v4273_v57  ;;  %v4331_v1 = vadd.f32 1.0, %v6706_v17 }
 0xa7f   :  { %v4338_v6 = vmul.f32 %v4330_v40, %v4274_v35 }
 0xa80   :  { %6230 = vmatmul.mubr.bf16.vlgmr.msra.gmra.mrb[48].mxu1 %v7795_v4  ;;  %v7799_v7 = vpack.c.bf16 %v4337_v43, %v4336_v58  ;;  %v4339_v22 = vmul.f32 %v4331_v1, %v4275_v20 }
 0xa81   :  { %6238 = vmatpush3.bf16.msra.mxu1 %v6619_v5 }
 0xa82   :  { %6233 = vmatprep.mubr.bf16.mxu1 %v7799_v7  ;;  %v7802_v8 = vpack.c.bf16 %v4339_v22, %v4338_v6  ;;  %6239 = vmatprep.subr.bf16.mxu1 %v6620_v39 }
 0xa85   :  { %6240 = vmatpush3.bf16.msra.mxu1 %v6620_v39 }
 0xa86   :  { %6241 = vmatprep.subr.bf16.mxu1 %v6621_v10 }
 0xa88   :  { %6234 = vmatmul.mubr.bf16.gmra.mrb[52].mxu1 %v7802_v8 }
 0xa89   :  { %6242 = vmatpush3.bf16.msra.mxu1 %v6621_v10 }
 0xa8a   :  { %6243 = vmatprep.subr.bf16.mxu1 %v6622_v11 }
 0xa8d   :  { %6244 = vmatpush3.bf16.msra.mxu1 %v6622_v11 }
 0xa8e   :  { %6245 = vmatprep.subr.bf16.mxu1 %v6623_v13 }
 0xa91   :  { %6246 = vmatpush3.bf16.msra.mxu1 %v6623_v13 }
 0xa92   :  { %6247 = vmatprep.subr.bf16.mxu1 %v6624_v14 }
 0xa95   :  { %6248 = vmatpush3.bf16.msra.mxu1 %v6624_v14 }
 0xa96   :  { %6249 = vmatprep.subr.bf16.mxu1 %v6625_v54 }
 0xa99   :  { %6250 = vmatpush3.bf16.msra.mxu1 %v6625_v54 }
 0xa9a   :  { %6251 = vmatprep.subr.bf16.mxu1 %v6626_v0 }
 0xa9d   :  { %6252 = vmatpush3.bf16.msra.mxu1 %v6626_v0 }
 0xa9e   :  { %6261 = vmatprep.subr.bf16.mxu1 %v7832_v16 }
 0xb53   :  { %v6231_v63 = vpop.f32.mrb[48].mxu1 }
 0xb54   :  { %v7842_v9 = vadd.f32 %v6231_v63, %v4373_v15  ;;  %v4456_v29 = vpop.f32.mrb[49].mxu1 }
 0xb55   :  { %v7844_v19 = vadd.f32 %v4456_v29, %v4373_v15  ;;  %v6232_v26 = vpop.f32.mrb[50].mxu1 }
 0xb56   :  { %v4497_v24 = vmul.f32 0.044715, %v7842_v9  ;;  %v7847_v12 = vadd.f32 %v6232_v26, %v4373_v15  ;;  %v4459_v27 = vpop.f32.mrb[51].mxu1 }
 0xb57   :  { %v4495_v59 = vmul.f32 0.044715, %v7844_v19  ;;  %v7850_v32 = vadd.f32 %v4459_v27, %v4373_v15 }
 0xb58   :  { %v4505_v18 = vmul.f32 %v4497_v24, %v7842_v9  ;;  %v4498_v55 = vmul.f32 0.044715, %v7847_v12 }
 0xb59   :  { %v4503_v3 = vmul.f32 %v4495_v59, %v7844_v19  ;;  %v4496_v60 = vmul.f32 0.044715, %v7850_v32 }
 0xb5a   :  { %v4513_v31 = vmul.f32 %v4505_v18, %v7842_v9  ;;  %v4506_v21 = vmul.f32 %v4498_v55, %v7847_v12  ;;  %v4489_v55 = vmul.f32 0.5, %v7842_v9 }
 0xb5b   :  { %v4511_v33 = vmul.f32 %v4503_v3, %v7844_v19  ;;  %v4504_v62 = vmul.f32 %v4496_v60, %v7850_v32  ;;  %v6235_v38 = vpop.f32.mrb[52].mxu1  ;;  %v4490_v3 = vmul.f32 0.5, %v7847_v12 }
 0xb5c   :  { %v4521_v42 = vadd.f32 %v4513_v31, %v7842_v9  ;;  %v4514_v44 = vmul.f32 %v4506_v21, %v7847_v12  ;;  %v7862_v45 = vadd.f32 %v6235_v38, %v4373_v15  ;;  %v4472_v46 = vpop.f32.mrb[53].mxu1  ;;  %v4487_v31 = vmul.f32 0.5, %v7844_v19  ;;  %v6628_v9 = vld [vmem:[%s7950_s3 + $0x88] sm:$0xff]  }
 0xb5d   :  { %v4512_v47 = vmul.f32 %v4504_v62, %v7850_v32  ;;  %v7865_v48 = vadd.f32 %v4472_v46, %v4373_v15  ;;  %v6236_v49 = vpop.f32.mrb[54].mxu1  ;;  %v4519_v37 = vadd.f32 %v4511_v33, %v7844_v19  ;;  %v4488_v21 = vmul.f32 0.5, %v7850_v32 }
 0xb5e   :  { %v4529_v41 = vmul.f32 0.7978846, %v4521_v42  ;;  %v4522_v51 = vadd.f32 %v4514_v44, %v7847_v12  ;;  %v4501_v30 = vmul.f32 0.044715, %v7862_v45  ;;  %v4484_v23 = vadd.f32 %v6236_v49, %v4373_v15  ;;  %v4475_v2 = vpop.f32.mrb[55].mxu1 }
 0xb5f   :  { %v4499_v36 = vmul.f32 0.044715, %v7865_v48  ;;  %v4476_v34 = vadd.f32 %v4475_v2, %v4373_v15  ;;  %v4520_v56 = vadd.f32 %v4512_v47, %v7850_v32  ;;  %v4527_v57 = vmul.f32 0.7978846, %v4519_v37 }
 0xb60   :  { %6707 = vtanh.f32 %v4529_v41  ;;  %v4530_v25 = vmul.f32 0.7978846, %v4522_v51  ;;  %v4509_v17 = vmul.f32 %v4501_v30, %v7862_v45  ;;  %v4502_v58 = vmul.f32 0.044715, %v4484_v23 }
 0xb61   :  { %v4507_v35 = vmul.f32 %v4499_v36, %v7865_v48  ;;  %v4500_v40 = vmul.f32 0.044715, %v4476_v34  ;;  %v4528_v43 = vmul.f32 0.7978846, %v4520_v56  ;;  %6709 = vtanh.f32 %v4527_v57 }
 0xb62   :  { %6711 = vtanh.f32 %v4530_v25  ;;  %v4517_v20 = vmul.f32 %v4509_v17, %v7862_v45  ;;  %v4510_v1 = vmul.f32 %v4502_v58, %v4484_v23  ;;  %v4493_v32 = vmul.f32 0.5, %v7862_v45  ;;  %v6629_v25 = vld [vmem:[%s7950_s3 + $0x90] sm:$0xff]  }
 0xb63   :  { %v4515_v6 = vmul.f32 %v4507_v35, %v7865_v48  ;;  %v4508_v22 = vmul.f32 %v4500_v40, %v4476_v34  ;;  %6713 = vtanh.f32 %v4528_v43  ;;  %v4494_v30 = vmul.f32 0.5, %v4484_v23 }
 0xb64   :  { %v4518_v5 = vmul.f32 %v4510_v1, %v4484_v23  ;;  %v4525_v39 = vadd.f32 %v4517_v20, %v7862_v45  ;;  %v4491_v36 = vmul.f32 0.5, %v7865_v48  ;;  %v4492_v56 = vmul.f32 0.5, %v4476_v34 }
 0xb65   :  { %v4516_v10 = vmul.f32 %v4508_v22, %v4476_v34  ;;  %v4523_v11 = vadd.f32 %v4515_v6, %v7865_v48  ;;  %v6631_v48 = vld [vmem:[%s7950_s3 + $0xa0] sm:$0xff]   ;;  %v4583_v20 = vrot.slane %v7838_v52, %v7086_v50  ;;  %v4838_v1 = vrot.slane %v7838_v52, %v7091_v61 }
 0xb66   :  { %v4526_v13 = vadd.f32 %v4518_v5, %v4484_v23  ;;  %v4533_v14 = vmul.f32 0.7978846, %v4525_v39  ;;  %v6632_v23 = vld [vmem:[%s7950_s3 + $0xa8] sm:$0xff]  }
 0xb67   :  { %v4524_v54 = vadd.f32 %v4516_v10, %v4476_v34  ;;  %v4531_v0 = vmul.f32 0.7978846, %v4523_v11  ;;  %v6633_v34 = vld [vmem:[%s7950_s3 + $0xb0] sm:$0xff]  }
 0xb68   :  { %v4534_v15 = vmul.f32 0.7978846, %v4526_v13  ;;  %6715 = vtanh.f32 %v4533_v14 }
 0xb69   :  { %v4532_v63 = vmul.f32 0.7978846, %v4524_v54  ;;  %6717 = vtanh.f32 %v4531_v0 }
 0xb6a   :  { %v6708_v29 = vpop.eup %6707  ;;  %6719 = vtanh.f32 %v4534_v15 }
 0xb6b   :  { %v6710_v26 = vpop.eup %6709  ;;  %v4545_v24 = vadd.f32 1.0, %v6708_v29  ;;  %6721 = vtanh.f32 %v4532_v63 }
 0xb6c   :  { %v6712_v27 = vpop.eup %6711  ;;  %v4543_v59 = vadd.f32 1.0, %v6710_v26 }
 0xb6d   :  { %v6714_v18 = vpop.eup %6713  ;;  %v4546_v60 = vadd.f32 1.0, %v6712_v27  ;;  %v4553_v62 = vmul.f32 %v4545_v24, %v4489_v55 }
 0xb6e   :  { %v4544_v33 = vadd.f32 1.0, %v6714_v18  ;;  %v4551_v42 = vmul.f32 %v4543_v59, %v4487_v31  ;;  %v4848_v18 = vand.u32 127, %v1093_v53 }
 0xb6f   :  { %v4554_v38 = vmul.f32 %v4546_v60, %v4490_v3 }
 0xb70   :  { %v4552_v44 = vmul.f32 %v4544_v33, %v4488_v21  ;;  %vm4881_vm1 = vcmp.ge.s32.totalorder %v4848_v18, 16  ;;  %vm4882_vm2 = vcmp.lt.s32.totalorder %v4848_v18, 32 }
 0xb71   :  { %v4560_v46 = vpack.c.bf16 %v4554_v38, %v4553_v62  ;;  %vm7915_vm3 = vmand %vm4881_vm1, %vm4882_vm2 }
 0xb72   :  { %v6716_v47 = vpop.eup %6715  ;;  %v4559_v49 = vpack.c.bf16 %v4552_v44, %v4551_v42 }
 0xb73   :  { %v6718_v37 = vpop.eup %6717  ;;  %v4549_v41 = vadd.f32 1.0, %v6716_v47 }
 0xb74   :  { %v6720_v12 = vpop.eup %6719  ;;  %6253 = vmatprep.mubr.bf16.mxu1 %v4559_v49  ;;  %v4547_v51 = vadd.f32 1.0, %v6718_v37 }
 0xb75   :  { %v6722_v19 = vpop.eup %6721  ;;  %6254 = vmatmul.mubr.bf16.vlgmr.msra.gmra.mrb[56].mxu1 %v4560_v46  ;;  %v4550_v2 = vadd.f32 1.0, %v6720_v12  ;;  %v4557_v17 = vmul.f32 %v4549_v41, %v4493_v32 }
 0xb76   :  { %6262 = vmatpush3.bf16.msra.mxu1 %v7832_v16  ;;  %v4548_v57 = vadd.f32 1.0, %v6722_v19  ;;  %v4555_v35 = vmul.f32 %v4547_v51, %v4491_v36  ;;  %v6630_v16 = vld [vmem:[%s7950_s3 + $0x98] sm:$0xff]  }
 0xb77   :  { %6263 = vmatprep.subr.bf16.mxu1 %v6628_v9  ;;  %v4558_v58 = vmul.f32 %v4550_v2, %v4494_v30 }
 0xb78   :  { %v4556_v40 = vmul.f32 %v4548_v57, %v4492_v56 }
 0xb79   :  { %v4562_v43 = vpack.c.bf16 %v4558_v58, %v4557_v17 }
 0xb7a   :  { %6264 = vmatpush3.bf16.msra.mxu1 %v6628_v9  ;;  %v4561_v45 = vpack.c.bf16 %v4556_v40, %v4555_v35 }
 0xb7b   :  { %6265 = vmatprep.subr.bf16.mxu1 %v6629_v25 }
 0xb7c   :  { %6257 = vmatprep.mubr.bf16.mxu1 %v4561_v45 }
 0xb7d   :  { %6258 = vmatmul.mubr.bf16.gmra.mrb[60].mxu1 %v4562_v43 }
 0xb7e   :  { %6266 = vmatpush3.bf16.msra.mxu1 %v6629_v25  ;;  %6277 = vmatprep.mubr.bf16.mxu1 %v7790_v28  ;;  %v6634_v28 = vld [vmem:[%s7950_s3 + $0xb8] sm:$0xff]   ;;  %s6821_s3 = smov [#allocation5]  }
 0xb7f   :  { %6267 = vmatprep.subr.bf16.mxu1 %v6630_v16  ;;  %s4905_s10 = sshll.u32 %s6821_s3, 4  ;;  %s4906_s10 = int_to_ptr.vmem [resolvable:$true] %s4905_s10 }
 0xb80   :  { %s6792_s11 = scalar_lea.vmem %s4906_s10, 1024  ;;  %p6797_p9 = scmp.lt.s32.totalorder %s4906_s10, %s4906_s10 }
 0xb81   :  { %p6793_p8 = scmp.ne.s32.totalorder %s4906_s10, %s6792_s11  ;;  %p6798_p10 = scmp.lt.s32.totalorder %s6792_s11, %s6792_s11 }
 0xb82   :  { %6268 = vmatpush3.bf16.msra.mxu1 %v6630_v16 }
 0xb83   :  { %6269 = vmatprep.subr.bf16.mxu1 %v6631_v48  ;;  %p6799_p11 = por %p6798_p10, %p6797_p9 }
 0xb85   :  { %p6800_p12 = pnand %p6799_p11, %p6793_p8 }
 0xb86   :  { %6270 = vmatpush3.bf16.msra.mxu1 %v6631_v48 }
 0xb87   :  { %6271 = vmatprep.subr.bf16.mxu1 %v6632_v23 }
 0xb8a   :  { %6272 = vmatpush3.bf16.msra.mxu1 %v6632_v23 }
 0xb8b   :  { %6273 = vmatprep.subr.bf16.mxu1 %v6633_v34 }
 0xb8e   :  { %6274 = vmatpush3.bf16.msra.mxu1 %v6633_v34 }
 0xb8f   :  { %6275 = vmatprep.subr.bf16.mxu1 %v6634_v28 }
 0xb92   :  { %6276 = vmatpush3.bf16.msra.mxu1 %v6634_v28 }
 0xb95   :  { %6278 = vmatmul.mubr.bf16.vlgmr.msra.gmra.mrb[56].mxu1 %v7795_v4 }
 0xb96   :  { %6281 = vmatprep.mubr.bf16.mxu1 %v7799_v7 }
 0xb9d   :  { %6282 = vmatmul.mubr.bf16.gmra.mrb[60].mxu1 %v7802_v8 }
 0xc68   :  { %v6279_v6 = vpop.f32.mrb[56].mxu1 }
 0xc69   :  { %v6285_v22 = vadd.f32 %v6279_v6, %v4583_v20  ;;  %v4796_v5 = vpop.f32.mrb[57].mxu1 }
 0xc6a   :  { %v6286_v39 = vadd.f32 %v4796_v5, %v4583_v20  ;;  %v6280_v10 = vpop.f32.mrb[58].mxu1 }
 0xc6b   :  { %v4841_v11 = vadd.f32 %v6285_v22, %v4838_v1  ;;  %v6287_v13 = vadd.f32 %v6280_v10, %v4583_v20  ;;  %v4799_v14 = vpop.f32.mrb[59].mxu1 }
 0xc6c   :  { %v4839_v54 = vadd.f32 %v6286_v39, %v4838_v1  ;;  %v6288_v4 = vadd.f32 %v4799_v14, %v4583_v20 }
 0xc6d   :  { %v4851_v0 = vmax.f32 %v4841_v11, -30.0  ;;  %v4842_v7 = vadd.f32 %v6287_v13, %v4838_v1 }
 0xc6e   :  { %v4849_v15 = vmax.f32 %v4839_v54, -30.0  ;;  %v4840_v8 = vadd.f32 %v6288_v4, %v4838_v1 }
 0xc6f   :  { %v4859_v63 = vmin.f32 %v4851_v0, 20.0  ;;  %v4852_v29 = vmax.f32 %v4842_v7, -30.0 }
 0xc70   :  { %v4857_v50 = vmin.f32 %v4849_v15, 20.0  ;;  %v4850_v26 = vmax.f32 %v4840_v8, -30.0  ;;  %v6283_v24 = vpop.f32.mrb[60].mxu1 }
 0xc71   :  { %v4869_v61 = vmul.f32 1.442695, %v4859_v63  ;;  %v4860_v52 = vmin.f32 %v4852_v29, 20.0  ;;  %v6289_v27 = vadd.f32 %v6283_v24, %v4583_v20  ;;  %v4812_v59 = vpop.f32.mrb[61].mxu1 }
 0xc72   :  { %v4865_v55 = vmul.f32 1.442695, %v4857_v50  ;;  %v4858_v3 = vmin.f32 %v4850_v26, 20.0  ;;  %v6290_v60 = vadd.f32 %v4812_v59, %v4583_v20  ;;  %v6284_v31 = vpop.f32.mrb[62].mxu1 }
 0xc73   :  { %6723 = vpow2.f32 %v4869_v61  ;;  %v4871_v21 = vmul.f32 1.442695, %v4860_v52  ;;  %v4845_v33 = vadd.f32 %v6289_v27, %v4838_v1  ;;  %v6291_v62 = vadd.f32 %v6284_v31, %v4583_v20  ;;  %v4815_v38 = vpop.f32.mrb[63].mxu1 }
 0xc74   :  { %6725 = vpow2.f32 %v4865_v55  ;;  %v4867_v42 = vmul.f32 1.442695, %v4858_v3  ;;  %v4843_v44 = vadd.f32 %v6290_v60, %v4838_v1  ;;  %v6292_v46 = vadd.f32 %v4815_v38, %v4583_v20 }
 0xc75   :  { %6727 = vpow2.f32 %v4871_v21  ;;  %v4855_v47 = vmax.f32 %v4845_v33, -30.0  ;;  %v4846_v49 = vadd.f32 %v6291_v62, %v4838_v1 }
 0xc76   :  { %6729 = vpow2.f32 %v4867_v42  ;;  %v4853_v37 = vmax.f32 %v4843_v44, -30.0  ;;  %v4844_v9 = vadd.f32 %v6292_v46, %v4838_v1 }
 0xc77   :  { %v4863_v53 = vmin.f32 %v4855_v47, 20.0  ;;  %v4856_v41 = vmax.f32 %v4846_v49, -30.0 }
 0xc78   :  { %v4861_v12 = vmin.f32 %v4853_v37, 20.0  ;;  %v4854_v51 = vmax.f32 %v4844_v9, -30.0 }
 0xc79   :  { %v4877_v19 = vmul.f32 1.442695, %v4863_v53  ;;  %v4864_v32 = vmin.f32 %v4856_v41, 20.0 }
 0xc7a   :  { %v4873_v30 = vmul.f32 1.442695, %v4861_v12  ;;  %v4862_v2 = vmin.f32 %v4854_v51, 20.0 }
 0xc7b   :  { %6731 = vpow2.f32 %v4877_v19  ;;  %v4879_v56 = vmul.f32 1.442695, %v4864_v32 }
 0xc7c   :  { %6733 = vpow2.f32 %v4873_v30  ;;  %v4875_v57 = vmul.f32 1.442695, %v4862_v2 }
 0xc7d   :  { %v6724_v25 = vpop.eup %6723  ;;  %6735 = vpow2.f32 %v4879_v56 }
 0xc7e   :  { %v6726_v17 = vpop.eup %6725  ;;  %v4886_v58 = vsel %vm7915_vm3, %v6724_v25, %v4841_v11  ;;  %6737 = vpow2.f32 %v4875_v57 }
 0xc7f   :  { %v6728_v35 = vpop.eup %6727  ;;  %4894 = vst [vmem:[#allocation5 + $0x10] sm:$0xff] %v4886_v58  ;;  %v4884_v40 = vsel %vm7915_vm3, %v6726_v17, %v4839_v54 }
 0xc80   :  { %v6730_v43 = vpop.eup %6729  ;;  %4892 = vst [vmem:[#allocation5] sm:$0xff] %v4884_v40  ;;  %v4887_v45 = vsel %vm7915_vm3, %v6728_v35, %v4842_v7 }
 0xc81   :  { %4895 = vst [vmem:[#allocation5 + $0x18] sm:$0xff] %v4887_v45  ;;  %v4885_v16 = vsel %vm7915_vm3, %v6730_v43, %v4840_v8 }
 0xc82   :  { %4893 = vst [vmem:[#allocation5 + $0x8] sm:$0xff] %v4885_v16 }
 0xc85   :  { %v6732_v48 = vpop.eup %6731 }
 0xc86   :  { %v6734_v23 = vpop.eup %6733  ;;  %v4890_v34 = vsel %vm7915_vm3, %v6732_v48, %v4845_v33 }
 0xc87   :  { %v6736_v28 = vpop.eup %6735  ;;  %4898 = vst [vmem:[#allocation5 + $0x30] sm:$0xff] %v4890_v34  ;;  %v4888_v20 = vsel %vm7915_vm3, %v6734_v23, %v4843_v44 }
 0xc88   :  { %v6738_v1 = vpop.eup %6737  ;;  %4896 = vst [vmem:[#allocation5 + $0x20] sm:$0xff] %v4888_v20  ;;  %v4891_v6 = vsel %vm7915_vm3, %v6736_v28, %v4846_v49 }
 0xc89   :  { %4899 = vst [vmem:[#allocation5 + $0x38] sm:$0xff] %v4891_v6  ;;  %v4889_v22 = vsel %vm7915_vm3, %v6738_v1, %v4844_v9 }
 0xc8a   :  { %4897 = vst [vmem:[#allocation5 + $0x28] sm:$0xff] %v4889_v22 }
 0xc8b   :  { %6803 = shalt.err (!%p6800_p12)
}
 0xc8c   :  { %s6804_s14 = scalar_lea.hbm %s7952_s5, 1024 }
 0xc8d   :  { %p6805_p13 = scmp.ne.s32.totalorder %s7952_s5, %s6804_s14  ;;  %p6808_p0 = scmp.lt.u32.totalorder %s6804_s14, %s7952_s5 }
 0xc8f   :  { %p6810_p1 = pnand %p6808_p0, %p6805_p13 }
 0xc91   :  { %6813 = shalt.err (!%p6810_p1)
}
 0xc92   :  { %s6822_s17 = smov 128   ;;  %s6823_s18 = smov 8  }
 0xc93   :  { %4911 = dma.vmem_to_hbm [thread:$0]  %s4906_s10, 1024, %s7952_s5, [#allocation4], %s6822_s17, %s6822_s17, %s6823_s18  }
 0xc94   :  { %6816 = dma.done.wait [#allocation4], 1024  }
 0xc95   :  { %6817 = vsyncadd [#allocation4], 4294966272 }
 0xc96   :  { %4915 = vsyncpa [#allocation3], 1 }
 0xc97   :  { %4916 = vsyncpa [#allocation4], 1 }

</bundles_post_ra>
